<compile_context>
chip_gen: v5e
topology: v5e:2x2
jax: 0.10.0
libtpu: 0.0.40
codegen_flags: <defaults>
</compile_context>

<pallas_src>
import jax
import jax.numpy as jnp
from jax.experimental import pallas as pl
from jax.experimental.pallas import tpu as pltpu

VMEM = pltpu.MemorySpace.VMEM


# ----------------------------------------------------------------------------- #
# Fused Discriminator_seq kernel
# ----------------------------------------------------------------------------- #
def discriminator_seq_kernel(x_ref, mask_ref,
                             ln_w_ref, ln_b_ref,
                             w_lin_ref, b_lin_ref,
                             wih_ref, b_gates_ref,
                             whh_f_ref, whh_b_ref,
                             w1b_ref, w1f_ref, b1_ref,
                             w2_ref, b2_ref,
                             out_ref):
    T, B, D = x_ref.shape
    H4 = whh_f_ref.shape[1]          # 4 * hidden
    H = H4 // 4                      # hidden = 2 * dim_z

    x = x_ref[...].astype(jnp.float32)                               # (T, B, D)

    # ---- LayerNorm over the joint (T, D) axes per batch element (nn.LayerNorm([T, dim])) ----
    inv_n = 1.0 / float(T * D)
    mean = jnp.sum(jnp.sum(x, axis=2, keepdims=True), axis=0, keepdims=True) * inv_n
    diff = x - mean
    var = jnp.sum(jnp.sum(diff * diff, axis=2, keepdims=True),
                  axis=0, keepdims=True) * inv_n
    xn = diff * jax.lax.rsqrt(var + 1e-5) * ln_w_ref[...] + ln_b_ref[...]   # (T, B, D)

    # ---- Embedding + fused input-gate projection for BOTH LSTM directions (one matmul) ----
    emb = jnp.maximum(
        jnp.dot(xn.reshape(T * B, D), w_lin_ref[...],
                preferred_element_type=jnp.float32) + b_lin_ref[...], 0.0)  # (T*B, dz)
    xg = (jnp.dot(emb, wih_ref[...], preferred_element_type=jnp.float32)
          + b_gates_ref[...]).reshape(T, B, 2 * H4)                         # (T, B, 8H)

    mask = mask_ref[...]                                                    # (T, B, 1)
    whh_f = whh_f_ref[...]                                                  # (H, 4H)
    whh_b = whh_b_ref[...]

    def cell(gates, c):
        # fused gates laid out as [i | f | g | o], each H wide
        i_g = jax.nn.sigmoid(gates[:, 0:H])
        f_g = jax.nn.sigmoid(gates[:, H:2 * H])
        g_g = jnp.tanh(gates[:, 2 * H:3 * H])
        o_g = jax.nn.sigmoid(gates[:, 3 * H:4 * H])
        c_new = f_g * c + i_g * g_g
        h_new = o_g * jnp.tanh(c_new)
        return h_new, c_new

    zeros = jnp.zeros((B, H), jnp.float32)
    h_f, c_f = zeros, zeros
    h_b, c_b = zeros, zeros

    # Fully unrolled (T is small & static); fwd/bwd directions interleaved so their
    # MXU pushes and sigmoid/tanh (EUP) work overlap.  Masked (padded) steps leave the
    # state untouched, reproducing pack_padded_sequence semantics with zero init state.
    for t in range(T):
        tb = T - 1 - t
        gates_f = xg[t, :, :H4] + jnp.dot(h_f, whh_f, preferred_element_type=jnp.float32)
        gates_b = xg[tb, :, H4:] + jnp.dot(h_b, whh_b, preferred_element_type=jnp.float32)
        hf_new, cf_new = cell(gates_f, c_f)
        hb_new, cb_new = cell(gates_b, c_b)
        m_f = mask[t]                                                       # (B, 1)
        m_b = mask[tb]
        h_f = m_f * hf_new + (1.0 - m_f) * h_f
        c_f = m_f * cf_new + (1.0 - m_f) * c_f
        h_b = m_b * hb_new + (1.0 - m_b) * h_b
        c_b = m_b * cb_new + (1.0 - m_b) * c_b

    # out = cat([bwd_out_at_t0, fwd_out_at_last_valid]) -> Linear -> ReLU -> Linear
    # (concat avoided by splitting linear1 into its backward / forward halves)
    hid = jnp.maximum(
        jnp.dot(h_b, w1b_ref[...], preferred_element_type=jnp.float32)
        + jnp.dot(h_f, w1f_ref[...], preferred_element_type=jnp.float32)
        + b1_ref[...], 0.0)                                                 # (B, dz)
    out_ref[...] = (jnp.dot(hid, w2_ref[...], preferred_element_type=jnp.float32)
                    + b2_ref[...])                                          # (B, 1)


# ----------------------------------------------------------------------------- #
# Wrapper
# ----------------------------------------------------------------------------- #
def discriminator_seq_forward(p, x, x_lengths):
    """x: (B, T, D) batch-first (PyTorch convention); x_lengths: (B,) int32."""
    B, T, D = x.shape
    x_tm = jnp.transpose(x, (1, 0, 2)).astype(jnp.float32)                  # (T, B, D)
    t_idx = jnp.arange(T, dtype=jnp.int32)[:, None]
    mask = (t_idx < x_lengths[None, :]).astype(jnp.float32)[:, :, None]     # (T, B, 1)

    args = (x_tm, mask,
            p["ln_w"], p["ln_b"], p["w_lin"], p["b_lin"],
            p["wih"], p["b_gates"], p["whh_f"], p["whh_b"],
            p["w1b"], p["w1f"], p["b1"], p["w2"], p["b2"])
    return pl.pallas_call(
        discriminator_seq_kernel,
        out_shape=jax.ShapeDtypeStruct((B, 1), jnp.float32),
        in_specs=[pl.BlockSpec(memory_space=VMEM) for _ in args],
        out_specs=pl.BlockSpec(memory_space=VMEM),
    )(*args)


# ----------------------------------------------------------------------------- #
# Pure-JAX reference (same math, un-fused) for a correctness self-check
# ----------------------------------------------------------------------------- #
def discriminator_seq_reference(p, x, x_lengths):
    B, T, D = x.shape
    dz = p["w_lin"].shape[1]
    H = 2 * dz
    H4 = 4 * H

    xf = x.reshape(B, T * D)
    mean = jnp.mean(xf, axis=1)[:, None, None]
    var = jnp.var(xf, axis=1)[:, None, None]
    ln_w = jnp.transpose(p["ln_w"], (1, 0, 2))                              # (1, T, D)
    ln_b = jnp.transpose(p["ln_b"], (1, 0, 2))
    xn = (x - mean) * jax.lax.rsqrt(var + 1e-5) * ln_w + ln_b               # (B, T, D)

    emb = jax.nn.relu(xn @ p["w_lin"] + p["b_lin"])                         # (B, T, dz)
    xg = emb @ p["wih"] + p["b_gates"]                                      # (B, T, 8H)
    mask = (jnp.arange(T)[None, :] < x_lengths[:, None]).astype(jnp.float32)[:, :, None]

    def cell(gates, c):
        i = jax.nn.sigmoid(gates[:, 0:H])
        f = jax.nn.sigmoid(gates[:, H:2 * H])
        g = jnp.tanh(gates[:, 2 * H:3 * H])
        o = jax.nn.sigmoid(gates[:, 3 * H:4 * H])
        c_new = f * c + i * g
        return o * jnp.tanh(c_new), c_new

    zeros = jnp.zeros((B, H), jnp.float32)
    h_f, c_f = zeros, zeros
    for t in range(T):
        g = xg[:, t, :H4] + h_f @ p["whh_f"]
        hn, cn = cell(g, c_f)
        m = mask[:, t]
        h_f = m * hn + (1.0 - m) * h_f
        c_f = m * cn + (1.0 - m) * c_f
    h_b, c_b = zeros, zeros
    for t in range(T - 1, -1, -1):
        g = xg[:, t, H4:] + h_b @ p["whh_b"]
        hn, cn = cell(g, c_b)
        m = mask[:, t]
        h_b = m * hn + (1.0 - m) * h_b
        c_b = m * cn + (1.0 - m) * c_b

    hid = jax.nn.relu(h_b @ p["w1b"] + h_f @ p["w1f"] + p["b1"])
    return hid @ p["w2"] + p["b2"]


# ----------------------------------------------------------------------------- #
# Deterministic synthetic parameters (shapes follow the nn.Module __init__)
# ----------------------------------------------------------------------------- #
def init_params(key, T, dim, dz):
    H = 2 * dz              # LSTM hidden size
    keys = iter(jax.random.split(key, 32))

    def w(shape, scale=0.1):
        return jax.random.normal(next(keys), shape, jnp.float32) * scale

    p = {}
    p["ln_w"] = 1.0 + w((T, 1, dim))          # LayerNorm([T, dim]) weight / bias
    p["ln_b"] = w((T, 1, dim))
    p["w_lin"] = w((dim, dz))                 # Linear(dim -> dim_z)
    p["b_lin"] = w((1, dz))
    # bidirectional LSTM: fused gate weights, gate order i,f,g,o; [fwd(4H) | bwd(4H)]
    p["wih"] = w((dz, 8 * H))
    p["b_gates"] = w((1, 8 * H))              # b_ih + b_hh, both directions
    p["whh_f"] = w((H, 4 * H))
    p["whh_b"] = w((H, 4 * H))
    # linear1: Linear(4*dz -> dz) split into [bwd-half | fwd-half] of its input
    p["w1b"] = w((H, dz))
    p["w1f"] = w((H, dz))
    p["b1"] = w((1, dz))
    p["w2"] = w((dz, 1))                      # linear2: Linear(dz -> 1)
    p["b2"] = w((1, 1))
    return p


if __name__ == "__main__":
    B, T, DIM, DZ = 2, 8, 16, 32              # batch, input_len, dim, dim_z
    key = jax.random.PRNGKey(0)
    k_param, k_x = jax.random.split(key, 2)

    params = init_params(k_param, T, DIM, DZ)
    x = jax.random.normal(k_x, (B, T, DIM), jnp.float32)
    x_lengths = jnp.array([T, T - 3], jnp.int32)

    out = discriminator_seq_forward(params, x, x_lengths)
    out = jax.block_until_ready(out)
    assert out.shape == (B, 1)

    ref = discriminator_seq_reference(params, x, x_lengths)
    err = float(jnp.max(jnp.abs(out - ref)))
    assert err < 1e-3, f"mismatch vs reference: {err}"

    print("KERNEL_OK")
</pallas_src>

<mosaic_0001>
module attributes {stable_mosaic.version = 11 : i64} {
  func.func @discriminator_seq_kernel(%arg0: memref<8x2x16xf32, #tpu.memory_space<vmem>>, %arg1: memref<8x2x1xf32, #tpu.memory_space<vmem>>, %arg2: memref<8x1x16xf32, #tpu.memory_space<vmem>>, %arg3: memref<8x1x16xf32, #tpu.memory_space<vmem>>, %arg4: memref<16x32xf32, #tpu.memory_space<vmem>>, %arg5: memref<1x32xf32, #tpu.memory_space<vmem>>, %arg6: memref<32x512xf32, #tpu.memory_space<vmem>>, %arg7: memref<1x512xf32, #tpu.memory_space<vmem>>, %arg8: memref<64x256xf32, #tpu.memory_space<vmem>>, %arg9: memref<64x256xf32, #tpu.memory_space<vmem>>, %arg10: memref<64x32xf32, #tpu.memory_space<vmem>>, %arg11: memref<64x32xf32, #tpu.memory_space<vmem>>, %arg12: memref<1x32xf32, #tpu.memory_space<vmem>>, %arg13: memref<32x1xf32, #tpu.memory_space<vmem>>, %arg14: memref<1x1xf32, #tpu.memory_space<vmem>>, %arg15: memref<2x1xf32, #tpu.memory_space<vmem>>) attributes {dimension_semantics = [], scalar_prefetch = 0 : i64, scratch_operands = 0 : i64, tpu.core_type = #tpu.core_type<tc>} {
    %c0 = arith.constant 0 : index
    %c0_0 = arith.constant 0 : index
    %c0_1 = arith.constant 0 : index
    %0 = vector.load %arg0[%c0, %c0_0, %c0_1] : memref<8x2x16xf32, #tpu.memory_space<vmem>>, vector<8x2x16xf32>
    %cst = arith.constant dense<0.000000e+00> : vector<8x2xf32>
    %1 = vector.multi_reduction <add>, %0, %cst [2] : vector<8x2x16xf32> to vector<8x2xf32>
    %2 = vector.shape_cast %1 : vector<8x2xf32> to vector<8x2x1xf32>
    %cst_2 = arith.constant dense<0.000000e+00> : vector<2x1xf32>
    %3 = vector.multi_reduction <add>, %2, %cst_2 [0] : vector<8x2x1xf32> to vector<2x1xf32>
    %4 = vector.shape_cast %3 : vector<2x1xf32> to vector<1x2x1xf32>
    %cst_3 = arith.constant 7.812500e-03 : f32
    %5 = vector.broadcast %cst_3 : f32 to vector<1x2x1xf32>
    %6 = arith.mulf %4, %5 : vector<1x2x1xf32>
    %7 = vector.broadcast %6 : vector<1x2x1xf32> to vector<8x2x16xf32>
    %8 = arith.subf %0, %7 : vector<8x2x16xf32>
    %9 = arith.mulf %8, %8 : vector<8x2x16xf32>
    %cst_4 = arith.constant dense<0.000000e+00> : vector<8x2xf32>
    %10 = vector.multi_reduction <add>, %9, %cst_4 [2] : vector<8x2x16xf32> to vector<8x2xf32>
    %11 = vector.shape_cast %10 : vector<8x2xf32> to vector<8x2x1xf32>
    %cst_5 = arith.constant dense<0.000000e+00> : vector<2x1xf32>
    %12 = vector.multi_reduction <add>, %11, %cst_5 [0] : vector<8x2x1xf32> to vector<2x1xf32>
    %13 = vector.shape_cast %12 : vector<2x1xf32> to vector<1x2x1xf32>
    %cst_6 = arith.constant 7.812500e-03 : f32
    %14 = vector.broadcast %cst_6 : f32 to vector<1x2x1xf32>
    %15 = arith.mulf %13, %14 : vector<1x2x1xf32>
    %cst_7 = arith.constant 9.99999974E-6 : f32
    %16 = vector.broadcast %cst_7 : f32 to vector<1x2x1xf32>
    %17 = arith.addf %15, %16 : vector<1x2x1xf32>
    %18 = math.rsqrt %17 : vector<1x2x1xf32>
    %19 = vector.broadcast %18 : vector<1x2x1xf32> to vector<8x2x16xf32>
    %20 = arith.mulf %8, %19 : vector<8x2x16xf32>
    %c0_8 = arith.constant 0 : index
    %c0_9 = arith.constant 0 : index
    %c0_10 = arith.constant 0 : index
    %21 = vector.load %arg2[%c0_8, %c0_9, %c0_10] : memref<8x1x16xf32, #tpu.memory_space<vmem>>, vector<8x1x16xf32>
    %22 = vector.broadcast %21 : vector<8x1x16xf32> to vector<8x2x16xf32>
    %23 = arith.mulf %20, %22 : vector<8x2x16xf32>
    %c0_11 = arith.constant 0 : index
    %c0_12 = arith.constant 0 : index
    %c0_13 = arith.constant 0 : index
    %24 = vector.load %arg3[%c0_11, %c0_12, %c0_13] : memref<8x1x16xf32, #tpu.memory_space<vmem>>, vector<8x1x16xf32>
    %25 = vector.broadcast %24 : vector<8x1x16xf32> to vector<8x2x16xf32>
    %26 = arith.addf %23, %25 : vector<8x2x16xf32>
    %27 = vector.shape_cast %26 : vector<8x2x16xf32> to vector<16x16xf32>
    %c0_14 = arith.constant 0 : index
    %c0_15 = arith.constant 0 : index
    %28 = vector.load %arg4[%c0_14, %c0_15] : memref<16x32xf32, #tpu.memory_space<vmem>>, vector<16x32xf32>
    %cst_16 = arith.constant dense<0.000000e+00> : vector<16x32xf32>
    %29 = tpu.matmul %27, %28, %cst_16 {dimension_numbers = #tpu.dot_dimension_numbers<[1], [0], [0], [1], [0, 0, 1, 1], [], []>} : vector<16x16xf32>, vector<16x32xf32>, vector<16x32xf32> -> vector<16x32xf32>
    %c0_17 = arith.constant 0 : index
    %c0_18 = arith.constant 0 : index
    %30 = vector.load %arg5[%c0_17, %c0_18] : memref<1x32xf32, #tpu.memory_space<vmem>>, vector<1x32xf32>
    %31 = vector.broadcast %30 : vector<1x32xf32> to vector<16x32xf32>
    %32 = arith.addf %29, %31 : vector<16x32xf32>
    %cst_19 = arith.constant 0.000000e+00 : f32
    %33 = vector.broadcast %cst_19 : f32 to vector<16x32xf32>
    %34 = arith.maximumf %32, %33 : vector<16x32xf32>
    %c0_20 = arith.constant 0 : index
    %c0_21 = arith.constant 0 : index
    %35 = vector.load %arg6[%c0_20, %c0_21] : memref<32x512xf32, #tpu.memory_space<vmem>>, vector<32x512xf32>
    %cst_22 = arith.constant dense<0.000000e+00> : vector<16x512xf32>
    %36 = tpu.matmul %34, %35, %cst_22 {dimension_numbers = #tpu.dot_dimension_numbers<[1], [0], [0], [1], [0, 0, 1, 1], [], []>} : vector<16x32xf32>, vector<32x512xf32>, vector<16x512xf32> -> vector<16x512xf32>
    %c0_23 = arith.constant 0 : index
    %c0_24 = arith.constant 0 : index
    %37 = vector.load %arg7[%c0_23, %c0_24] : memref<1x512xf32, #tpu.memory_space<vmem>>, vector<1x512xf32>
    %38 = vector.broadcast %37 : vector<1x512xf32> to vector<16x512xf32>
    %39 = arith.addf %36, %38 : vector<16x512xf32>
    %40 = vector.shape_cast %39 : vector<16x512xf32> to vector<8x2x512xf32>
    %c0_25 = arith.constant 0 : index
    %c0_26 = arith.constant 0 : index
    %c0_27 = arith.constant 0 : index
    %41 = vector.load %arg1[%c0_25, %c0_26, %c0_27] : memref<8x2x1xf32, #tpu.memory_space<vmem>>, vector<8x2x1xf32>
    %c0_28 = arith.constant 0 : index
    %c0_29 = arith.constant 0 : index
    %42 = vector.load %arg8[%c0_28, %c0_29] : memref<64x256xf32, #tpu.memory_space<vmem>>, vector<64x256xf32>
    %c0_30 = arith.constant 0 : index
    %c0_31 = arith.constant 0 : index
    %43 = vector.load %arg9[%c0_30, %c0_31] : memref<64x256xf32, #tpu.memory_space<vmem>>, vector<64x256xf32>
    %cst_32 = arith.constant 0.000000e+00 : f32
    %44 = vector.broadcast %cst_32 : f32 to vector<2x64xf32>
    %45 = vector.extract_strided_slice %40 {offsets = [0, 0, 0], sizes = [1, 2, 256], strides = [1, 1, 1]} : vector<8x2x512xf32> to vector<1x2x256xf32>
    %46 = vector.shape_cast %45 : vector<1x2x256xf32> to vector<2x256xf32>
    %cst_33 = arith.constant dense<0.000000e+00> : vector<2x256xf32>
    %47 = tpu.matmul %44, %42, %cst_33 {dimension_numbers = #tpu.dot_dimension_numbers<[1], [0], [0], [1], [0, 0, 1, 1], [], []>} : vector<2x64xf32>, vector<64x256xf32>, vector<2x256xf32> -> vector<2x256xf32>
    %48 = arith.addf %46, %47 : vector<2x256xf32>
    %49 = vector.extract_strided_slice %40 {offsets = [7, 0, 256], sizes = [1, 2, 256], strides = [1, 1, 1]} : vector<8x2x512xf32> to vector<1x2x256xf32>
    %50 = vector.shape_cast %49 : vector<1x2x256xf32> to vector<2x256xf32>
    %cst_34 = arith.constant dense<0.000000e+00> : vector<2x256xf32>
    %51 = tpu.matmul %44, %43, %cst_34 {dimension_numbers = #tpu.dot_dimension_numbers<[1], [0], [0], [1], [0, 0, 1, 1], [], []>} : vector<2x64xf32>, vector<64x256xf32>, vector<2x256xf32> -> vector<2x256xf32>
    %52 = arith.addf %50, %51 : vector<2x256xf32>
    %53 = vector.extract_strided_slice %48 {offsets = [0, 0], sizes = [2, 64], strides = [1, 1]} : vector<2x256xf32> to vector<2x64xf32>
    %54 = arith.negf %53 : vector<2x64xf32>
    %55 = math.exp %54 : vector<2x64xf32>
    %cst_35 = arith.constant 1.000000e+00 : f32
    %56 = vector.broadcast %cst_35 : f32 to vector<2x64xf32>
    %57 = arith.addf %56, %55 : vector<2x64xf32>
    %58 = arith.divf %56, %57 : vector<2x64xf32>
    %59 = vector.extract_strided_slice %48 {offsets = [0, 64], sizes = [2, 64], strides = [1, 1]} : vector<2x256xf32> to vector<2x64xf32>
    %60 = arith.negf %59 : vector<2x64xf32>
    %61 = math.exp %60 : vector<2x64xf32>
    %cst_36 = arith.constant 1.000000e+00 : f32
    %62 = vector.broadcast %cst_36 : f32 to vector<2x64xf32>
    %63 = arith.addf %62, %61 : vector<2x64xf32>
    %64 = arith.divf %62, %63 : vector<2x64xf32>
    %65 = vector.extract_strided_slice %48 {offsets = [0, 128], sizes = [2, 64], strides = [1, 1]} : vector<2x256xf32> to vector<2x64xf32>
    %66 = math.tanh %65 : vector<2x64xf32>
    %67 = vector.extract_strided_slice %48 {offsets = [0, 192], sizes = [2, 64], strides = [1, 1]} : vector<2x256xf32> to vector<2x64xf32>
    %68 = arith.negf %67 : vector<2x64xf32>
    %69 = math.exp %68 : vector<2x64xf32>
    %cst_37 = arith.constant 1.000000e+00 : f32
    %70 = vector.broadcast %cst_37 : f32 to vector<2x64xf32>
    %71 = arith.addf %70, %69 : vector<2x64xf32>
    %72 = arith.divf %70, %71 : vector<2x64xf32>
    %73 = arith.mulf %64, %44 : vector<2x64xf32>
    %74 = arith.mulf %58, %66 : vector<2x64xf32>
    %75 = arith.addf %73, %74 : vector<2x64xf32>
    %76 = math.tanh %75 : vector<2x64xf32>
    %77 = arith.mulf %72, %76 : vector<2x64xf32>
    %78 = vector.extract_strided_slice %52 {offsets = [0, 0], sizes = [2, 64], strides = [1, 1]} : vector<2x256xf32> to vector<2x64xf32>
    %79 = arith.negf %78 : vector<2x64xf32>
    %80 = math.exp %79 : vector<2x64xf32>
    %cst_38 = arith.constant 1.000000e+00 : f32
    %81 = vector.broadcast %cst_38 : f32 to vector<2x64xf32>
    %82 = arith.addf %81, %80 : vector<2x64xf32>
    %83 = arith.divf %81, %82 : vector<2x64xf32>
    %84 = vector.extract_strided_slice %52 {offsets = [0, 64], sizes = [2, 64], strides = [1, 1]} : vector<2x256xf32> to vector<2x64xf32>
    %85 = arith.negf %84 : vector<2x64xf32>
    %86 = math.exp %85 : vector<2x64xf32>
    %cst_39 = arith.constant 1.000000e+00 : f32
    %87 = vector.broadcast %cst_39 : f32 to vector<2x64xf32>
    %88 = arith.addf %87, %86 : vector<2x64xf32>
    %89 = arith.divf %87, %88 : vector<2x64xf32>
    %90 = vector.extract_strided_slice %52 {offsets = [0, 128], sizes = [2, 64], strides = [1, 1]} : vector<2x256xf32> to vector<2x64xf32>
    %91 = math.tanh %90 : vector<2x64xf32>
    %92 = vector.extract_strided_slice %52 {offsets = [0, 192], sizes = [2, 64], strides = [1, 1]} : vector<2x256xf32> to vector<2x64xf32>
    %93 = arith.negf %92 : vector<2x64xf32>
    %94 = math.exp %93 : vector<2x64xf32>
    %cst_40 = arith.constant 1.000000e+00 : f32
    %95 = vector.broadcast %cst_40 : f32 to vector<2x64xf32>
    %96 = arith.addf %95, %94 : vector<2x64xf32>
    %97 = arith.divf %95, %96 : vector<2x64xf32>
    %98 = arith.mulf %89, %44 : vector<2x64xf32>
    %99 = arith.mulf %83, %91 : vector<2x64xf32>
    %100 = arith.addf %98, %99 : vector<2x64xf32>
    %101 = math.tanh %100 : vector<2x64xf32>
    %102 = arith.mulf %97, %101 : vector<2x64xf32>
    %103 = vector.extract_strided_slice %41 {offsets = [0, 0, 0], sizes = [1, 2, 1], strides = [1, 1, 1]} : vector<8x2x1xf32> to vector<1x2x1xf32>
    %104 = vector.shape_cast %103 : vector<1x2x1xf32> to vector<2x1xf32>
    %105 = vector.extract_strided_slice %41 {offsets = [7, 0, 0], sizes = [1, 2, 1], strides = [1, 1, 1]} : vector<8x2x1xf32> to vector<1x2x1xf32>
    %106 = vector.shape_cast %105 : vector<1x2x1xf32> to vector<2x1xf32>
    %107 = vector.broadcast %104 : vector<2x1xf32> to vector<2x64xf32>
    %108 = arith.mulf %107, %77 : vector<2x64xf32>
    %cst_41 = arith.constant 1.000000e+00 : f32
    %109 = vector.broadcast %cst_41 : f32 to vector<2x1xf32>
    %110 = arith.subf %109, %104 : vector<2x1xf32>
    %111 = vector.broadcast %110 : vector<2x1xf32> to vector<2x64xf32>
    %112 = arith.mulf %111, %44 : vector<2x64xf32>
    %113 = arith.addf %108, %112 : vector<2x64xf32>
    %114 = vector.broadcast %104 : vector<2x1xf32> to vector<2x64xf32>
    %115 = arith.mulf %114, %75 : vector<2x64xf32>
    %cst_42 = arith.constant 1.000000e+00 : f32
    %116 = vector.broadcast %cst_42 : f32 to vector<2x1xf32>
    %117 = arith.subf %116, %104 : vector<2x1xf32>
    %118 = vector.broadcast %117 : vector<2x1xf32> to vector<2x64xf32>
    %119 = arith.mulf %118, %44 : vector<2x64xf32>
    %120 = arith.addf %115, %119 : vector<2x64xf32>
    %121 = vector.broadcast %106 : vector<2x1xf32> to vector<2x64xf32>
    %122 = arith.mulf %121, %102 : vector<2x64xf32>
    %cst_43 = arith.constant 1.000000e+00 : f32
    %123 = vector.broadcast %cst_43 : f32 to vector<2x1xf32>
    %124 = arith.subf %123, %106 : vector<2x1xf32>
    %125 = vector.broadcast %124 : vector<2x1xf32> to vector<2x64xf32>
    %126 = arith.mulf %125, %44 : vector<2x64xf32>
    %127 = arith.addf %122, %126 : vector<2x64xf32>
    %128 = vector.broadcast %106 : vector<2x1xf32> to vector<2x64xf32>
    %129 = arith.mulf %128, %100 : vector<2x64xf32>
    %cst_44 = arith.constant 1.000000e+00 : f32
    %130 = vector.broadcast %cst_44 : f32 to vector<2x1xf32>
    %131 = arith.subf %130, %106 : vector<2x1xf32>
    %132 = vector.broadcast %131 : vector<2x1xf32> to vector<2x64xf32>
    %133 = arith.mulf %132, %44 : vector<2x64xf32>
    %134 = arith.addf %129, %133 : vector<2x64xf32>
    %135 = vector.extract_strided_slice %40 {offsets = [1, 0, 0], sizes = [1, 2, 256], strides = [1, 1, 1]} : vector<8x2x512xf32> to vector<1x2x256xf32>
    %136 = vector.shape_cast %135 : vector<1x2x256xf32> to vector<2x256xf32>
    %cst_45 = arith.constant dense<0.000000e+00> : vector<2x256xf32>
    %137 = tpu.matmul %113, %42, %cst_45 {dimension_numbers = #tpu.dot_dimension_numbers<[1], [0], [0], [1], [0, 0, 1, 1], [], []>} : vector<2x64xf32>, vector<64x256xf32>, vector<2x256xf32> -> vector<2x256xf32>
    %138 = arith.addf %136, %137 : vector<2x256xf32>
    %139 = vector.extract_strided_slice %40 {offsets = [6, 0, 256], sizes = [1, 2, 256], strides = [1, 1, 1]} : vector<8x2x512xf32> to vector<1x2x256xf32>
    %140 = vector.shape_cast %139 : vector<1x2x256xf32> to vector<2x256xf32>
    %cst_46 = arith.constant dense<0.000000e+00> : vector<2x256xf32>
    %141 = tpu.matmul %127, %43, %cst_46 {dimension_numbers = #tpu.dot_dimension_numbers<[1], [0], [0], [1], [0, 0, 1, 1], [], []>} : vector<2x64xf32>, vector<64x256xf32>, vector<2x256xf32> -> vector<2x256xf32>
    %142 = arith.addf %140, %141 : vector<2x256xf32>
    %143 = vector.extract_strided_slice %138 {offsets = [0, 0], sizes = [2, 64], strides = [1, 1]} : vector<2x256xf32> to vector<2x64xf32>
    %144 = arith.negf %143 : vector<2x64xf32>
    %145 = math.exp %144 : vector<2x64xf32>
    %cst_47 = arith.constant 1.000000e+00 : f32
    %146 = vector.broadcast %cst_47 : f32 to vector<2x64xf32>
    %147 = arith.addf %146, %145 : vector<2x64xf32>
    %148 = arith.divf %146, %147 : vector<2x64xf32>
    %149 = vector.extract_strided_slice %138 {offsets = [0, 64], sizes = [2, 64], strides = [1, 1]} : vector<2x256xf32> to vector<2x64xf32>
    %150 = arith.negf %149 : vector<2x64xf32>
    %151 = math.exp %150 : vector<2x64xf32>
    %cst_48 = arith.constant 1.000000e+00 : f32
    %152 = vector.broadcast %cst_48 : f32 to vector<2x64xf32>
    %153 = arith.addf %152, %151 : vector<2x64xf32>
    %154 = arith.divf %152, %153 : vector<2x64xf32>
    %155 = vector.extract_strided_slice %138 {offsets = [0, 128], sizes = [2, 64], strides = [1, 1]} : vector<2x256xf32> to vector<2x64xf32>
    %156 = math.tanh %155 : vector<2x64xf32>
    %157 = vector.extract_strided_slice %138 {offsets = [0, 192], sizes = [2, 64], strides = [1, 1]} : vector<2x256xf32> to vector<2x64xf32>
    %158 = arith.negf %157 : vector<2x64xf32>
    %159 = math.exp %158 : vector<2x64xf32>
    %cst_49 = arith.constant 1.000000e+00 : f32
    %160 = vector.broadcast %cst_49 : f32 to vector<2x64xf32>
    %161 = arith.addf %160, %159 : vector<2x64xf32>
    %162 = arith.divf %160, %161 : vector<2x64xf32>
    %163 = arith.mulf %154, %120 : vector<2x64xf32>
    %164 = arith.mulf %148, %156 : vector<2x64xf32>
    %165 = arith.addf %163, %164 : vector<2x64xf32>
    %166 = math.tanh %165 : vector<2x64xf32>
    %167 = arith.mulf %162, %166 : vector<2x64xf32>
    %168 = vector.extract_strided_slice %142 {offsets = [0, 0], sizes = [2, 64], strides = [1, 1]} : vector<2x256xf32> to vector<2x64xf32>
    %169 = arith.negf %168 : vector<2x64xf32>
    %170 = math.exp %169 : vector<2x64xf32>
    %cst_50 = arith.constant 1.000000e+00 : f32
    %171 = vector.broadcast %cst_50 : f32 to vector<2x64xf32>
    %172 = arith.addf %171, %170 : vector<2x64xf32>
    %173 = arith.divf %171, %172 : vector<2x64xf32>
    %174 = vector.extract_strided_slice %142 {offsets = [0, 64], sizes = [2, 64], strides = [1, 1]} : vector<2x256xf32> to vector<2x64xf32>
    %175 = arith.negf %174 : vector<2x64xf32>
    %176 = math.exp %175 : vector<2x64xf32>
    %cst_51 = arith.constant 1.000000e+00 : f32
    %177 = vector.broadcast %cst_51 : f32 to vector<2x64xf32>
    %178 = arith.addf %177, %176 : vector<2x64xf32>
    %179 = arith.divf %177, %178 : vector<2x64xf32>
    %180 = vector.extract_strided_slice %142 {offsets = [0, 128], sizes = [2, 64], strides = [1, 1]} : vector<2x256xf32> to vector<2x64xf32>
    %181 = math.tanh %180 : vector<2x64xf32>
    %182 = vector.extract_strided_slice %142 {offsets = [0, 192], sizes = [2, 64], strides = [1, 1]} : vector<2x256xf32> to vector<2x64xf32>
    %183 = arith.negf %182 : vector<2x64xf32>
    %184 = math.exp %183 : vector<2x64xf32>
    %cst_52 = arith.constant 1.000000e+00 : f32
    %185 = vector.broadcast %cst_52 : f32 to vector<2x64xf32>
    %186 = arith.addf %185, %184 : vector<2x64xf32>
    %187 = arith.divf %185, %186 : vector<2x64xf32>
    %188 = arith.mulf %179, %134 : vector<2x64xf32>
    %189 = arith.mulf %173, %181 : vector<2x64xf32>
    %190 = arith.addf %188, %189 : vector<2x64xf32>
    %191 = math.tanh %190 : vector<2x64xf32>
    %192 = arith.mulf %187, %191 : vector<2x64xf32>
    %193 = vector.extract_strided_slice %41 {offsets = [1, 0, 0], sizes = [1, 2, 1], strides = [1, 1, 1]} : vector<8x2x1xf32> to vector<1x2x1xf32>
    %194 = vector.shape_cast %193 : vector<1x2x1xf32> to vector<2x1xf32>
    %195 = vector.extract_strided_slice %41 {offsets = [6, 0, 0], sizes = [1, 2, 1], strides = [1, 1, 1]} : vector<8x2x1xf32> to vector<1x2x1xf32>
    %196 = vector.shape_cast %195 : vector<1x2x1xf32> to vector<2x1xf32>
    %197 = vector.broadcast %194 : vector<2x1xf32> to vector<2x64xf32>
    %198 = arith.mulf %197, %167 : vector<2x64xf32>
    %cst_53 = arith.constant 1.000000e+00 : f32
    %199 = vector.broadcast %cst_53 : f32 to vector<2x1xf32>
    %200 = arith.subf %199, %194 : vector<2x1xf32>
    %201 = vector.broadcast %200 : vector<2x1xf32> to vector<2x64xf32>
    %202 = arith.mulf %201, %113 : vector<2x64xf32>
    %203 = arith.addf %198, %202 : vector<2x64xf32>
    %204 = vector.broadcast %194 : vector<2x1xf32> to vector<2x64xf32>
    %205 = arith.mulf %204, %165 : vector<2x64xf32>
    %cst_54 = arith.constant 1.000000e+00 : f32
    %206 = vector.broadcast %cst_54 : f32 to vector<2x1xf32>
    %207 = arith.subf %206, %194 : vector<2x1xf32>
    %208 = vector.broadcast %207 : vector<2x1xf32> to vector<2x64xf32>
    %209 = arith.mulf %208, %120 : vector<2x64xf32>
    %210 = arith.addf %205, %209 : vector<2x64xf32>
    %211 = vector.broadcast %196 : vector<2x1xf32> to vector<2x64xf32>
    %212 = arith.mulf %211, %192 : vector<2x64xf32>
    %cst_55 = arith.constant 1.000000e+00 : f32
    %213 = vector.broadcast %cst_55 : f32 to vector<2x1xf32>
    %214 = arith.subf %213, %196 : vector<2x1xf32>
    %215 = vector.broadcast %214 : vector<2x1xf32> to vector<2x64xf32>
    %216 = arith.mulf %215, %127 : vector<2x64xf32>
    %217 = arith.addf %212, %216 : vector<2x64xf32>
    %218 = vector.broadcast %196 : vector<2x1xf32> to vector<2x64xf32>
    %219 = arith.mulf %218, %190 : vector<2x64xf32>
    %cst_56 = arith.constant 1.000000e+00 : f32
    %220 = vector.broadcast %cst_56 : f32 to vector<2x1xf32>
    %221 = arith.subf %220, %196 : vector<2x1xf32>
    %222 = vector.broadcast %221 : vector<2x1xf32> to vector<2x64xf32>
    %223 = arith.mulf %222, %134 : vector<2x64xf32>
    %224 = arith.addf %219, %223 : vector<2x64xf32>
    %225 = vector.extract_strided_slice %40 {offsets = [2, 0, 0], sizes = [1, 2, 256], strides = [1, 1, 1]} : vector<8x2x512xf32> to vector<1x2x256xf32>
    %226 = vector.shape_cast %225 : vector<1x2x256xf32> to vector<2x256xf32>
    %cst_57 = arith.constant dense<0.000000e+00> : vector<2x256xf32>
    %227 = tpu.matmul %203, %42, %cst_57 {dimension_numbers = #tpu.dot_dimension_numbers<[1], [0], [0], [1], [0, 0, 1, 1], [], []>} : vector<2x64xf32>, vector<64x256xf32>, vector<2x256xf32> -> vector<2x256xf32>
    %228 = arith.addf %226, %227 : vector<2x256xf32>
    %229 = vector.extract_strided_slice %40 {offsets = [5, 0, 256], sizes = [1, 2, 256], strides = [1, 1, 1]} : vector<8x2x512xf32> to vector<1x2x256xf32>
    %230 = vector.shape_cast %229 : vector<1x2x256xf32> to vector<2x256xf32>
    %cst_58 = arith.constant dense<0.000000e+00> : vector<2x256xf32>
    %231 = tpu.matmul %217, %43, %cst_58 {dimension_numbers = #tpu.dot_dimension_numbers<[1], [0], [0], [1], [0, 0, 1, 1], [], []>} : vector<2x64xf32>, vector<64x256xf32>, vector<2x256xf32> -> vector<2x256xf32>
    %232 = arith.addf %230, %231 : vector<2x256xf32>
    %233 = vector.extract_strided_slice %228 {offsets = [0, 0], sizes = [2, 64], strides = [1, 1]} : vector<2x256xf32> to vector<2x64xf32>
    %234 = arith.negf %233 : vector<2x64xf32>
    %235 = math.exp %234 : vector<2x64xf32>
    %cst_59 = arith.constant 1.000000e+00 : f32
    %236 = vector.broadcast %cst_59 : f32 to vector<2x64xf32>
    %237 = arith.addf %236, %235 : vector<2x64xf32>
    %238 = arith.divf %236, %237 : vector<2x64xf32>
    %239 = vector.extract_strided_slice %228 {offsets = [0, 64], sizes = [2, 64], strides = [1, 1]} : vector<2x256xf32> to vector<2x64xf32>
    %240 = arith.negf %239 : vector<2x64xf32>
    %241 = math.exp %240 : vector<2x64xf32>
    %cst_60 = arith.constant 1.000000e+00 : f32
    %242 = vector.broadcast %cst_60 : f32 to vector<2x64xf32>
    %243 = arith.addf %242, %241 : vector<2x64xf32>
    %244 = arith.divf %242, %243 : vector<2x64xf32>
    %245 = vector.extract_strided_slice %228 {offsets = [0, 128], sizes = [2, 64], strides = [1, 1]} : vector<2x256xf32> to vector<2x64xf32>
    %246 = math.tanh %245 : vector<2x64xf32>
    %247 = vector.extract_strided_slice %228 {offsets = [0, 192], sizes = [2, 64], strides = [1, 1]} : vector<2x256xf32> to vector<2x64xf32>
    %248 = arith.negf %247 : vector<2x64xf32>
    %249 = math.exp %248 : vector<2x64xf32>
    %cst_61 = arith.constant 1.000000e+00 : f32
    %250 = vector.broadcast %cst_61 : f32 to vector<2x64xf32>
    %251 = arith.addf %250, %249 : vector<2x64xf32>
    %252 = arith.divf %250, %251 : vector<2x64xf32>
    %253 = arith.mulf %244, %210 : vector<2x64xf32>
    %254 = arith.mulf %238, %246 : vector<2x64xf32>
    %255 = arith.addf %253, %254 : vector<2x64xf32>
    %256 = math.tanh %255 : vector<2x64xf32>
    %257 = arith.mulf %252, %256 : vector<2x64xf32>
    %258 = vector.extract_strided_slice %232 {offsets = [0, 0], sizes = [2, 64], strides = [1, 1]} : vector<2x256xf32> to vector<2x64xf32>
    %259 = arith.negf %258 : vector<2x64xf32>
    %260 = math.exp %259 : vector<2x64xf32>
    %cst_62 = arith.constant 1.000000e+00 : f32
    %261 = vector.broadcast %cst_62 : f32 to vector<2x64xf32>
    %262 = arith.addf %261, %260 : vector<2x64xf32>
    %263 = arith.divf %261, %262 : vector<2x64xf32>
    %264 = vector.extract_strided_slice %232 {offsets = [0, 64], sizes = [2, 64], strides = [1, 1]} : vector<2x256xf32> to vector<2x64xf32>
    %265 = arith.negf %264 : vector<2x64xf32>
    %266 = math.exp %265 : vector<2x64xf32>
    %cst_63 = arith.constant 1.000000e+00 : f32
    %267 = vector.broadcast %cst_63 : f32 to vector<2x64xf32>
    %268 = arith.addf %267, %266 : vector<2x64xf32>
    %269 = arith.divf %267, %268 : vector<2x64xf32>
    %270 = vector.extract_strided_slice %232 {offsets = [0, 128], sizes = [2, 64], strides = [1, 1]} : vector<2x256xf32> to vector<2x64xf32>
    %271 = math.tanh %270 : vector<2x64xf32>
    %272 = vector.extract_strided_slice %232 {offsets = [0, 192], sizes = [2, 64], strides = [1, 1]} : vector<2x256xf32> to vector<2x64xf32>
    %273 = arith.negf %272 : vector<2x64xf32>
    %274 = math.exp %273 : vector<2x64xf32>
    %cst_64 = arith.constant 1.000000e+00 : f32
    %275 = vector.broadcast %cst_64 : f32 to vector<2x64xf32>
    %276 = arith.addf %275, %274 : vector<2x64xf32>
    %277 = arith.divf %275, %276 : vector<2x64xf32>
    %278 = arith.mulf %269, %224 : vector<2x64xf32>
    %279 = arith.mulf %263, %271 : vector<2x64xf32>
    %280 = arith.addf %278, %279 : vector<2x64xf32>
    %281 = math.tanh %280 : vector<2x64xf32>
    %282 = arith.mulf %277, %281 : vector<2x64xf32>
    %283 = vector.extract_strided_slice %41 {offsets = [2, 0, 0], sizes = [1, 2, 1], strides = [1, 1, 1]} : vector<8x2x1xf32> to vector<1x2x1xf32>
    %284 = vector.shape_cast %283 : vector<1x2x1xf32> to vector<2x1xf32>
    %285 = vector.extract_strided_slice %41 {offsets = [5, 0, 0], sizes = [1, 2, 1], strides = [1, 1, 1]} : vector<8x2x1xf32> to vector<1x2x1xf32>
    %286 = vector.shape_cast %285 : vector<1x2x1xf32> to vector<2x1xf32>
    %287 = vector.broadcast %284 : vector<2x1xf32> to vector<2x64xf32>
    %288 = arith.mulf %287, %257 : vector<2x64xf32>
    %cst_65 = arith.constant 1.000000e+00 : f32
    %289 = vector.broadcast %cst_65 : f32 to vector<2x1xf32>
    %290 = arith.subf %289, %284 : vector<2x1xf32>
    %291 = vector.broadcast %290 : vector<2x1xf32> to vector<2x64xf32>
    %292 = arith.mulf %291, %203 : vector<2x64xf32>
    %293 = arith.addf %288, %292 : vector<2x64xf32>
    %294 = vector.broadcast %284 : vector<2x1xf32> to vector<2x64xf32>
    %295 = arith.mulf %294, %255 : vector<2x64xf32>
    %cst_66 = arith.constant 1.000000e+00 : f32
    %296 = vector.broadcast %cst_66 : f32 to vector<2x1xf32>
    %297 = arith.subf %296, %284 : vector<2x1xf32>
    %298 = vector.broadcast %297 : vector<2x1xf32> to vector<2x64xf32>
    %299 = arith.mulf %298, %210 : vector<2x64xf32>
    %300 = arith.addf %295, %299 : vector<2x64xf32>
    %301 = vector.broadcast %286 : vector<2x1xf32> to vector<2x64xf32>
    %302 = arith.mulf %301, %282 : vector<2x64xf32>
    %cst_67 = arith.constant 1.000000e+00 : f32
    %303 = vector.broadcast %cst_67 : f32 to vector<2x1xf32>
    %304 = arith.subf %303, %286 : vector<2x1xf32>
    %305 = vector.broadcast %304 : vector<2x1xf32> to vector<2x64xf32>
    %306 = arith.mulf %305, %217 : vector<2x64xf32>
    %307 = arith.addf %302, %306 : vector<2x64xf32>
    %308 = vector.broadcast %286 : vector<2x1xf32> to vector<2x64xf32>
    %309 = arith.mulf %308, %280 : vector<2x64xf32>
    %cst_68 = arith.constant 1.000000e+00 : f32
    %310 = vector.broadcast %cst_68 : f32 to vector<2x1xf32>
    %311 = arith.subf %310, %286 : vector<2x1xf32>
    %312 = vector.broadcast %311 : vector<2x1xf32> to vector<2x64xf32>
    %313 = arith.mulf %312, %224 : vector<2x64xf32>
    %314 = arith.addf %309, %313 : vector<2x64xf32>
    %315 = vector.extract_strided_slice %40 {offsets = [3, 0, 0], sizes = [1, 2, 256], strides = [1, 1, 1]} : vector<8x2x512xf32> to vector<1x2x256xf32>
    %316 = vector.shape_cast %315 : vector<1x2x256xf32> to vector<2x256xf32>
    %cst_69 = arith.constant dense<0.000000e+00> : vector<2x256xf32>
    %317 = tpu.matmul %293, %42, %cst_69 {dimension_numbers = #tpu.dot_dimension_numbers<[1], [0], [0], [1], [0, 0, 1, 1], [], []>} : vector<2x64xf32>, vector<64x256xf32>, vector<2x256xf32> -> vector<2x256xf32>
    %318 = arith.addf %316, %317 : vector<2x256xf32>
    %319 = vector.extract_strided_slice %40 {offsets = [4, 0, 256], sizes = [1, 2, 256], strides = [1, 1, 1]} : vector<8x2x512xf32> to vector<1x2x256xf32>
    %320 = vector.shape_cast %319 : vector<1x2x256xf32> to vector<2x256xf32>
    %cst_70 = arith.constant dense<0.000000e+00> : vector<2x256xf32>
    %321 = tpu.matmul %307, %43, %cst_70 {dimension_numbers = #tpu.dot_dimension_numbers<[1], [0], [0], [1], [0, 0, 1, 1], [], []>} : vector<2x64xf32>, vector<64x256xf32>, vector<2x256xf32> -> vector<2x256xf32>
    %322 = arith.addf %320, %321 : vector<2x256xf32>
    %323 = vector.extract_strided_slice %318 {offsets = [0, 0], sizes = [2, 64], strides = [1, 1]} : vector<2x256xf32> to vector<2x64xf32>
    %324 = arith.negf %323 : vector<2x64xf32>
    %325 = math.exp %324 : vector<2x64xf32>
    %cst_71 = arith.constant 1.000000e+00 : f32
    %326 = vector.broadcast %cst_71 : f32 to vector<2x64xf32>
    %327 = arith.addf %326, %325 : vector<2x64xf32>
    %328 = arith.divf %326, %327 : vector<2x64xf32>
    %329 = vector.extract_strided_slice %318 {offsets = [0, 64], sizes = [2, 64], strides = [1, 1]} : vector<2x256xf32> to vector<2x64xf32>
    %330 = arith.negf %329 : vector<2x64xf32>
    %331 = math.exp %330 : vector<2x64xf32>
    %cst_72 = arith.constant 1.000000e+00 : f32
    %332 = vector.broadcast %cst_72 : f32 to vector<2x64xf32>
    %333 = arith.addf %332, %331 : vector<2x64xf32>
    %334 = arith.divf %332, %333 : vector<2x64xf32>
    %335 = vector.extract_strided_slice %318 {offsets = [0, 128], sizes = [2, 64], strides = [1, 1]} : vector<2x256xf32> to vector<2x64xf32>
    %336 = math.tanh %335 : vector<2x64xf32>
    %337 = vector.extract_strided_slice %318 {offsets = [0, 192], sizes = [2, 64], strides = [1, 1]} : vector<2x256xf32> to vector<2x64xf32>
    %338 = arith.negf %337 : vector<2x64xf32>
    %339 = math.exp %338 : vector<2x64xf32>
    %cst_73 = arith.constant 1.000000e+00 : f32
    %340 = vector.broadcast %cst_73 : f32 to vector<2x64xf32>
    %341 = arith.addf %340, %339 : vector<2x64xf32>
    %342 = arith.divf %340, %341 : vector<2x64xf32>
    %343 = arith.mulf %334, %300 : vector<2x64xf32>
    %344 = arith.mulf %328, %336 : vector<2x64xf32>
    %345 = arith.addf %343, %344 : vector<2x64xf32>
    %346 = math.tanh %345 : vector<2x64xf32>
    %347 = arith.mulf %342, %346 : vector<2x64xf32>
    %348 = vector.extract_strided_slice %322 {offsets = [0, 0], sizes = [2, 64], strides = [1, 1]} : vector<2x256xf32> to vector<2x64xf32>
    %349 = arith.negf %348 : vector<2x64xf32>
    %350 = math.exp %349 : vector<2x64xf32>
    %cst_74 = arith.constant 1.000000e+00 : f32
    %351 = vector.broadcast %cst_74 : f32 to vector<2x64xf32>
    %352 = arith.addf %351, %350 : vector<2x64xf32>
    %353 = arith.divf %351, %352 : vector<2x64xf32>
    %354 = vector.extract_strided_slice %322 {offsets = [0, 64], sizes = [2, 64], strides = [1, 1]} : vector<2x256xf32> to vector<2x64xf32>
    %355 = arith.negf %354 : vector<2x64xf32>
    %356 = math.exp %355 : vector<2x64xf32>
    %cst_75 = arith.constant 1.000000e+00 : f32
    %357 = vector.broadcast %cst_75 : f32 to vector<2x64xf32>
    %358 = arith.addf %357, %356 : vector<2x64xf32>
    %359 = arith.divf %357, %358 : vector<2x64xf32>
    %360 = vector.extract_strided_slice %322 {offsets = [0, 128], sizes = [2, 64], strides = [1, 1]} : vector<2x256xf32> to vector<2x64xf32>
    %361 = math.tanh %360 : vector<2x64xf32>
    %362 = vector.extract_strided_slice %322 {offsets = [0, 192], sizes = [2, 64], strides = [1, 1]} : vector<2x256xf32> to vector<2x64xf32>
    %363 = arith.negf %362 : vector<2x64xf32>
    %364 = math.exp %363 : vector<2x64xf32>
    %cst_76 = arith.constant 1.000000e+00 : f32
    %365 = vector.broadcast %cst_76 : f32 to vector<2x64xf32>
    %366 = arith.addf %365, %364 : vector<2x64xf32>
    %367 = arith.divf %365, %366 : vector<2x64xf32>
    %368 = arith.mulf %359, %314 : vector<2x64xf32>
    %369 = arith.mulf %353, %361 : vector<2x64xf32>
    %370 = arith.addf %368, %369 : vector<2x64xf32>
    %371 = math.tanh %370 : vector<2x64xf32>
    %372 = arith.mulf %367, %371 : vector<2x64xf32>
    %373 = vector.extract_strided_slice %41 {offsets = [3, 0, 0], sizes = [1, 2, 1], strides = [1, 1, 1]} : vector<8x2x1xf32> to vector<1x2x1xf32>
    %374 = vector.shape_cast %373 : vector<1x2x1xf32> to vector<2x1xf32>
    %375 = vector.extract_strided_slice %41 {offsets = [4, 0, 0], sizes = [1, 2, 1], strides = [1, 1, 1]} : vector<8x2x1xf32> to vector<1x2x1xf32>
    %376 = vector.shape_cast %375 : vector<1x2x1xf32> to vector<2x1xf32>
    %377 = vector.broadcast %374 : vector<2x1xf32> to vector<2x64xf32>
    %378 = arith.mulf %377, %347 : vector<2x64xf32>
    %cst_77 = arith.constant 1.000000e+00 : f32
    %379 = vector.broadcast %cst_77 : f32 to vector<2x1xf32>
    %380 = arith.subf %379, %374 : vector<2x1xf32>
    %381 = vector.broadcast %380 : vector<2x1xf32> to vector<2x64xf32>
    %382 = arith.mulf %381, %293 : vector<2x64xf32>
    %383 = arith.addf %378, %382 : vector<2x64xf32>
    %384 = vector.broadcast %374 : vector<2x1xf32> to vector<2x64xf32>
    %385 = arith.mulf %384, %345 : vector<2x64xf32>
    %cst_78 = arith.constant 1.000000e+00 : f32
    %386 = vector.broadcast %cst_78 : f32 to vector<2x1xf32>
    %387 = arith.subf %386, %374 : vector<2x1xf32>
    %388 = vector.broadcast %387 : vector<2x1xf32> to vector<2x64xf32>
    %389 = arith.mulf %388, %300 : vector<2x64xf32>
    %390 = arith.addf %385, %389 : vector<2x64xf32>
    %391 = vector.broadcast %376 : vector<2x1xf32> to vector<2x64xf32>
    %392 = arith.mulf %391, %372 : vector<2x64xf32>
    %cst_79 = arith.constant 1.000000e+00 : f32
    %393 = vector.broadcast %cst_79 : f32 to vector<2x1xf32>
    %394 = arith.subf %393, %376 : vector<2x1xf32>
    %395 = vector.broadcast %394 : vector<2x1xf32> to vector<2x64xf32>
    %396 = arith.mulf %395, %307 : vector<2x64xf32>
    %397 = arith.addf %392, %396 : vector<2x64xf32>
    %398 = vector.broadcast %376 : vector<2x1xf32> to vector<2x64xf32>
    %399 = arith.mulf %398, %370 : vector<2x64xf32>
    %cst_80 = arith.constant 1.000000e+00 : f32
    %400 = vector.broadcast %cst_80 : f32 to vector<2x1xf32>
    %401 = arith.subf %400, %376 : vector<2x1xf32>
    %402 = vector.broadcast %401 : vector<2x1xf32> to vector<2x64xf32>
    %403 = arith.mulf %402, %314 : vector<2x64xf32>
    %404 = arith.addf %399, %403 : vector<2x64xf32>
    %405 = vector.extract_strided_slice %40 {offsets = [4, 0, 0], sizes = [1, 2, 256], strides = [1, 1, 1]} : vector<8x2x512xf32> to vector<1x2x256xf32>
    %406 = vector.shape_cast %405 : vector<1x2x256xf32> to vector<2x256xf32>
    %cst_81 = arith.constant dense<0.000000e+00> : vector<2x256xf32>
    %407 = tpu.matmul %383, %42, %cst_81 {dimension_numbers = #tpu.dot_dimension_numbers<[1], [0], [0], [1], [0, 0, 1, 1], [], []>} : vector<2x64xf32>, vector<64x256xf32>, vector<2x256xf32> -> vector<2x256xf32>
    %408 = arith.addf %406, %407 : vector<2x256xf32>
    %409 = vector.extract_strided_slice %40 {offsets = [3, 0, 256], sizes = [1, 2, 256], strides = [1, 1, 1]} : vector<8x2x512xf32> to vector<1x2x256xf32>
    %410 = vector.shape_cast %409 : vector<1x2x256xf32> to vector<2x256xf32>
    %cst_82 = arith.constant dense<0.000000e+00> : vector<2x256xf32>
    %411 = tpu.matmul %397, %43, %cst_82 {dimension_numbers = #tpu.dot_dimension_numbers<[1], [0], [0], [1], [0, 0, 1, 1], [], []>} : vector<2x64xf32>, vector<64x256xf32>, vector<2x256xf32> -> vector<2x256xf32>
    %412 = arith.addf %410, %411 : vector<2x256xf32>
    %413 = vector.extract_strided_slice %408 {offsets = [0, 0], sizes = [2, 64], strides = [1, 1]} : vector<2x256xf32> to vector<2x64xf32>
    %414 = arith.negf %413 : vector<2x64xf32>
    %415 = math.exp %414 : vector<2x64xf32>
    %cst_83 = arith.constant 1.000000e+00 : f32
    %416 = vector.broadcast %cst_83 : f32 to vector<2x64xf32>
    %417 = arith.addf %416, %415 : vector<2x64xf32>
    %418 = arith.divf %416, %417 : vector<2x64xf32>
    %419 = vector.extract_strided_slice %408 {offsets = [0, 64], sizes = [2, 64], strides = [1, 1]} : vector<2x256xf32> to vector<2x64xf32>
    %420 = arith.negf %419 : vector<2x64xf32>
    %421 = math.exp %420 : vector<2x64xf32>
    %cst_84 = arith.constant 1.000000e+00 : f32
    %422 = vector.broadcast %cst_84 : f32 to vector<2x64xf32>
    %423 = arith.addf %422, %421 : vector<2x64xf32>
    %424 = arith.divf %422, %423 : vector<2x64xf32>
    %425 = vector.extract_strided_slice %408 {offsets = [0, 128], sizes = [2, 64], strides = [1, 1]} : vector<2x256xf32> to vector<2x64xf32>
    %426 = math.tanh %425 : vector<2x64xf32>
    %427 = vector.extract_strided_slice %408 {offsets = [0, 192], sizes = [2, 64], strides = [1, 1]} : vector<2x256xf32> to vector<2x64xf32>
    %428 = arith.negf %427 : vector<2x64xf32>
    %429 = math.exp %428 : vector<2x64xf32>
    %cst_85 = arith.constant 1.000000e+00 : f32
    %430 = vector.broadcast %cst_85 : f32 to vector<2x64xf32>
    %431 = arith.addf %430, %429 : vector<2x64xf32>
    %432 = arith.divf %430, %431 : vector<2x64xf32>
    %433 = arith.mulf %424, %390 : vector<2x64xf32>
    %434 = arith.mulf %418, %426 : vector<2x64xf32>
    %435 = arith.addf %433, %434 : vector<2x64xf32>
    %436 = math.tanh %435 : vector<2x64xf32>
    %437 = arith.mulf %432, %436 : vector<2x64xf32>
    %438 = vector.extract_strided_slice %412 {offsets = [0, 0], sizes = [2, 64], strides = [1, 1]} : vector<2x256xf32> to vector<2x64xf32>
    %439 = arith.negf %438 : vector<2x64xf32>
    %440 = math.exp %439 : vector<2x64xf32>
    %cst_86 = arith.constant 1.000000e+00 : f32
    %441 = vector.broadcast %cst_86 : f32 to vector<2x64xf32>
    %442 = arith.addf %441, %440 : vector<2x64xf32>
    %443 = arith.divf %441, %442 : vector<2x64xf32>
    %444 = vector.extract_strided_slice %412 {offsets = [0, 64], sizes = [2, 64], strides = [1, 1]} : vector<2x256xf32> to vector<2x64xf32>
    %445 = arith.negf %444 : vector<2x64xf32>
    %446 = math.exp %445 : vector<2x64xf32>
    %cst_87 = arith.constant 1.000000e+00 : f32
    %447 = vector.broadcast %cst_87 : f32 to vector<2x64xf32>
    %448 = arith.addf %447, %446 : vector<2x64xf32>
    %449 = arith.divf %447, %448 : vector<2x64xf32>
    %450 = vector.extract_strided_slice %412 {offsets = [0, 128], sizes = [2, 64], strides = [1, 1]} : vector<2x256xf32> to vector<2x64xf32>
    %451 = math.tanh %450 : vector<2x64xf32>
    %452 = vector.extract_strided_slice %412 {offsets = [0, 192], sizes = [2, 64], strides = [1, 1]} : vector<2x256xf32> to vector<2x64xf32>
    %453 = arith.negf %452 : vector<2x64xf32>
    %454 = math.exp %453 : vector<2x64xf32>
    %cst_88 = arith.constant 1.000000e+00 : f32
    %455 = vector.broadcast %cst_88 : f32 to vector<2x64xf32>
    %456 = arith.addf %455, %454 : vector<2x64xf32>
    %457 = arith.divf %455, %456 : vector<2x64xf32>
    %458 = arith.mulf %449, %404 : vector<2x64xf32>
    %459 = arith.mulf %443, %451 : vector<2x64xf32>
    %460 = arith.addf %458, %459 : vector<2x64xf32>
    %461 = math.tanh %460 : vector<2x64xf32>
    %462 = arith.mulf %457, %461 : vector<2x64xf32>
    %463 = vector.extract_strided_slice %41 {offsets = [4, 0, 0], sizes = [1, 2, 1], strides = [1, 1, 1]} : vector<8x2x1xf32> to vector<1x2x1xf32>
    %464 = vector.shape_cast %463 : vector<1x2x1xf32> to vector<2x1xf32>
    %465 = vector.extract_strided_slice %41 {offsets = [3, 0, 0], sizes = [1, 2, 1], strides = [1, 1, 1]} : vector<8x2x1xf32> to vector<1x2x1xf32>
    %466 = vector.shape_cast %465 : vector<1x2x1xf32> to vector<2x1xf32>
    %467 = vector.broadcast %464 : vector<2x1xf32> to vector<2x64xf32>
    %468 = arith.mulf %467, %437 : vector<2x64xf32>
    %cst_89 = arith.constant 1.000000e+00 : f32
    %469 = vector.broadcast %cst_89 : f32 to vector<2x1xf32>
    %470 = arith.subf %469, %464 : vector<2x1xf32>
    %471 = vector.broadcast %470 : vector<2x1xf32> to vector<2x64xf32>
    %472 = arith.mulf %471, %383 : vector<2x64xf32>
    %473 = arith.addf %468, %472 : vector<2x64xf32>
    %474 = vector.broadcast %464 : vector<2x1xf32> to vector<2x64xf32>
    %475 = arith.mulf %474, %435 : vector<2x64xf32>
    %cst_90 = arith.constant 1.000000e+00 : f32
    %476 = vector.broadcast %cst_90 : f32 to vector<2x1xf32>
    %477 = arith.subf %476, %464 : vector<2x1xf32>
    %478 = vector.broadcast %477 : vector<2x1xf32> to vector<2x64xf32>
    %479 = arith.mulf %478, %390 : vector<2x64xf32>
    %480 = arith.addf %475, %479 : vector<2x64xf32>
    %481 = vector.broadcast %466 : vector<2x1xf32> to vector<2x64xf32>
    %482 = arith.mulf %481, %462 : vector<2x64xf32>
    %cst_91 = arith.constant 1.000000e+00 : f32
    %483 = vector.broadcast %cst_91 : f32 to vector<2x1xf32>
    %484 = arith.subf %483, %466 : vector<2x1xf32>
    %485 = vector.broadcast %484 : vector<2x1xf32> to vector<2x64xf32>
    %486 = arith.mulf %485, %397 : vector<2x64xf32>
    %487 = arith.addf %482, %486 : vector<2x64xf32>
    %488 = vector.broadcast %466 : vector<2x1xf32> to vector<2x64xf32>
    %489 = arith.mulf %488, %460 : vector<2x64xf32>
    %cst_92 = arith.constant 1.000000e+00 : f32
    %490 = vector.broadcast %cst_92 : f32 to vector<2x1xf32>
    %491 = arith.subf %490, %466 : vector<2x1xf32>
    %492 = vector.broadcast %491 : vector<2x1xf32> to vector<2x64xf32>
    %493 = arith.mulf %492, %404 : vector<2x64xf32>
    %494 = arith.addf %489, %493 : vector<2x64xf32>
    %495 = vector.extract_strided_slice %40 {offsets = [5, 0, 0], sizes = [1, 2, 256], strides = [1, 1, 1]} : vector<8x2x512xf32> to vector<1x2x256xf32>
    %496 = vector.shape_cast %495 : vector<1x2x256xf32> to vector<2x256xf32>
    %cst_93 = arith.constant dense<0.000000e+00> : vector<2x256xf32>
    %497 = tpu.matmul %473, %42, %cst_93 {dimension_numbers = #tpu.dot_dimension_numbers<[1], [0], [0], [1], [0, 0, 1, 1], [], []>} : vector<2x64xf32>, vector<64x256xf32>, vector<2x256xf32> -> vector<2x256xf32>
    %498 = arith.addf %496, %497 : vector<2x256xf32>
    %499 = vector.extract_strided_slice %40 {offsets = [2, 0, 256], sizes = [1, 2, 256], strides = [1, 1, 1]} : vector<8x2x512xf32> to vector<1x2x256xf32>
    %500 = vector.shape_cast %499 : vector<1x2x256xf32> to vector<2x256xf32>
    %cst_94 = arith.constant dense<0.000000e+00> : vector<2x256xf32>
    %501 = tpu.matmul %487, %43, %cst_94 {dimension_numbers = #tpu.dot_dimension_numbers<[1], [0], [0], [1], [0, 0, 1, 1], [], []>} : vector<2x64xf32>, vector<64x256xf32>, vector<2x256xf32> -> vector<2x256xf32>
    %502 = arith.addf %500, %501 : vector<2x256xf32>
    %503 = vector.extract_strided_slice %498 {offsets = [0, 0], sizes = [2, 64], strides = [1, 1]} : vector<2x256xf32> to vector<2x64xf32>
    %504 = arith.negf %503 : vector<2x64xf32>
    %505 = math.exp %504 : vector<2x64xf32>
    %cst_95 = arith.constant 1.000000e+00 : f32
    %506 = vector.broadcast %cst_95 : f32 to vector<2x64xf32>
    %507 = arith.addf %506, %505 : vector<2x64xf32>
    %508 = arith.divf %506, %507 : vector<2x64xf32>
    %509 = vector.extract_strided_slice %498 {offsets = [0, 64], sizes = [2, 64], strides = [1, 1]} : vector<2x256xf32> to vector<2x64xf32>
    %510 = arith.negf %509 : vector<2x64xf32>
    %511 = math.exp %510 : vector<2x64xf32>
    %cst_96 = arith.constant 1.000000e+00 : f32
    %512 = vector.broadcast %cst_96 : f32 to vector<2x64xf32>
    %513 = arith.addf %512, %511 : vector<2x64xf32>
    %514 = arith.divf %512, %513 : vector<2x64xf32>
    %515 = vector.extract_strided_slice %498 {offsets = [0, 128], sizes = [2, 64], strides = [1, 1]} : vector<2x256xf32> to vector<2x64xf32>
    %516 = math.tanh %515 : vector<2x64xf32>
    %517 = vector.extract_strided_slice %498 {offsets = [0, 192], sizes = [2, 64], strides = [1, 1]} : vector<2x256xf32> to vector<2x64xf32>
    %518 = arith.negf %517 : vector<2x64xf32>
    %519 = math.exp %518 : vector<2x64xf32>
    %cst_97 = arith.constant 1.000000e+00 : f32
    %520 = vector.broadcast %cst_97 : f32 to vector<2x64xf32>
    %521 = arith.addf %520, %519 : vector<2x64xf32>
    %522 = arith.divf %520, %521 : vector<2x64xf32>
    %523 = arith.mulf %514, %480 : vector<2x64xf32>
    %524 = arith.mulf %508, %516 : vector<2x64xf32>
    %525 = arith.addf %523, %524 : vector<2x64xf32>
    %526 = math.tanh %525 : vector<2x64xf32>
    %527 = arith.mulf %522, %526 : vector<2x64xf32>
    %528 = vector.extract_strided_slice %502 {offsets = [0, 0], sizes = [2, 64], strides = [1, 1]} : vector<2x256xf32> to vector<2x64xf32>
    %529 = arith.negf %528 : vector<2x64xf32>
    %530 = math.exp %529 : vector<2x64xf32>
    %cst_98 = arith.constant 1.000000e+00 : f32
    %531 = vector.broadcast %cst_98 : f32 to vector<2x64xf32>
    %532 = arith.addf %531, %530 : vector<2x64xf32>
    %533 = arith.divf %531, %532 : vector<2x64xf32>
    %534 = vector.extract_strided_slice %502 {offsets = [0, 64], sizes = [2, 64], strides = [1, 1]} : vector<2x256xf32> to vector<2x64xf32>
    %535 = arith.negf %534 : vector<2x64xf32>
    %536 = math.exp %535 : vector<2x64xf32>
    %cst_99 = arith.constant 1.000000e+00 : f32
    %537 = vector.broadcast %cst_99 : f32 to vector<2x64xf32>
    %538 = arith.addf %537, %536 : vector<2x64xf32>
    %539 = arith.divf %537, %538 : vector<2x64xf32>
    %540 = vector.extract_strided_slice %502 {offsets = [0, 128], sizes = [2, 64], strides = [1, 1]} : vector<2x256xf32> to vector<2x64xf32>
    %541 = math.tanh %540 : vector<2x64xf32>
    %542 = vector.extract_strided_slice %502 {offsets = [0, 192], sizes = [2, 64], strides = [1, 1]} : vector<2x256xf32> to vector<2x64xf32>
    %543 = arith.negf %542 : vector<2x64xf32>
    %544 = math.exp %543 : vector<2x64xf32>
    %cst_100 = arith.constant 1.000000e+00 : f32
    %545 = vector.broadcast %cst_100 : f32 to vector<2x64xf32>
    %546 = arith.addf %545, %544 : vector<2x64xf32>
    %547 = arith.divf %545, %546 : vector<2x64xf32>
    %548 = arith.mulf %539, %494 : vector<2x64xf32>
    %549 = arith.mulf %533, %541 : vector<2x64xf32>
    %550 = arith.addf %548, %549 : vector<2x64xf32>
    %551 = math.tanh %550 : vector<2x64xf32>
    %552 = arith.mulf %547, %551 : vector<2x64xf32>
    %553 = vector.extract_strided_slice %41 {offsets = [5, 0, 0], sizes = [1, 2, 1], strides = [1, 1, 1]} : vector<8x2x1xf32> to vector<1x2x1xf32>
    %554 = vector.shape_cast %553 : vector<1x2x1xf32> to vector<2x1xf32>
    %555 = vector.extract_strided_slice %41 {offsets = [2, 0, 0], sizes = [1, 2, 1], strides = [1, 1, 1]} : vector<8x2x1xf32> to vector<1x2x1xf32>
    %556 = vector.shape_cast %555 : vector<1x2x1xf32> to vector<2x1xf32>
    %557 = vector.broadcast %554 : vector<2x1xf32> to vector<2x64xf32>
    %558 = arith.mulf %557, %527 : vector<2x64xf32>
    %cst_101 = arith.constant 1.000000e+00 : f32
    %559 = vector.broadcast %cst_101 : f32 to vector<2x1xf32>
    %560 = arith.subf %559, %554 : vector<2x1xf32>
    %561 = vector.broadcast %560 : vector<2x1xf32> to vector<2x64xf32>
    %562 = arith.mulf %561, %473 : vector<2x64xf32>
    %563 = arith.addf %558, %562 : vector<2x64xf32>
    %564 = vector.broadcast %554 : vector<2x1xf32> to vector<2x64xf32>
    %565 = arith.mulf %564, %525 : vector<2x64xf32>
    %cst_102 = arith.constant 1.000000e+00 : f32
    %566 = vector.broadcast %cst_102 : f32 to vector<2x1xf32>
    %567 = arith.subf %566, %554 : vector<2x1xf32>
    %568 = vector.broadcast %567 : vector<2x1xf32> to vector<2x64xf32>
    %569 = arith.mulf %568, %480 : vector<2x64xf32>
    %570 = arith.addf %565, %569 : vector<2x64xf32>
    %571 = vector.broadcast %556 : vector<2x1xf32> to vector<2x64xf32>
    %572 = arith.mulf %571, %552 : vector<2x64xf32>
    %cst_103 = arith.constant 1.000000e+00 : f32
    %573 = vector.broadcast %cst_103 : f32 to vector<2x1xf32>
    %574 = arith.subf %573, %556 : vector<2x1xf32>
    %575 = vector.broadcast %574 : vector<2x1xf32> to vector<2x64xf32>
    %576 = arith.mulf %575, %487 : vector<2x64xf32>
    %577 = arith.addf %572, %576 : vector<2x64xf32>
    %578 = vector.broadcast %556 : vector<2x1xf32> to vector<2x64xf32>
    %579 = arith.mulf %578, %550 : vector<2x64xf32>
    %cst_104 = arith.constant 1.000000e+00 : f32
    %580 = vector.broadcast %cst_104 : f32 to vector<2x1xf32>
    %581 = arith.subf %580, %556 : vector<2x1xf32>
    %582 = vector.broadcast %581 : vector<2x1xf32> to vector<2x64xf32>
    %583 = arith.mulf %582, %494 : vector<2x64xf32>
    %584 = arith.addf %579, %583 : vector<2x64xf32>
    %585 = vector.extract_strided_slice %40 {offsets = [6, 0, 0], sizes = [1, 2, 256], strides = [1, 1, 1]} : vector<8x2x512xf32> to vector<1x2x256xf32>
    %586 = vector.shape_cast %585 : vector<1x2x256xf32> to vector<2x256xf32>
    %cst_105 = arith.constant dense<0.000000e+00> : vector<2x256xf32>
    %587 = tpu.matmul %563, %42, %cst_105 {dimension_numbers = #tpu.dot_dimension_numbers<[1], [0], [0], [1], [0, 0, 1, 1], [], []>} : vector<2x64xf32>, vector<64x256xf32>, vector<2x256xf32> -> vector<2x256xf32>
    %588 = arith.addf %586, %587 : vector<2x256xf32>
    %589 = vector.extract_strided_slice %40 {offsets = [1, 0, 256], sizes = [1, 2, 256], strides = [1, 1, 1]} : vector<8x2x512xf32> to vector<1x2x256xf32>
    %590 = vector.shape_cast %589 : vector<1x2x256xf32> to vector<2x256xf32>
    %cst_106 = arith.constant dense<0.000000e+00> : vector<2x256xf32>
    %591 = tpu.matmul %577, %43, %cst_106 {dimension_numbers = #tpu.dot_dimension_numbers<[1], [0], [0], [1], [0, 0, 1, 1], [], []>} : vector<2x64xf32>, vector<64x256xf32>, vector<2x256xf32> -> vector<2x256xf32>
    %592 = arith.addf %590, %591 : vector<2x256xf32>
    %593 = vector.extract_strided_slice %588 {offsets = [0, 0], sizes = [2, 64], strides = [1, 1]} : vector<2x256xf32> to vector<2x64xf32>
    %594 = arith.negf %593 : vector<2x64xf32>
    %595 = math.exp %594 : vector<2x64xf32>
    %cst_107 = arith.constant 1.000000e+00 : f32
    %596 = vector.broadcast %cst_107 : f32 to vector<2x64xf32>
    %597 = arith.addf %596, %595 : vector<2x64xf32>
    %598 = arith.divf %596, %597 : vector<2x64xf32>
    %599 = vector.extract_strided_slice %588 {offsets = [0, 64], sizes = [2, 64], strides = [1, 1]} : vector<2x256xf32> to vector<2x64xf32>
    %600 = arith.negf %599 : vector<2x64xf32>
    %601 = math.exp %600 : vector<2x64xf32>
    %cst_108 = arith.constant 1.000000e+00 : f32
    %602 = vector.broadcast %cst_108 : f32 to vector<2x64xf32>
    %603 = arith.addf %602, %601 : vector<2x64xf32>
    %604 = arith.divf %602, %603 : vector<2x64xf32>
    %605 = vector.extract_strided_slice %588 {offsets = [0, 128], sizes = [2, 64], strides = [1, 1]} : vector<2x256xf32> to vector<2x64xf32>
    %606 = math.tanh %605 : vector<2x64xf32>
    %607 = vector.extract_strided_slice %588 {offsets = [0, 192], sizes = [2, 64], strides = [1, 1]} : vector<2x256xf32> to vector<2x64xf32>
    %608 = arith.negf %607 : vector<2x64xf32>
    %609 = math.exp %608 : vector<2x64xf32>
    %cst_109 = arith.constant 1.000000e+00 : f32
    %610 = vector.broadcast %cst_109 : f32 to vector<2x64xf32>
    %611 = arith.addf %610, %609 : vector<2x64xf32>
    %612 = arith.divf %610, %611 : vector<2x64xf32>
    %613 = arith.mulf %604, %570 : vector<2x64xf32>
    %614 = arith.mulf %598, %606 : vector<2x64xf32>
    %615 = arith.addf %613, %614 : vector<2x64xf32>
    %616 = math.tanh %615 : vector<2x64xf32>
    %617 = arith.mulf %612, %616 : vector<2x64xf32>
    %618 = vector.extract_strided_slice %592 {offsets = [0, 0], sizes = [2, 64], strides = [1, 1]} : vector<2x256xf32> to vector<2x64xf32>
    %619 = arith.negf %618 : vector<2x64xf32>
    %620 = math.exp %619 : vector<2x64xf32>
    %cst_110 = arith.constant 1.000000e+00 : f32
    %621 = vector.broadcast %cst_110 : f32 to vector<2x64xf32>
    %622 = arith.addf %621, %620 : vector<2x64xf32>
    %623 = arith.divf %621, %622 : vector<2x64xf32>
    %624 = vector.extract_strided_slice %592 {offsets = [0, 64], sizes = [2, 64], strides = [1, 1]} : vector<2x256xf32> to vector<2x64xf32>
    %625 = arith.negf %624 : vector<2x64xf32>
    %626 = math.exp %625 : vector<2x64xf32>
    %cst_111 = arith.constant 1.000000e+00 : f32
    %627 = vector.broadcast %cst_111 : f32 to vector<2x64xf32>
    %628 = arith.addf %627, %626 : vector<2x64xf32>
    %629 = arith.divf %627, %628 : vector<2x64xf32>
    %630 = vector.extract_strided_slice %592 {offsets = [0, 128], sizes = [2, 64], strides = [1, 1]} : vector<2x256xf32> to vector<2x64xf32>
    %631 = math.tanh %630 : vector<2x64xf32>
    %632 = vector.extract_strided_slice %592 {offsets = [0, 192], sizes = [2, 64], strides = [1, 1]} : vector<2x256xf32> to vector<2x64xf32>
    %633 = arith.negf %632 : vector<2x64xf32>
    %634 = math.exp %633 : vector<2x64xf32>
    %cst_112 = arith.constant 1.000000e+00 : f32
    %635 = vector.broadcast %cst_112 : f32 to vector<2x64xf32>
    %636 = arith.addf %635, %634 : vector<2x64xf32>
    %637 = arith.divf %635, %636 : vector<2x64xf32>
    %638 = arith.mulf %629, %584 : vector<2x64xf32>
    %639 = arith.mulf %623, %631 : vector<2x64xf32>
    %640 = arith.addf %638, %639 : vector<2x64xf32>
    %641 = math.tanh %640 : vector<2x64xf32>
    %642 = arith.mulf %637, %641 : vector<2x64xf32>
    %643 = vector.extract_strided_slice %41 {offsets = [6, 0, 0], sizes = [1, 2, 1], strides = [1, 1, 1]} : vector<8x2x1xf32> to vector<1x2x1xf32>
    %644 = vector.shape_cast %643 : vector<1x2x1xf32> to vector<2x1xf32>
    %645 = vector.extract_strided_slice %41 {offsets = [1, 0, 0], sizes = [1, 2, 1], strides = [1, 1, 1]} : vector<8x2x1xf32> to vector<1x2x1xf32>
    %646 = vector.shape_cast %645 : vector<1x2x1xf32> to vector<2x1xf32>
    %647 = vector.broadcast %644 : vector<2x1xf32> to vector<2x64xf32>
    %648 = arith.mulf %647, %617 : vector<2x64xf32>
    %cst_113 = arith.constant 1.000000e+00 : f32
    %649 = vector.broadcast %cst_113 : f32 to vector<2x1xf32>
    %650 = arith.subf %649, %644 : vector<2x1xf32>
    %651 = vector.broadcast %650 : vector<2x1xf32> to vector<2x64xf32>
    %652 = arith.mulf %651, %563 : vector<2x64xf32>
    %653 = arith.addf %648, %652 : vector<2x64xf32>
    %654 = vector.broadcast %644 : vector<2x1xf32> to vector<2x64xf32>
    %655 = arith.mulf %654, %615 : vector<2x64xf32>
    %cst_114 = arith.constant 1.000000e+00 : f32
    %656 = vector.broadcast %cst_114 : f32 to vector<2x1xf32>
    %657 = arith.subf %656, %644 : vector<2x1xf32>
    %658 = vector.broadcast %657 : vector<2x1xf32> to vector<2x64xf32>
    %659 = arith.mulf %658, %570 : vector<2x64xf32>
    %660 = arith.addf %655, %659 : vector<2x64xf32>
    %661 = vector.broadcast %646 : vector<2x1xf32> to vector<2x64xf32>
    %662 = arith.mulf %661, %642 : vector<2x64xf32>
    %cst_115 = arith.constant 1.000000e+00 : f32
    %663 = vector.broadcast %cst_115 : f32 to vector<2x1xf32>
    %664 = arith.subf %663, %646 : vector<2x1xf32>
    %665 = vector.broadcast %664 : vector<2x1xf32> to vector<2x64xf32>
    %666 = arith.mulf %665, %577 : vector<2x64xf32>
    %667 = arith.addf %662, %666 : vector<2x64xf32>
    %668 = vector.broadcast %646 : vector<2x1xf32> to vector<2x64xf32>
    %669 = arith.mulf %668, %640 : vector<2x64xf32>
    %cst_116 = arith.constant 1.000000e+00 : f32
    %670 = vector.broadcast %cst_116 : f32 to vector<2x1xf32>
    %671 = arith.subf %670, %646 : vector<2x1xf32>
    %672 = vector.broadcast %671 : vector<2x1xf32> to vector<2x64xf32>
    %673 = arith.mulf %672, %584 : vector<2x64xf32>
    %674 = arith.addf %669, %673 : vector<2x64xf32>
    %675 = vector.extract_strided_slice %40 {offsets = [7, 0, 0], sizes = [1, 2, 256], strides = [1, 1, 1]} : vector<8x2x512xf32> to vector<1x2x256xf32>
    %676 = vector.shape_cast %675 : vector<1x2x256xf32> to vector<2x256xf32>
    %cst_117 = arith.constant dense<0.000000e+00> : vector<2x256xf32>
    %677 = tpu.matmul %653, %42, %cst_117 {dimension_numbers = #tpu.dot_dimension_numbers<[1], [0], [0], [1], [0, 0, 1, 1], [], []>} : vector<2x64xf32>, vector<64x256xf32>, vector<2x256xf32> -> vector<2x256xf32>
    %678 = arith.addf %676, %677 : vector<2x256xf32>
    %679 = vector.extract_strided_slice %40 {offsets = [0, 0, 256], sizes = [1, 2, 256], strides = [1, 1, 1]} : vector<8x2x512xf32> to vector<1x2x256xf32>
    %680 = vector.shape_cast %679 : vector<1x2x256xf32> to vector<2x256xf32>
    %cst_118 = arith.constant dense<0.000000e+00> : vector<2x256xf32>
    %681 = tpu.matmul %667, %43, %cst_118 {dimension_numbers = #tpu.dot_dimension_numbers<[1], [0], [0], [1], [0, 0, 1, 1], [], []>} : vector<2x64xf32>, vector<64x256xf32>, vector<2x256xf32> -> vector<2x256xf32>
    %682 = arith.addf %680, %681 : vector<2x256xf32>
    %683 = vector.extract_strided_slice %678 {offsets = [0, 0], sizes = [2, 64], strides = [1, 1]} : vector<2x256xf32> to vector<2x64xf32>
    %684 = arith.negf %683 : vector<2x64xf32>
    %685 = math.exp %684 : vector<2x64xf32>
    %cst_119 = arith.constant 1.000000e+00 : f32
    %686 = vector.broadcast %cst_119 : f32 to vector<2x64xf32>
    %687 = arith.addf %686, %685 : vector<2x64xf32>
    %688 = arith.divf %686, %687 : vector<2x64xf32>
    %689 = vector.extract_strided_slice %678 {offsets = [0, 64], sizes = [2, 64], strides = [1, 1]} : vector<2x256xf32> to vector<2x64xf32>
    %690 = arith.negf %689 : vector<2x64xf32>
    %691 = math.exp %690 : vector<2x64xf32>
    %cst_120 = arith.constant 1.000000e+00 : f32
    %692 = vector.broadcast %cst_120 : f32 to vector<2x64xf32>
    %693 = arith.addf %692, %691 : vector<2x64xf32>
    %694 = arith.divf %692, %693 : vector<2x64xf32>
    %695 = vector.extract_strided_slice %678 {offsets = [0, 128], sizes = [2, 64], strides = [1, 1]} : vector<2x256xf32> to vector<2x64xf32>
    %696 = math.tanh %695 : vector<2x64xf32>
    %697 = vector.extract_strided_slice %678 {offsets = [0, 192], sizes = [2, 64], strides = [1, 1]} : vector<2x256xf32> to vector<2x64xf32>
    %698 = arith.negf %697 : vector<2x64xf32>
    %699 = math.exp %698 : vector<2x64xf32>
    %cst_121 = arith.constant 1.000000e+00 : f32
    %700 = vector.broadcast %cst_121 : f32 to vector<2x64xf32>
    %701 = arith.addf %700, %699 : vector<2x64xf32>
    %702 = arith.divf %700, %701 : vector<2x64xf32>
    %703 = arith.mulf %694, %660 : vector<2x64xf32>
    %704 = arith.mulf %688, %696 : vector<2x64xf32>
    %705 = arith.addf %703, %704 : vector<2x64xf32>
    %706 = math.tanh %705 : vector<2x64xf32>
    %707 = arith.mulf %702, %706 : vector<2x64xf32>
    %708 = vector.extract_strided_slice %682 {offsets = [0, 0], sizes = [2, 64], strides = [1, 1]} : vector<2x256xf32> to vector<2x64xf32>
    %709 = arith.negf %708 : vector<2x64xf32>
    %710 = math.exp %709 : vector<2x64xf32>
    %cst_122 = arith.constant 1.000000e+00 : f32
    %711 = vector.broadcast %cst_122 : f32 to vector<2x64xf32>
    %712 = arith.addf %711, %710 : vector<2x64xf32>
    %713 = arith.divf %711, %712 : vector<2x64xf32>
    %714 = vector.extract_strided_slice %682 {offsets = [0, 64], sizes = [2, 64], strides = [1, 1]} : vector<2x256xf32> to vector<2x64xf32>
    %715 = arith.negf %714 : vector<2x64xf32>
    %716 = math.exp %715 : vector<2x64xf32>
    %cst_123 = arith.constant 1.000000e+00 : f32
    %717 = vector.broadcast %cst_123 : f32 to vector<2x64xf32>
    %718 = arith.addf %717, %716 : vector<2x64xf32>
    %719 = arith.divf %717, %718 : vector<2x64xf32>
    %720 = vector.extract_strided_slice %682 {offsets = [0, 128], sizes = [2, 64], strides = [1, 1]} : vector<2x256xf32> to vector<2x64xf32>
    %721 = math.tanh %720 : vector<2x64xf32>
    %722 = vector.extract_strided_slice %682 {offsets = [0, 192], sizes = [2, 64], strides = [1, 1]} : vector<2x256xf32> to vector<2x64xf32>
    %723 = arith.negf %722 : vector<2x64xf32>
    %724 = math.exp %723 : vector<2x64xf32>
    %cst_124 = arith.constant 1.000000e+00 : f32
    %725 = vector.broadcast %cst_124 : f32 to vector<2x64xf32>
    %726 = arith.addf %725, %724 : vector<2x64xf32>
    %727 = arith.divf %725, %726 : vector<2x64xf32>
    %728 = arith.mulf %719, %674 : vector<2x64xf32>
    %729 = arith.mulf %713, %721 : vector<2x64xf32>
    %730 = arith.addf %728, %729 : vector<2x64xf32>
    %731 = math.tanh %730 : vector<2x64xf32>
    %732 = arith.mulf %727, %731 : vector<2x64xf32>
    %733 = vector.extract_strided_slice %41 {offsets = [7, 0, 0], sizes = [1, 2, 1], strides = [1, 1, 1]} : vector<8x2x1xf32> to vector<1x2x1xf32>
    %734 = vector.shape_cast %733 : vector<1x2x1xf32> to vector<2x1xf32>
    %735 = vector.extract_strided_slice %41 {offsets = [0, 0, 0], sizes = [1, 2, 1], strides = [1, 1, 1]} : vector<8x2x1xf32> to vector<1x2x1xf32>
    %736 = vector.shape_cast %735 : vector<1x2x1xf32> to vector<2x1xf32>
    %737 = vector.broadcast %734 : vector<2x1xf32> to vector<2x64xf32>
    %738 = arith.mulf %737, %707 : vector<2x64xf32>
    %cst_125 = arith.constant 1.000000e+00 : f32
    %739 = vector.broadcast %cst_125 : f32 to vector<2x1xf32>
    %740 = arith.subf %739, %734 : vector<2x1xf32>
    %741 = vector.broadcast %740 : vector<2x1xf32> to vector<2x64xf32>
    %742 = arith.mulf %741, %653 : vector<2x64xf32>
    %743 = arith.addf %738, %742 : vector<2x64xf32>
    %744 = vector.broadcast %736 : vector<2x1xf32> to vector<2x64xf32>
    %745 = arith.mulf %744, %732 : vector<2x64xf32>
    %cst_126 = arith.constant 1.000000e+00 : f32
    %746 = vector.broadcast %cst_126 : f32 to vector<2x1xf32>
    %747 = arith.subf %746, %736 : vector<2x1xf32>
    %748 = vector.broadcast %747 : vector<2x1xf32> to vector<2x64xf32>
    %749 = arith.mulf %748, %667 : vector<2x64xf32>
    %750 = arith.addf %745, %749 : vector<2x64xf32>
    %c0_127 = arith.constant 0 : index
    %c0_128 = arith.constant 0 : index
    %751 = vector.load %arg10[%c0_127, %c0_128] : memref<64x32xf32, #tpu.memory_space<vmem>>, vector<64x32xf32>
    %cst_129 = arith.constant dense<0.000000e+00> : vector<2x32xf32>
    %752 = tpu.matmul %750, %751, %cst_129 {dimension_numbers = #tpu.dot_dimension_numbers<[1], [0], [0], [1], [0, 0, 1, 1], [], []>} : vector<2x64xf32>, vector<64x32xf32>, vector<2x32xf32> -> vector<2x32xf32>
    %c0_130 = arith.constant 0 : index
    %c0_131 = arith.constant 0 : index
    %753 = vector.load %arg11[%c0_130, %c0_131] : memref<64x32xf32, #tpu.memory_space<vmem>>, vector<64x32xf32>
    %cst_132 = arith.constant dense<0.000000e+00> : vector<2x32xf32>
    %754 = tpu.matmul %743, %753, %cst_132 {dimension_numbers = #tpu.dot_dimension_numbers<[1], [0], [0], [1], [0, 0, 1, 1], [], []>} : vector<2x64xf32>, vector<64x32xf32>, vector<2x32xf32> -> vector<2x32xf32>
    %755 = arith.addf %752, %754 : vector<2x32xf32>
    %c0_133 = arith.constant 0 : index
    %c0_134 = arith.constant 0 : index
    %756 = vector.load %arg12[%c0_133, %c0_134] : memref<1x32xf32, #tpu.memory_space<vmem>>, vector<1x32xf32>
    %757 = vector.broadcast %756 : vector<1x32xf32> to vector<2x32xf32>
    %758 = arith.addf %755, %757 : vector<2x32xf32>
    %cst_135 = arith.constant 0.000000e+00 : f32
    %759 = vector.broadcast %cst_135 : f32 to vector<2x32xf32>
    %760 = arith.maximumf %758, %759 : vector<2x32xf32>
    %c0_136 = arith.constant 0 : index
    %c0_137 = arith.constant 0 : index
    %761 = vector.load %arg13[%c0_136, %c0_137] : memref<32x1xf32, #tpu.memory_space<vmem>>, vector<32x1xf32>
    %cst_138 = arith.constant dense<0.000000e+00> : vector<2x1xf32>
    %762 = tpu.matmul %760, %761, %cst_138 {dimension_numbers = #tpu.dot_dimension_numbers<[1], [0], [0], [1], [0, 0, 1, 1], [], []>} : vector<2x32xf32>, vector<32x1xf32>, vector<2x1xf32> -> vector<2x1xf32>
    %c0_139 = arith.constant 0 : index
    %c0_140 = arith.constant 0 : index
    %763 = vector.load %arg14[%c0_139, %c0_140] : memref<1x1xf32, #tpu.memory_space<vmem>>, vector<1x1xf32>
    %764 = vector.broadcast %763 : vector<1x1xf32> to vector<2x1xf32>
    %765 = arith.addf %762, %764 : vector<2x1xf32>
    %c0_141 = arith.constant 0 : index
    %c0_142 = arith.constant 0 : index
    %766 = vector.load %arg15[%c0_141, %c0_142] : memref<2x1xf32, #tpu.memory_space<vmem>>, vector<2x1xf32>
    tpu.vector_store %arg15[%c0_141, %c0_142], %765 {strides = array<i32>} : memref<2x1xf32, #tpu.memory_space<vmem>>, vector<2x1xf32>,
    return
  }
}

</mosaic_0001>

<bundles_post_ra>
// kernel: tpu_custom_call.1
= control target key start
LH: loop header
LB: loop body
LE: loop exit
PB: predicated region body
PF: predicated region fallthrough
CT: control target
= control target key end

     0   :  { %s4302_s0 = inlined_call_operand.vmem [shape: f32[8,2,16], index: 0, kind: input, shape index: {}]   ;;  %s4303_s1 = inlined_call_operand.vmem [shape: f32[8,2,1], index: 1, kind: input, shape index: {}]   ;;  %s4304_s2 = inlined_call_operand.vmem [shape: f32[8,1,16], index: 2, kind: input, shape index: {}]   ;;  %s4305_s3 = inlined_call_operand.vmem [shape: f32[8,1,16], index: 3, kind: input, shape index: {}]   ;;  %s4306_s4 = inlined_call_operand.vmem [shape: f32[16,32], index: 4, kind: input, shape index: {}]   ;;  %s4307_s5 = inlined_call_operand.vmem [shape: f32[1,32], index: 5, kind: input, shape index: {}]   ;;  %s4308_s6 = inlined_call_operand.vmem [shape: f32[32,512], index: 6, kind: input, shape index: {}]   ;;  %s4309_s7 = inlined_call_operand.vmem [shape: f32[1,512], index: 7, kind: input, shape index: {}]   ;;  %s4310_s8 = inlined_call_operand.hbm [shape: f32[64,256], index: 8, kind: input, shape index: {}]   ;;  %s4311_s9 = inlined_call_operand.hbm [shape: f32[64,256], index: 9, kind: input, shape index: {}]   ;;  %s4312_s10 = inlined_call_operand.vmem [shape: f32[64,32], index: 10, kind: input, shape index: {}]   ;;  %s4313_s11 = inlined_call_operand.vmem [shape: f32[64,32], index: 11, kind: input, shape index: {}]   ;;  %s4314_s12 = inlined_call_operand.vmem [shape: f32[1,32], index: 12, kind: input, shape index: {}]   ;;  %s4315_s13 = inlined_call_operand.vmem [shape: f32[32,1], index: 13, kind: input, shape index: {}]   ;;  %s4316_s14 = inlined_call_operand.<no memory space> [shape: f32[1,1], index: 14, kind: input, shape index: {}]   ;;  %s4317_s15 = inlined_call_operand.vmem [shape: f32[2,1], index: 15, kind: output, shape index: {}]  }
   0x1   :  { %v20_v0 = vstv %s4316_s14 }
   0x2   :  { %21 = vst [vmem:[#allocation2] sm:$0x1] %v20_v0 }
   0x3   :  { %22 = vsyncpa [#allocation4], 0  ;;  %s44_s22 = sshll.u32 %s4310_s8, 4  ;;  %s45_s22 = int_to_ptr.hbm [resolvable:$true] %s44_s22 }
   0x4   :  { %23 = vsyncpa [#allocation6], 0  ;;  %s3149_s23 = smov [#allocation3]   ;;  %s57_s27 = sshll.u32 %s4311_s9, 4  ;;  %s58_s27 = int_to_ptr.hbm [resolvable:$true] %s57_s27 }
   0x5   :  { %s46_s24 = sshll.u32 %s3149_s23, 4  ;;  %s3150_s28 = smov 256   ;;  %s47_s24 = int_to_ptr.vmem [resolvable:$true] %s46_s24 }
   0x6   :  { %s3151_s29 = smov 16   ;;  %s3152_s14 = smov [#allocation5]  }
   0x7   :  { %52 = dma.hbm_to_vmem [thread:$0]  %s45_s22, 2048, %s47_s24, [#allocation4], %s3150_s28, %s3150_s28, %s3151_s29  }
   0x8   :  { %s59_s30 = sshll.u32 %s3152_s14, 4  ;;  %s60_s30 = int_to_ptr.vmem [resolvable:$true] %s59_s30 }
   0x9   :  { %65 = dma.hbm_to_vmem [thread:$0]  %s58_s27, 2048, %s60_s30, [#allocation6], %s3150_s28, %s3150_s28, %s3151_s29  }
   0xa   :  { %3145 = dma.done.wait [#allocation4], 2048  }
   0xb   :  { %3146 = vsyncadd [#allocation4], 4294965248 }
   0xc   :  { %3147 = dma.done.wait [#allocation6], 2048  }
   0xd   :  { %3148 = vsyncadd [#allocation6], 4294965248  ;;  %vm92_vm0 = vcmask 123904   ;;  %v84_v1 = vld [vmem:[%s4302_s0] sm:$0x3]  ;;  %vm117_vm1 = vcmask 1041408  }
   0xe   :  { %v86_v2 = vld [vmem:[%s4302_s0 + $0x4] sm:$0x3]  ;;  %v88_v3 = vld [vmem:[%s4302_s0 + $0x8] sm:$0x3]  ;;  %v93_v4 = vsel %vm92_vm0, %v84_v1, 0.0  ;;  %vm320_vm5 = vcmask 130048  }
   0xf   :  { %v99_v5 = vsel %vm92_vm0, %v86_v2, 0.0  ;;  %v105_v6 = vsel %vm92_vm0, %v88_v3, 0.0  ;;  %v85_v7 = vld [vmem:[%s4302_s0 + $0x2] sm:$0x3]  ;;  %94 = vadd.xlane.f32.xlu0 %v93_v4  ;;  %v87_v8 = vld [vmem:[%s4302_s0 + $0x6] sm:$0x3] }
  0x10   :  { %100 = vadd.xlane.f32.xlu1 %v99_v5  ;;  %v89_v9 = vld [vmem:[%s4302_s0 + $0xa] sm:$0x3]  ;;  %106 = vadd.xlane.f32.xlu2 %v105_v6  ;;  %v96_v10 = vsel %vm92_vm0, %v85_v7, 0.0  ;;  %v102_v11 = vsel %vm92_vm0, %v87_v8, 0.0  ;;  %v90_v13 = vld [vmem:[%s4302_s0 + $0xc] sm:$0x3] }
  0x11   :  { %v108_v12 = vsel %vm92_vm0, %v89_v9, 0.0  ;;  %v91_v14 = vld [vmem:[%s4302_s0 + $0xe] sm:$0x3]  ;;  %v111_v15 = vsel %vm92_vm0, %v90_v13, 0.0  ;;  %vm376_vm6 = vcmask 261120   ;;  %vm490_vm7 = vcmask 1045508  }
  0x12   :  { %v114_v16 = vsel %vm92_vm0, %v91_v14, 0.0  ;;  %vm494_vm8 = vcmask 1043458   ;;  %vm496_vm9 = vcmask 1045504   ;;  %vm498_vm10 = vcmask 1045506  }
  0x13   :  { %vm492_vm11 = vcmask 1043456  }
  0x17   :  { %97 = vadd.xlane.f32.xlu0 %v96_v10 }
  0x18   :  { %103 = vadd.xlane.f32.xlu1 %v102_v11  ;;  %109 = vadd.xlane.f32.xlu2 %v108_v12 }
  0x1f   :  { %112 = vadd.xlane.f32.xlu0 %v111_v15 }
  0x20   :  { %115 = vadd.xlane.f32.xlu1 %v114_v16 }
  0x82   :  { %v95_v17 = vpop.xlane.xlu0 %94 }
  0x83   :  { %v101_v18 = vpop.xlane.xlu1 %100  ;;  %v107_v19 = vpop.xlane.xlu2 %106  ;;  %v118_v22 = vsel %vm117_vm1, %v95_v17, 0.0 }
  0x84   :  { %v121_v25 = vsel %vm117_vm1, %v101_v18, 0.0  ;;  %v125_v30 = vsel %vm117_vm1, %v107_v19, 0.0 }
  0x8a   :  { %v98_v20 = vpop.xlane.xlu0 %97 }
  0x8b   :  { %v104_v21 = vpop.xlane.xlu1 %103  ;;  %v119_v23 = vsel %vm117_vm1, %v98_v20, 0.0  ;;  %v110_v28 = vpop.xlane.xlu2 %109 }
  0x8c   :  { %v120_v24 = vadd.f32 %v119_v23, %v118_v22  ;;  %v123_v26 = vsel %vm117_vm1, %v104_v21, 0.0  ;;  %v127_v31 = vsel %vm117_vm1, %v110_v28, 0.0 }
  0x8e   :  { %v122_v27 = vadd.f32 %v121_v25, %v120_v24 }
  0x90   :  { %v124_v29 = vadd.f32 %v123_v26, %v122_v27  ;;  %v290_v26 = vld [vmem:[%s4306_s4 + $0x8] sm:$0xff]  ;;  %v289_v27 = vld [vmem:[%s4306_s4] sm:$0xff] }
  0x91   :  { %339 = vmatpush.msra.mxu0 %v290_v26  ;;  %v351_v26 = vld [vmem:[%s4308_s6 + $0x8] sm:$0xff] }
  0x92   :  { %v126_v32 = vadd.f32 %v125_v30, %v124_v29  ;;  %v113_v33 = vpop.xlane.xlu0 %112 }
  0x93   :  { %v116_v34 = vpop.xlane.xlu1 %115  ;;  %v129_v35 = vsel %vm117_vm1, %v113_v33, 0.0  ;;  %340 = vmatpush.msra.mxu0 %v289_v27  ;;  %v363_v33 = vld [vmem:[%s4308_s6 + $0x68] sm:$0xff]  ;;  %v352_v27 = vld [vmem:[%s4308_s6 + $0x10] sm:$0xff] }
  0x94   :  { %v128_v36 = vadd.f32 %v127_v31, %v126_v32  ;;  %v131_v37 = vsel %vm117_vm1, %v116_v34, 0.0  ;;  %v362_v32 = vld [vmem:[%s4308_s6 + $0x60] sm:$0xff]  ;;  %v364_v34 = vld [vmem:[%s4308_s6 + $0x70] sm:$0xff]  ;;  %418 = vmatpush.msra.mxu2 %v363_v33 }
  0x95   :  { %395 = vmatpush.msra.mxu1 %v362_v32  ;;  %441 = vmatpush.msra.mxu3 %v364_v34  ;;  %v3451_v32 = vld [vmem:[#allocation3 + $0x58] sm:$0xff]  ;;  %v3453_v33 = vld [vmem:[#allocation5 + $0x60] sm:$0xff]  ;;  %v3457_v34 = vld [vmem:[#allocation5 + $0x50] sm:$0xff] }
  0x96   :  { %v130_v38 = vadd.f32 %v129_v35, %v128_v36  ;;  %v365_v35 = vld [vmem:[%s4308_s6 + $0x78] sm:$0xff] }
  0x97   :  { %464 = vmatpush.msrb.mxu0 %v365_v35  ;;  %v3459_v35 = vld [vmem:[#allocation5 + $0x78] sm:$0xff] }
  0x98   :  { %v132_v39 = vadd.f32 %v131_v37, %v130_v38  ;;  %v2820_v37 = vld [vmem:[%s4304_s2] ss:$0 sm:$0xff]  ;;  %v2821_v38 = vld [vmem:[%s4304_s2 + $0x1] ss:$0 sm:$0xff] }
  0x9a   :  { %v133_v40 = vmul.f32 0.0078125, %v132_v39 }
  0x9c   :  { %v3285_v41 = vsub.f32 %v86_v2, %v133_v40  ;;  %v3287_v42 = vsub.f32 %v85_v7, %v133_v40  ;;  %v3289_v43 = vsub.f32 %v84_v1, %v133_v40  ;;  %v3297_v47 = vsub.f32 %v89_v9, %v133_v40 }
  0x9d   :  { %v3302_v51 = vsub.f32 %v88_v3, %v133_v40  ;;  %v3304_v52 = vsub.f32 %v87_v8, %v133_v40  ;;  %v3314_v58 = vsub.f32 %v91_v14, %v133_v40  ;;  %v3317_v60 = vsub.f32 %v90_v13, %v133_v40  ;;  %v2822_v40 = vld [vmem:[%s4304_s2 + $0x2] ss:$0 sm:$0xff] }
  0x9e   :  { %v144_v44 = vmul.f32 %v3285_v41, %v3285_v41  ;;  %v143_v45 = vmul.f32 %v3287_v42, %v3287_v42  ;;  %v142_v46 = vmul.f32 %v3289_v43, %v3289_v43  ;;  %v147_v53 = vmul.f32 %v3297_v47, %v3297_v47 }
  0x9f   :  { %v146_v54 = vmul.f32 %v3302_v51, %v3302_v51  ;;  %v145_v55 = vmul.f32 %v3304_v52, %v3304_v52  ;;  %v149_v61 = vmul.f32 %v3314_v58, %v3314_v58  ;;  %v148_v62 = vmul.f32 %v3317_v60, %v3317_v60 }
  0xa0   :  { %v156_v48 = vsel %vm92_vm0, %v144_v44, 0.0  ;;  %v153_v49 = vsel %vm92_vm0, %v143_v45, 0.0  ;;  %v150_v50 = vsel %vm92_vm0, %v142_v46, 0.0  ;;  %v165_v56 = vsel %vm92_vm0, %v147_v53, 0.0  ;;  %v2823_v44 = vld [vmem:[%s4304_s2 + $0x3] ss:$0 sm:$0xff] }
  0xa1   :  { %157 = vadd.xlane.f32.xlu1 %v156_v48  ;;  %154 = vadd.xlane.f32.xlu0 %v153_v49  ;;  %v162_v57 = vsel %vm92_vm0, %v146_v54, 0.0  ;;  %v159_v59 = vsel %vm92_vm0, %v145_v55, 0.0  ;;  %v171_v63 = vsel %vm92_vm0, %v149_v61, 0.0  ;;  %v168_v0 = vsel %vm92_vm0, %v148_v62, 0.0  ;;  %v2824_v45 = vld [vmem:[%s4304_s2 + $0x4] ss:$0 sm:$0xff] }
  0xa2   :  { %151 = vadd.xlane.f32.xlu2 %v150_v50  ;;  %v2825_v46 = vld [vmem:[%s4304_s2 + $0x5] ss:$0 sm:$0xff]  ;;  %v2826_v48 = vld [vmem:[%s4304_s2 + $0x6] ss:$0 sm:$0xff]  ;;  %v2828_v50 = vld [vmem:[%s4305_s3] ss:$0 sm:$0xff] }
  0xa3   :  { %v2829_v53 = vld [vmem:[%s4305_s3 + $0x1] ss:$0 sm:$0xff]  ;;  %v2830_v54 = vld [vmem:[%s4305_s3 + $0x2] ss:$0 sm:$0xff]  ;;  %v2827_v61 = vld [vmem:[%s4304_s2 + $0x7] ss:$0 sm:$0xff] }
  0xa4   :  { %v2831_v62 = vld [vmem:[%s4305_s3 + $0x3] ss:$0 sm:$0xff] }
  0xa9   :  { %166 = vadd.xlane.f32.xlu1 %v165_v56  ;;  %163 = vadd.xlane.f32.xlu0 %v162_v57 }
  0xaa   :  { %160 = vadd.xlane.f32.xlu2 %v159_v59 }
  0xb1   :  { %172 = vadd.xlane.f32.xlu0 %v171_v63 }
  0xb2   :  { %169 = vadd.xlane.f32.xlu2 %v168_v0 }
 0x114   :  { %v155_v1 = vpop.xlane.xlu0 %154  ;;  %v158_v5 = vpop.xlane.xlu1 %157 }
 0x115   :  { %v152_v2 = vpop.xlane.xlu2 %151  ;;  %v175_v3 = vsel %vm117_vm1, %v155_v1, 0.0  ;;  %v177_v7 = vsel %vm117_vm1, %v158_v5, 0.0 }
 0x116   :  { %v174_v4 = vsel %vm117_vm1, %v152_v2, 0.0 }
 0x117   :  { %v176_v6 = vadd.f32 %v175_v3, %v174_v4  ;;  %v2833_v4 = vld [vmem:[%s4305_s3 + $0x5] ss:$0 sm:$0xff] }
 0x119   :  { %v178_v9 = vadd.f32 %v177_v7, %v176_v6 }
 0x11c   :  { %v164_v8 = vpop.xlane.xlu0 %163  ;;  %v167_v14 = vpop.xlane.xlu1 %166 }
 0x11d   :  { %v161_v10 = vpop.xlane.xlu2 %160  ;;  %v181_v13 = vsel %vm117_vm1, %v164_v8, 0.0  ;;  %v183_v16 = vsel %vm117_vm1, %v167_v14, 0.0  ;;  %v2835_v8 = vld [vmem:[%s4305_s3 + $0x7] ss:$0 sm:$0xff] }
 0x11e   :  { %v179_v11 = vsel %vm117_vm1, %v161_v10, 0.0 }
 0x11f   :  { %v180_v12 = vadd.f32 %v179_v11, %v178_v9 }
 0x121   :  { %v182_v15 = vadd.f32 %v181_v13, %v180_v12 }
 0x123   :  { %v184_v18 = vadd.f32 %v183_v16, %v182_v15 }
 0x124   :  { %v173_v17 = vpop.xlane.xlu0 %172 }
 0x125   :  { %v170_v19 = vpop.xlane.xlu2 %169  ;;  %v187_v22 = vsel %vm117_vm1, %v173_v17, 0.0  ;;  %v358_v17 = vld [vmem:[%s4308_s6 + $0x40] sm:$0xff] }
 0x126   :  { %v185_v20 = vsel %vm117_vm1, %v170_v19, 0.0  ;;  %v360_v19 = vld [vmem:[%s4308_s6 + $0x50] sm:$0xff]  ;;  %396 = vmatpush.msra.mxu1 %v358_v17 }
 0x127   :  { %v186_v21 = vadd.f32 %v185_v20, %v184_v18  ;;  %v359_v18 = vld [vmem:[%s4308_s6 + $0x48] sm:$0xff]  ;;  %v361_v20 = vld [vmem:[%s4308_s6 + $0x58] sm:$0xff]  ;;  %442 = vmatpush.msra.mxu3 %v360_v19 }
 0x128   :  { %419 = vmatpush.msra.mxu2 %v359_v18  ;;  %465 = vmatpush.msrb.mxu0 %v361_v20 }
 0x129   :  { %v188_v23 = vadd.f32 %v187_v22, %v186_v21  ;;  %v354_v21 = vld [vmem:[%s4308_s6 + $0x20] sm:$0xff]  ;;  %v355_v22 = vld [vmem:[%s4308_s6 + $0x28] sm:$0xff] }
 0x12a   :  { %397 = vmatpush.msra.mxu1 %v354_v21  ;;  %420 = vmatpush.msra.mxu2 %v355_v22 }
 0x12b   :  { %v189_v24 = vmul.f32 0.0078125, %v188_v23  ;;  %v356_v23 = vld [vmem:[%s4308_s6 + $0x30] sm:$0xff] }
 0x12c   :  { %443 = vmatpush.msra.mxu3 %v356_v23  ;;  %421 = vmatpush.msra.mxu2 %v351_v26 }
 0x12d   :  { %v190_v25 = vadd.f32 1e-05, %v189_v24  ;;  %v357_v24 = vld [vmem:[%s4308_s6 + $0x38] sm:$0xff] }
 0x12e   :  { %466 = vmatpush.msrb.mxu0 %v357_v24  ;;  %444 = vmatpush.msra.mxu3 %v352_v27 }
 0x12f   :  { %2839 = vrsqrt.f32 %v190_v25  ;;  %vm197_vm3 = vweird.f32 %v190_v25 }
 0x135   :  { %v2840_v28 = vpop.eup %2839 }
 0x136   :  { %v192_v29 = vmul.f32 %v2840_v28, %v190_v25  ;;  %vm198_vm2 = vweird.f32 %v2840_v28  ;;  %v350_v25 = vld [vmem:[%s4308_s6] sm:$0xff] }
 0x137   :  { %vm199_vm4 = vmor %vm197_vm3, %vm198_vm2  ;;  %398 = vmatpush.msra.mxu1 %v350_v25 }
 0x138   :  { %v193_v30 = vmul.f32 %v2840_v28, %v192_v29  ;;  %v3443_v29 = vld [vmem:[#allocation3 + $0x78] sm:$0xff] }
 0x139   :  { %604 = vmatpush.msrb.mxu2 %v3443_v29 }
 0x13a   :  { %v194_v31 = vmul.f32 0.5, %v193_v30  ;;  %v3445_v30 = vld [vmem:[#allocation5 + $0x70] sm:$0xff] }
 0x13b   :  { %632 = vmatpush.msrb.mxu3 %v3445_v30 }
 0x13c   :  { %v195_v36 = vsub.f32 1.5, %v194_v31  ;;  %v3447_v31 = vld [vmem:[#allocation3 + $0x68] sm:$0xff] }
 0x13d   :  { %605 = vmatpush.msrb.mxu2 %v3447_v31  ;;  %633 = vmatpush.msrb.mxu3 %v3453_v33 }
 0x13e   :  { %v196_v39 = vmul.f32 %v2840_v28, %v195_v36  ;;  %v3461_v36 = vld [vmem:[#allocation3 + $0x48] sm:$0xff] }
 0x13f   :  { %606 = vmatpush.msrb.mxu2 %v3451_v32  ;;  %634 = vmatpush.msrb.mxu3 %v3457_v34 }
 0x140   :  { %v200_v49 = vsel %vm199_vm4, %v2840_v28, %v196_v39  ;;  %v353_v28 = vld [vmem:[%s4308_s6 + $0x18] sm:$0xff]  ;;  %v3471_v39 = vld [vmem:[#allocation3 + $0x38] sm:$0xff] }
 0x141   :  { %v201_v55 = vmul.f32 %v200_v49, %v3289_v43  ;;  %v202_v56 = vmul.f32 %v200_v49, %v3287_v42  ;;  %v203_v57 = vmul.f32 %v200_v49, %v3285_v41  ;;  %v204_v59 = vmul.f32 %v200_v49, %v3304_v52  ;;  %v2832_v41 = vld [vmem:[%s4305_s3 + $0x4] ss:$0 sm:$0xff]  ;;  %467 = vmatpush.msrb.mxu0 %v353_v28 }
 0x142   :  { %v205_v63 = vmul.f32 %v200_v49, %v3302_v51  ;;  %v206_v0 = vmul.f32 %v200_v49, %v3297_v47  ;;  %v207_v43 = vmul.f32 %v200_v49, %v3317_v60  ;;  %v208_v42 = vmul.f32 %v200_v49, %v3314_v58  ;;  %v2834_v47 = vld [vmem:[%s4305_s3 + $0x6] ss:$0 sm:$0xff]  ;;  %607 = vmatpush.msrb.mxu2 %v3461_v36  ;;  %v3487_v49 = vld [vmem:[#allocation3 + $0x28] sm:$0xff] }
 0x143   :  { %v241_v52 = vmul.f32 %v2820_v37, %v201_v55  ;;  %v242_v1 = vmul.f32 %v2821_v38, %v202_v56  ;;  %v243_v2 = vmul.f32 %v2822_v40, %v203_v57  ;;  %v244_v3 = vmul.f32 %v2823_v44, %v204_v59  ;;  %v3466_v37 = vld [vmem:[#allocation3 + $0x70] sm:$0xff]  ;;  %v3468_v38 = vld [vmem:[#allocation5 + $0x40] sm:$0xff]  ;;  %v3473_v40 = vld [vmem:[#allocation5 + $0x68] sm:$0xff] }
 0x144   :  { %v245_v5 = vmul.f32 %v2824_v45, %v205_v63  ;;  %v246_v51 = vmul.f32 %v2825_v46, %v206_v0  ;;  %v247_v60 = vmul.f32 %v2826_v48, %v207_v43  ;;  %v248_v9 = vmul.f32 %v2827_v61, %v208_v42  ;;  %584 = vmatpush.msrb.mxu1 %v3466_v37  ;;  %v3475_v44 = vld [vmem:[#allocation3 + $0x60] sm:$0xff]  ;;  %v3479_v45 = vld [vmem:[#allocation5 + $0x30] sm:$0xff]  ;;  %v3481_v46 = vld [vmem:[#allocation5 + $0x58] sm:$0xff] }
 0x145   :  { %v281_v58 = vadd.f32 %v2828_v50, %v241_v52  ;;  %v282_v6 = vadd.f32 %v2829_v53, %v242_v1  ;;  %v283_v7 = vadd.f32 %v2830_v54, %v243_v2  ;;  %v284_v10 = vadd.f32 %v2831_v62, %v244_v3  ;;  %635 = vmatpush.msrb.mxu3 %v3468_v38  ;;  %v3483_v48 = vld [vmem:[#allocation3 + $0x50] sm:$0xff]  ;;  %v3489_v50 = vld [vmem:[#allocation5 + $0x20] sm:$0xff]  ;;  %v3493_v53 = vld [vmem:[#allocation5 + $0x48] sm:$0xff] }
 0x146   :  { %v285_v11 = vadd.f32 %v2832_v41, %v245_v5  ;;  %v286_v12 = vadd.f32 %v2833_v4, %v246_v51  ;;  %v287_v13 = vadd.f32 %v2834_v47, %v247_v60  ;;  %v288_v14 = vadd.f32 %v2835_v8, %v248_v9  ;;  %585 = vmatpush.msrb.mxu1 %v3475_v44  ;;  %v3495_v54 = vld [vmem:[#allocation3 + $0x40] sm:$0xff]  ;;  %v3499_v55 = vld [vmem:[#allocation3 + $0x18] sm:$0xff]  ;;  %v3501_v56 = vld [vmem:[#allocation5 + $0x10] sm:$0xff] }
 0x147   :  { %303 = vst [vmem:[#allocation1] ss:$4 sm:$0xff] %v281_v58  ;;  %608 = vmatpush.msrb.mxu2 %v3471_v39  ;;  %636 = vmatpush.msrb.mxu3 %v3479_v45  ;;  %v3505_v57 = vld [vmem:[#allocation5 + $0x38] sm:$0xff]  ;;  %v3507_v59 = vld [vmem:[#allocation3 + $0x30] sm:$0xff]  ;;  %v3511_v61 = vld [vmem:[#allocation3 + $0x8] sm:$0xff]  ;;  %v3153_v60 = vmov 0.0  }
 0x148   :  { %305 = vst [vmem:[#allocation1 + $0x1] ss:$4 sm:$0xff] %v282_v6  ;;  %586 = vmatpush.msrb.mxu1 %v3483_v48  ;;  %v3513_v62 = vld [vmem:[#allocation5] sm:$0xff]  ;;  %v3517_v63 = vld [vmem:[#allocation5 + $0x28] sm:$0xff]  ;;  %v3525_v43 = vld [vmem:[#allocation5 + $0x18] sm:$0xff] }
 0x149   :  { %307 = vst [vmem:[#allocation1 + $0x2] ss:$4 sm:$0xff] %v283_v7  ;;  %609 = vmatpush.msrb.mxu2 %v3487_v49  ;;  %637 = vmatpush.msrb.mxu3 %v3489_v50  ;;  %v3519_v0 = vld [vmem:[#allocation3 + $0x20] sm:$0xff]  ;;  %v3527_v42 = vld [vmem:[#allocation3 + $0x10] sm:$0xff]  ;;  %v3531_v41 = vld [vmem:[#allocation5 + $0x8] sm:$0xff] }
 0x14a   :  { %309 = vst [vmem:[#allocation1 + $0x3] ss:$4 sm:$0xff] %v284_v10  ;;  %587 = vmatpush.msrb.mxu1 %v3495_v54  ;;  %v3533_v52 = vld [vmem:[#allocation3] sm:$0xff]  ;;  %v2836_v1 = vld [vmem:[%s4307_s5] ss:$0 sm:$0xff] }
 0x14b   :  { %311 = vst [vmem:[#allocation1 + $0x20] ss:$4 sm:$0xff] %v285_v11  ;;  %610 = vmatpush.msrb.mxu2 %v3499_v55  ;;  %638 = vmatpush.msrb.mxu3 %v3501_v56  ;;  %v366_v58 = vld [vmem:[%s4309_s7] sm:$0xf]  ;;  %s3154_s7 = smov 64  }
 0x14c   :  { %313 = vst [vmem:[#allocation1 + $0x21] ss:$4 sm:$0xff] %v286_v12  ;;  %588 = vmatpush.msrb.mxu1 %v3507_v59  ;;  %v371_v7 = vperm.slane %v366_v58, 3  ;;  %v369_v8 = vperm.slane %v366_v58, 1  ;;  %v370_v10 = vperm.slane %v366_v58, 2  ;;  %v368_v11 = vperm.slane %v366_v58, 0 }
 0x14d   :  { %315 = vst [vmem:[#allocation1 + $0x22] ss:$4 sm:$0xff] %v287_v13  ;;  %611 = vmatpush.msrb.mxu2 %v3511_v61  ;;  %639 = vmatpush.msrb.mxu3 %v3513_v62 }
 0x14e   :  { %317 = vst [vmem:[#allocation1 + $0x23] ss:$4 sm:$0xff] %v288_v14  ;;  %589 = vmatpush.msrb.mxu1 %v3519_v0 }
 0x150   :  { %590 = vmatpush.msrb.mxu1 %v3527_v42 }
 0x151   :  { %v318_v15 = vld.sshfl [vmem:[#allocation1] sm:$0xff pattern:$0x73625140] }
 0x152   :  { %2737 = vmatmul.msk.f32.vlgmr.msra.gmra.mxu0 %vm320_vm5, %v318_v15  ;;  %591 = vmatpush.msrb.mxu1 %v3533_v52 }
 0x153   :  { %652 = vmatpush.msra.mxu0 %v3459_v35 }
 0x155   :  { %v319_v16 = vld.sshfl [vmem:[#allocation1 + $0x20] sm:$0xff pattern:$0x73625140]  ;;  %653 = vmatpush.msra.mxu0 %v3473_v40 }
 0x157   :  { %654 = vmatpush.msra.mxu0 %v3481_v46 }
 0x159   :  { %655 = vmatpush.msra.mxu0 %v3493_v53 }
 0x15a   :  { %2738 = vmatmul.msk.f32.gmra.mxu0 %vm320_vm5, %v319_v16 }
 0x15b   :  { %656 = vmatpush.msra.mxu0 %v3505_v57 }
 0x15d   :  { %657 = vmatpush.msra.mxu0 %v3517_v63 }
 0x15f   :  { %658 = vmatpush.msra.mxu0 %v3525_v43 }
 0x161   :  { %659 = vmatpush.msra.mxu0 %v3531_v41 }
 0x1cf   :  { %v342_v2 = vpop.f32.mrf.mxu0 }
 0x1d0   :  { %v343_v3 = vadd.f32 %v2836_v1, %v342_v2 }
 0x1d2   :  { %v348_v4 = vmax.f32 %v343_v3, 0.0 }
 0x1d4   :  { %2739 = vmatmul.msk.f32.vlgmr.msra.gmra.mxu1 %vm376_vm6, %v348_v4  ;;  %2741 = vmatmul.msk.f32.vlgmr.msra.gmra.mxu2 %vm376_vm6, %v348_v4 }
 0x1d5   :  { %2743 = vmatmul.msk.f32.vlgmr.msra.gmra.mxu3 %vm376_vm6, %v348_v4  ;;  %2745 = vmatmul.msk.f32.vlgmr.msrb.gmra.mxu0 %vm376_vm6, %v348_v4 }
 0x1d6   :  { %843 = vmatpush.msra.mxu1 %v3466_v37  ;;  %863 = vmatpush.msra.mxu2 %v3443_v29 }
 0x1d7   :  { %v345_v5 = vpop.f32.mrf.mxu0  ;;  %894 = vmatpush.msra.mxu3 %v3445_v30  ;;  %914 = vmatpush.msrb.mxu0 %v3459_v35 }
 0x1d8   :  { %v346_v51 = vadd.f32 %v2836_v1, %v345_v5  ;;  %844 = vmatpush.msra.mxu1 %v3475_v44  ;;  %864 = vmatpush.msra.mxu2 %v3447_v31 }
 0x1d9   :  { %895 = vmatpush.msra.mxu3 %v3453_v33  ;;  %915 = vmatpush.msrb.mxu0 %v3473_v40 }
 0x1da   :  { %v349_v47 = vmax.f32 %v346_v51, 0.0  ;;  %845 = vmatpush.msra.mxu1 %v3483_v48  ;;  %865 = vmatpush.msra.mxu2 %v3451_v32 }
 0x1db   :  { %896 = vmatpush.msra.mxu3 %v3457_v34  ;;  %916 = vmatpush.msrb.mxu0 %v3481_v46 }
 0x1dc   :  { %2740 = vmatmul.msk.f32.gmra.mxu1 %vm376_vm6, %v349_v47  ;;  %2742 = vmatmul.msk.f32.gmra.mxu2 %vm376_vm6, %v349_v47 }
 0x1dd   :  { %2744 = vmatmul.msk.f32.gmra.mxu3 %vm376_vm6, %v349_v47  ;;  %2746 = vmatmul.msk.f32.gmra.mxu0 %vm376_vm6, %v349_v47 }
 0x1de   :  { %846 = vmatpush.msra.mxu1 %v3495_v54  ;;  %866 = vmatpush.msra.mxu2 %v3461_v36 }
 0x1df   :  { %897 = vmatpush.msra.mxu3 %v3468_v38  ;;  %917 = vmatpush.msrb.mxu0 %v3493_v53 }
 0x1e0   :  { %847 = vmatpush.msra.mxu1 %v3507_v59  ;;  %867 = vmatpush.msra.mxu2 %v3471_v39 }
 0x1e1   :  { %898 = vmatpush.msra.mxu3 %v3479_v45  ;;  %918 = vmatpush.msrb.mxu0 %v3505_v57 }
 0x1e2   :  { %848 = vmatpush.msra.mxu1 %v3519_v0  ;;  %868 = vmatpush.msra.mxu2 %v3487_v49 }
 0x1e3   :  { %899 = vmatpush.msra.mxu3 %v3489_v50  ;;  %919 = vmatpush.msrb.mxu0 %v3517_v63 }
 0x1e4   :  { %612 = vmatmul.f32.vlgmr.msrb.gmra.mxu2 %v3153_v60  ;;  %592 = vmatmul.f32.vlgmr.msrb.gmra.mxu1 %v3153_v60 }
 0x1e5   :  { %640 = vmatmul.f32.vlgmr.msrb.gmra.mxu3 %v3153_v60  ;;  %660 = vmatmul.f32.vlgmr.msra.gmra.mxu0 %v3153_v60 }
 0x1e6   :  { %849 = vmatpush.msra.mxu1 %v3527_v42  ;;  %869 = vmatpush.msra.mxu2 %v3499_v55 }
 0x1e7   :  { %900 = vmatpush.msra.mxu3 %v3501_v56  ;;  %920 = vmatpush.msrb.mxu0 %v3525_v43 }
 0x1e8   :  { %850 = vmatpush.msra.mxu1 %v3533_v52  ;;  %870 = vmatpush.msra.mxu2 %v3511_v61 }
 0x1e9   :  { %901 = vmatpush.msra.mxu3 %v3513_v62  ;;  %921 = vmatpush.msrb.mxu0 %v3531_v41 }
 0x1ea   :  { %1115 = vmatpush.msrb.mxu1 %v3466_v37  ;;  %1135 = vmatpush.msrb.mxu2 %v3443_v29 }
 0x1eb   :  { %1166 = vmatpush.msrb.mxu3 %v3445_v30  ;;  %1186 = vmatpush.msra.mxu0 %v3459_v35 }
 0x1ec   :  { %1116 = vmatpush.msrb.mxu1 %v3475_v44  ;;  %1136 = vmatpush.msrb.mxu2 %v3447_v31 }
 0x1ed   :  { %1167 = vmatpush.msrb.mxu3 %v3453_v33  ;;  %1187 = vmatpush.msra.mxu0 %v3473_v40 }
 0x1ee   :  { %1117 = vmatpush.msrb.mxu1 %v3483_v48  ;;  %1137 = vmatpush.msrb.mxu2 %v3451_v32 }
 0x1ef   :  { %1168 = vmatpush.msrb.mxu3 %v3457_v34  ;;  %1188 = vmatpush.msra.mxu0 %v3481_v46 }
 0x1f0   :  { %1118 = vmatpush.msrb.mxu1 %v3495_v54  ;;  %1138 = vmatpush.msrb.mxu2 %v3461_v36 }
 0x1f1   :  { %1169 = vmatpush.msrb.mxu3 %v3468_v38  ;;  %1189 = vmatpush.msra.mxu0 %v3493_v53 }
 0x1f2   :  { %1119 = vmatpush.msrb.mxu1 %v3507_v59  ;;  %1139 = vmatpush.msrb.mxu2 %v3471_v39 }
 0x1f3   :  { %1170 = vmatpush.msrb.mxu3 %v3479_v45  ;;  %1190 = vmatpush.msra.mxu0 %v3505_v57 }
 0x1f4   :  { %1120 = vmatpush.msrb.mxu1 %v3519_v0  ;;  %1140 = vmatpush.msrb.mxu2 %v3487_v49 }
 0x1f5   :  { %1171 = vmatpush.msrb.mxu3 %v3489_v50  ;;  %1191 = vmatpush.msra.mxu0 %v3517_v63 }
 0x1f6   :  { %1121 = vmatpush.msrb.mxu1 %v3527_v42  ;;  %1141 = vmatpush.msrb.mxu2 %v3499_v55 }
 0x1f7   :  { %1172 = vmatpush.msrb.mxu3 %v3501_v56  ;;  %1192 = vmatpush.msra.mxu0 %v3525_v43 }
 0x1f8   :  { %1122 = vmatpush.msrb.mxu1 %v3533_v52  ;;  %1142 = vmatpush.msrb.mxu2 %v3511_v61 }
 0x1f9   :  { %1173 = vmatpush.msrb.mxu3 %v3513_v62  ;;  %1193 = vmatpush.msra.mxu0 %v3531_v41 }
 0x251   :  { %v400_v9 = vpop.f32.mrf.mxu1 }
 0x252   :  { %v469_v6 = vpop.f32.mrf.mxu0  ;;  %v401_v17 = vadd.f32 %v400_v9, %v368_v11 }
 0x253   :  { %v470_v12 = vadd.f32 %v469_v6, %v371_v7 }
 0x255   :  { %v485_v20 = vrot.slane %v470_v12, 2 }
 0x257   :  { %v423_v13 = vpop.f32.mrf.mxu2 }
 0x258   :  { %v424_v14 = vadd.f32 %v423_v13, %v369_v8  ;;  %v446_v15 = vpop.f32.mrf.mxu3 }
 0x259   :  { %v447_v16 = vadd.f32 %v446_v15, %v370_v10  ;;  %v403_v3 = vpop.f32.mrf.mxu1 }
 0x25a   :  { %v483_v18 = vrot.slane %v424_v14, 6  ;;  %v472_v19 = vpop.f32.mrf.mxu0  ;;  %v404_v58 = vadd.f32 %v403_v3, %v368_v11 }
 0x25b   :  { %v484_v21 = vrot.slane %v447_v16, 4  ;;  %v473_v4 = vadd.f32 %v472_v19, %v371_v7 }
 0x25c   :  { %v495_v22 = vsel %vm494_vm8, %v401_v17, %v483_v18  ;;  %v501_v23 = vsel %vm490_vm7, %v401_v17, %v483_v18  ;;  %v505_v24 = vsel %vm496_vm9, %v483_v18, %v401_v17 }
 0x25d   :  { %v497_v25 = vsel %vm496_vm9, %v485_v20, %v484_v21  ;;  %v502_v26 = vsel %vm117_vm1, %v484_v21, %v485_v20  ;;  %v506_v27 = vsel %vm494_vm8, %v484_v21, %v485_v20  ;;  %v488_v12 = vrot.slane %v473_v4, 2 }
 0x25e   :  { %v3624_v28 = vsel %vm498_vm10, %v495_v22, %v497_v25  ;;  %v3627_v1 = vsel %vm492_vm11, %v502_v26, %v501_v23  ;;  %v3630_v2 = vsel %vm498_vm10, %v506_v27, %v505_v24  ;;  %v489_v4 = vsel %vm117_vm1, %v401_v17, %v483_v18 }
 0x25f   :  { %4348 = vst [vmem:[#allocation9_spill] sm:$0xff] %v3624_v28  ;;  %v426_v5 = vpop.f32.mrf.mxu2 }
 0x260   :  { %v427_v51 = vadd.f32 %v426_v5, %v369_v8  ;;  %v449_v47 = vpop.f32.mrf.mxu3  ;;  %v491_v5 = vsel %vm490_vm7, %v484_v21, %v485_v20 }
 0x261   :  { %v450_v60 = vadd.f32 %v449_v47, %v370_v10 }
 0x262   :  { %v486_v6 = vrot.slane %v427_v51, 6  ;;  %v661_v9 = vpop.f32.mrf.mxu0  ;;  %v593_v51 = vpop.f32.mrf.mxu1 }
 0x263   :  { %v487_v13 = vrot.slane %v450_v60, 4  ;;  %v666_v14 = vrot.slane %v661_v9, 6  ;;  %v3659_v9 = vsel %vm492_vm11, %v489_v4, %v491_v5 }
 0x264   :  { %v512_v15 = vsel %vm494_vm8, %v404_v58, %v486_v6  ;;  %v516_v16 = vsel %vm490_vm7, %v404_v58, %v486_v6  ;;  %v520_v22 = vsel %vm496_vm9, %v486_v6, %v404_v58  ;;  %v509_v23 = vsel %vm117_vm1, %v404_v58, %v486_v6  ;;  %4351 = vst [vmem:[#allocation12_spill] sm:$0xff] %v3659_v9 }
 0x265   :  { %v513_v7 = vsel %vm496_vm9, %v488_v12, %v487_v13  ;;  %v517_v8 = vsel %vm117_vm1, %v487_v13, %v488_v12  ;;  %v521_v10 = vsel %vm494_vm8, %v487_v13, %v488_v12  ;;  %v510_v11 = vsel %vm490_vm7, %v487_v13, %v488_v12 }
 0x266   :  { %v3641_v19 = vsel %vm498_vm10, %v521_v10, %v520_v22  ;;  %v3644_v24 = vsel %vm492_vm11, %v517_v8, %v516_v16  ;;  %v3647_v25 = vsel %vm498_vm10, %v512_v15, %v513_v7  ;;  %v3650_v26 = vsel %vm492_vm11, %v509_v23, %v510_v11 }
 0x267   :  { %4349 = vst [vmem:[#allocation10_spill] sm:$0xff] %v3641_v19  ;;  %v613_v27 = vpop.f32.mrf.mxu2  ;;  %v4318_v3 = vrot.slane %v3641_v19, 6  ;;  %vm572_vm10 = vcmask 523264  }
 0x268   :  { %4350 = vst [vmem:[#allocation11_spill] sm:$0xff] %v3644_v24  ;;  %v618_v47 = vrot.slane %v613_v27, 6  ;;  %v641_v60 = vpop.f32.mrf.mxu3 }
 0x269   :  { %v622_v58 = vrot.slane %v4318_v3, 4  ;;  %v667_v6 = vsel %vm117_vm1, %v641_v60, %v666_v14 }
 0x26a   :  { %v619_v12 = vsel %vm117_vm1, %v593_v51, %v618_v47 }
 0x26b   :  { %v669_v13 = vadd.f32 %v667_v6, %v622_v58  ;;  %v621_v15 = vadd.f32 %v619_v12, %v3659_v9 }
 0x26d   :  { %v2749_v16 = vmul.f32 -1.442695, %v669_v13  ;;  %v2747_v17 = vmul.f32 -1.442695, %v621_v15  ;;  %693 = vrot.lane.b32.xlu0 %v621_v15, %s3154_s7  ;;  %v749_v23 = vrot.slane %v669_v13, 2  ;;  %v690_v10 = vrot.slane %v621_v15, 2 }
 0x26f   :  { %2841 = vpow2.f32 %v2749_v16 }
 0x270   :  { %2843 = vpow2.f32 %v2747_v17 }
 0x275   :  { %v2842_v18 = vpop.eup %2841 }
 0x276   :  { %v732_v20 = vadd.f32 1.0, %v2842_v18  ;;  %v2844_v21 = vpop.eup %2843 }
 0x277   :  { %v673_v14 = vadd.f32 1.0, %v2844_v21 }
 0x278   :  { %2845 = vrcp.f32 %v732_v20  ;;  %v744_v4 = vand.u32 2147483648, %v732_v20  ;;  %v742_v51 = vand.u32 2147483647, %v732_v20  ;;  %vm738_vm13 = vweird.f32 %v732_v20 }
 0x279   :  { %2847 = vrcp.f32 %v673_v14  ;;  %v685_v60 = vand.u32 2147483648, %v673_v14  ;;  %v683_v12 = vand.u32 2147483647, %v673_v14  ;;  %vm679_vm2 = vweird.f32 %v673_v14 }
 0x27a   :  { %2849 = vtanh.f32 %v749_v23  ;;  %v745_v16 = vor.u32 1.1754944e-38, %v744_v4  ;;  %vm743_vm0 = vcmp.eq.f32.partialorder %v742_v51, 8.507059e+37  ;;  %v3155_v4 = vmov 0  }
 0x27b   :  { %2851 = vtanh.f32 %v690_v10  ;;  %v686_v23 = vor.u32 1.1754944e-38, %v685_v60  ;;  %vm684_vm4 = vcmp.eq.f32.partialorder %v683_v12, 8.507059e+37  ;;  %2818 = vset.pattern.permute.xlu2 %v3155_v4  ;;  %2817 = vset.pattern.permute.xlu0 %v3155_v4 }
 0x27c   :  { %2819 = vset.pattern.permute.xlu1 %v3155_v4 }
 0x27e   :  { %v2846_v22 = vpop.eup %2845 }
 0x27f   :  { %v734_v7 = vmul.f32 %v2846_v22, %v732_v20  ;;  %v2848_v8 = vpop.eup %2847  ;;  %vm739_vm12 = vweird.f32 %v2846_v22 }
 0x280   :  { %v675_v27 = vmul.f32 %v2848_v8, %v673_v14  ;;  %vm680_vm14 = vweird.f32 %v2848_v8  ;;  %vm740_vm15 = vmor %vm738_vm13, %vm739_vm12  ;;  %v2850_v18 = vpop.eup %2849  ;;  %v532_v14 = vld [vmem:[%s4303_s1] sm:$0x3] }
 0x281   :  { %v735_v11 = vsub.f32 1.0, %v734_v7  ;;  %vm681_vm3 = vmor %vm679_vm2, %vm680_vm14  ;;  %v2852_v10 = vpop.eup %2851  ;;  %790 = vperm.xlu0 %2817, %v532_v14  }
 0x282   :  { %v676_v47 = vsub.f32 1.0, %v675_v27 }
 0x283   :  { %v736_v5 = vmul.f32 %v2846_v22, %v735_v11 }
 0x284   :  { %v677_v6 = vmul.f32 %v2848_v8, %v676_v47 }
 0x285   :  { %v737_v58 = vadd.f32 %v2846_v22, %v736_v5 }
 0x286   :  { %v678_v15 = vadd.f32 %v2848_v8, %v677_v6 }
 0x287   :  { %v741_v17 = vsel %vm740_vm15, %v2846_v22, %v737_v58  ;;  %v794_v22 = vsub.f32 1.0, %v532_v14 }
 0x288   :  { %v746_v21 = vsel %vm743_vm0, %v745_v16, %v741_v17  ;;  %v682_v11 = vsel %vm681_vm3, %v2848_v8, %v678_v15  ;;  %v539_v8 = vld [vmem:[%s4303_s1 + $0xe] sm:$0x3] }
 0x289   :  { %v776_v7 = vmul.f32 %v2850_v18, %v746_v21  ;;  %v687_v20 = vsel %vm684_vm4, %v686_v23, %v682_v11  ;;  %v775_v60 = vmul.f32 0.0, %v746_v21  ;;  %v816_v15 = vsub.f32 1.0, %v539_v8 }
 0x28a   :  { %v717_v27 = vmul.f32 %v2852_v10, %v687_v20  ;;  %v716_v5 = vmul.f32 0.0, %v687_v20 }
 0x28b   :  { %778 = vrot.lane.b32.xlu2 %v776_v7, %s3154_s7 }
 0x28c   :  { %719 = vrot.lane.b32.xlu1 %v717_v27, %s3154_s7 }
 0x293   :  { %752 = vrot.lane.b32.xlu2 %v669_v13, %s3154_s7 }
 0x29b   :  { %797 = vperm.xlu2 %2818, %v794_v22  }
 0x2a3   :  { %812 = vperm.xlu2 %2818, %v539_v8  }
 0x2df   :  { %v694_v18 = vpop.permute.xlu0 %693 }
 0x2e0   :  { %v695_v23 = vrot.slane %v694_v18, 2 }
 0x2e2   :  { %v2748_v21 = vmul.f32 -1.442695, %v695_v23 }
 0x2e5   :  { %v779_v13 = vpop.permute.xlu2 %778 }
 0x2e6   :  { %v781_v58 = vadd.f32 %v779_v13, %v775_v60 }
 0x2ed   :  { %v753_v7 = vpop.permute.xlu2 %752 }
 0x2ee   :  { %v754_v11 = vrot.slane %v753_v7, 2 }
 0x2f0   :  { %v2750_v20 = vmul.f32 -1.442695, %v754_v11 }
 0x2f3   :  { %v3677_v13 = vpop.permute.xlu0 %790 }
 0x2f4   :  { %4352 = vst [vmem:[#allocation13_spill] sm:$0xff] %v3677_v13 }
 0x2fe   :  { %v720_v51 = vpop.permute.xlu1 %719 }
 0x2ff   :  { %v722_v47 = vadd.f32 %v720_v51, %v716_v5 }
 0x301   :  { %2853 = vtanh.f32 %v722_v47  ;;  %803 = vst [vmem:[#allocation1] ss:$4 sm:$0xff] %v722_v47 }
 0x302   :  { %2855 = vtanh.f32 %v781_v58 }
 0x303   :  { %2857 = vpow2.f32 %v2748_v21 }
 0x304   :  { %2859 = vpow2.f32 %v2750_v20 }
 0x307   :  { %v2854_v6 = vpop.eup %2853 }
 0x308   :  { %v804_v12 = vld.sshfl [vmem:[#allocation1] sm:$0xff pattern:$0x73625140]  ;;  %725 = vrot.lane.b32.xlu1 %v2854_v6, %s3154_s7  ;;  %v2856_v16 = vpop.eup %2855  ;;  %v3679_v6 = vpop.permute.xlu2 %797 }
 0x309   :  { %825 = vst [vmem:[#allocation1] ss:$4 sm:$0xff] %v781_v58  ;;  %805 = vrot.lane.b32.xlu0 %v804_v12, %s3154_s7  ;;  %v2858_v10 = vpop.eup %2857  ;;  %v800_v23 = vmul.f32 0.0, %v3679_v6 }
 0x30a   :  { %v700_v27 = vadd.f32 1.0, %v2858_v10  ;;  %v2860_v14 = vpop.eup %2859  ;;  %4353 = vst [vmem:[#allocation14_spill] sm:$0xff] %v3679_v6 }
 0x30b   :  { %v759_v4 = vadd.f32 1.0, %v2860_v14 }
 0x30c   :  { %2861 = vrcp.f32 %v700_v27  ;;  %v712_v12 = vand.u32 2147483648, %v700_v27  ;;  %vm706_vm7 = vweird.f32 %v700_v27 }
 0x30d   :  { %2863 = vrcp.f32 %v759_v4  ;;  %vm765_vm12 = vweird.f32 %v759_v4 }
 0x30e   :  { %v713_v18 = vor.u32 1.1754944e-38, %v712_v12 }
 0x310   :  { %784 = vrot.lane.b32.xlu1 %v2856_v16, %s3154_s7  ;;  %v826_v17 = vld.sshfl [vmem:[#allocation1] sm:$0xff pattern:$0x73625140]  ;;  %v710_v16 = vand.u32 2147483647, %v700_v27 }
 0x311   :  { %827 = vrot.lane.b32.xlu2 %v826_v17, %s3154_s7 }
 0x312   :  { %v2862_v22 = vpop.eup %2861  ;;  %vm711_vm9 = vcmp.eq.f32.partialorder %v710_v16, 8.507059e+37 }
 0x313   :  { %v702_v5 = vmul.f32 %v2862_v22, %v700_v27  ;;  %v2864_v8 = vpop.eup %2863  ;;  %vm707_vm5 = vweird.f32 %v2862_v22 }
 0x314   :  { %v761_v58 = vmul.f32 %v2864_v8, %v759_v4  ;;  %vm708_vm8 = vmor %vm706_vm7, %vm707_vm5  ;;  %vm766_vm11 = vweird.f32 %v2864_v8 }
 0x315   :  { %v703_v51 = vsub.f32 1.0, %v702_v5  ;;  %vm767_vm13 = vmor %vm765_vm12, %vm766_vm11 }
 0x317   :  { %v704_v47 = vmul.f32 %v2862_v22, %v703_v51  ;;  %v3684_v51 = vpop.permute.xlu2 %812 }
 0x318   :  { %819 = vperm.xlu1 %2819, %v816_v15   ;;  %v762_v15 = vsub.f32 1.0, %v761_v58  ;;  %4354 = vst [vmem:[#allocation15_spill] sm:$0xff] %v3684_v51  ;;  %v769_v58 = vand.u32 2147483647, %v759_v4 }
 0x319   :  { %v705_v60 = vadd.f32 %v2862_v22, %v704_v47 }
 0x31a   :  { %v763_v20 = vmul.f32 %v2864_v8, %v762_v15  ;;  %vm770_vm14 = vcmp.eq.f32.partialorder %v769_v58, 8.507059e+37 }
 0x31b   :  { %v709_v17 = vsel %vm708_vm8, %v2862_v22, %v705_v60  ;;  %v771_v60 = vand.u32 2147483648, %v759_v4 }
 0x31c   :  { %v714_v21 = vsel %vm711_vm9, %v713_v18, %v709_v17  ;;  %v764_v22 = vadd.f32 %v2864_v8, %v763_v20 }
 0x31d   :  { %v772_v17 = vor.u32 1.1754944e-38, %v771_v60 }
 0x31e   :  { %v768_v16 = vsel %vm767_vm13, %v2864_v8, %v764_v22 }
 0x31f   :  { %v773_v15 = vsel %vm770_vm14, %v772_v17, %v768_v16 }
 0x36b   :  { %v828_v4 = vpop.permute.xlu2 %827 }
 0x37a   :  { %v726_v7 = vpop.permute.xlu1 %725 }
 0x37b   :  { %v728_v11 = vmul.f32 %v726_v7, %v714_v21  ;;  %v806_v10 = vpop.permute.xlu0 %805 }
 0x37c   :  { %v808_v14 = vmul.f32 %v806_v10, %v3677_v13 }
 0x37d   :  { %v793_v5 = vmul.f32 %v3677_v13, %v728_v11 }
 0x37e   :  { %v3686_v47 = vadd.f32 %v808_v14, %v800_v23 }
 0x37f   :  { %v3688_v27 = vadd.f32 %v800_v23, %v793_v5 }
 0x380   :  { %979 = vrot.lane.b32.xlu1 %v3686_v47, %s3154_s7 }
 0x381   :  { %2751 = vmatmul.msk.f32.vlgmr.msra.gmra.mxu1 %vm572_vm10, %v3688_v27  ;;  %2752 = vmatmul.msk.f32.vlgmr.msra.gmra.mxu2 %vm572_vm10, %v3688_v27 }
 0x382   :  { %v785_v12 = vpop.permute.xlu1 %784  ;;  %1387 = vmatpush.msra.mxu1 %v3466_v37  ;;  %1407 = vmatpush.msra.mxu2 %v3443_v29  ;;  %v830_v29 = vmul.f32 %v828_v4, %v3684_v51 }
 0x383   :  { %v787_v18 = vmul.f32 %v785_v12, %v773_v15 }
 0x384   :  { %1388 = vmatpush.msra.mxu1 %v3475_v44  ;;  %1408 = vmatpush.msra.mxu2 %v3447_v31 }
 0x385   :  { %v815_v31 = vmul.f32 %v3684_v51, %v787_v18 }
 0x386   :  { %1389 = vmatpush.msra.mxu1 %v3483_v48  ;;  %1409 = vmatpush.msra.mxu2 %v3451_v32 }
 0x388   :  { %1390 = vmatpush.msra.mxu1 %v3495_v54  ;;  %1410 = vmatpush.msra.mxu2 %v3461_v36 }
 0x38a   :  { %v3704_v37 = vpop.permute.xlu1 %819  ;;  %1391 = vmatpush.msra.mxu1 %v3507_v59  ;;  %1411 = vmatpush.msra.mxu2 %v3471_v39  ;;  %v533_v59 = vld [vmem:[%s4303_s1 + $0x2] sm:$0x3] }
 0x38b   :  { %4355 = vst [vmem:[#allocation16_spill] sm:$0xff] %v3704_v37  ;;  %v822_v44 = vmul.f32 0.0, %v3704_v37 }
 0x38c   :  { %1392 = vmatpush.msra.mxu1 %v3519_v0  ;;  %1412 = vmatpush.msra.mxu2 %v3487_v49 }
 0x38d   :  { %v3713_v32 = vadd.f32 %v822_v44, %v815_v31  ;;  %v3715_v48 = vadd.f32 %v830_v29, %v822_v44 }
 0x38e   :  { %1393 = vmatpush.msra.mxu1 %v3527_v42  ;;  %1413 = vmatpush.msra.mxu2 %v3499_v55 }
 0x38f   :  { %1042 = vrot.lane.b32.xlu2 %v3715_v48, %s3154_s7  ;;  %2753 = vmatmul.msk.f32.vlgmr.msra.gmra.mxu3 %vm572_vm10, %v3713_v32 }
 0x390   :  { %2754 = vmatmul.msk.f32.vlgmr.msrb.gmra.mxu0 %vm572_vm10, %v3713_v32  ;;  %1438 = vmatpush.msra.mxu3 %v3445_v30 }
 0x391   :  { %1458 = vmatpush.msrb.mxu0 %v3459_v35  ;;  %1394 = vmatpush.msra.mxu1 %v3533_v52  ;;  %v4319_v35 = vrot.slane %v3624_v28, 2  ;;  %v538_v52 = vld [vmem:[%s4303_s1 + $0xc] sm:$0x3] }
 0x392   :  { %1439 = vmatpush.msra.mxu3 %v3453_v33  ;;  %1414 = vmatpush.msra.mxu2 %v3511_v61  ;;  %v1064_v61 = vsub.f32 1.0, %v533_v59  ;;  %v1087_v7 = vsub.f32 1.0, %v538_v52 }
 0x393   :  { %1459 = vmatpush.msrb.mxu0 %v3473_v40 }
 0x394   :  { %1440 = vmatpush.msra.mxu3 %v3457_v34 }
 0x395   :  { %1460 = vmatpush.msrb.mxu0 %v3481_v46 }
 0x396   :  { %1441 = vmatpush.msra.mxu3 %v3468_v38 }
 0x397   :  { %1461 = vmatpush.msrb.mxu0 %v3493_v53 }
 0x398   :  { %1442 = vmatpush.msra.mxu3 %v3479_v45  ;;  %v4320_v45 = vrot.slane %v3644_v24, 4 }
 0x399   :  { %1462 = vmatpush.msrb.mxu0 %v3505_v57 }
 0x39a   :  { %1443 = vmatpush.msra.mxu3 %v3489_v50  ;;  %v881_v50 = vrot.slane %v4320_v45, 4 }
 0x39b   :  { %1463 = vmatpush.msrb.mxu0 %v3517_v63 }
 0x39c   :  { %1444 = vmatpush.msra.mxu3 %v3501_v56 }
 0x39d   :  { %1464 = vmatpush.msrb.mxu0 %v3525_v43 }
 0x39e   :  { %1445 = vmatpush.msra.mxu3 %v3513_v62 }
 0x39f   :  { %1465 = vmatpush.msrb.mxu0 %v3531_v41 }
 0x3fe   :  { %v852_v34 = vpop.f32.mrf.mxu1 }
 0x404   :  { %v872_v30 = vpop.f32.mrf.mxu2 }
 0x405   :  { %v877_v33 = vrot.slane %v872_v30, 6 }
 0x407   :  { %v878_v36 = vsel %vm117_vm1, %v852_v34, %v877_v33  ;;  %v980_v34 = vpop.permute.xlu1 %979 }
 0x408   :  { %v880_v38 = vadd.f32 %v878_v36, %v4319_v35 }
 0x40a   :  { %v2755_v39 = vmul.f32 -1.442695, %v880_v38  ;;  %v952_v63 = vrot.slane %v880_v38, 2 }
 0x40c   :  { %2865 = vpow2.f32 %v2755_v39 }
 0x40d   :  { %v923_v40 = vpop.f32.mrf.mxu0 }
 0x40e   :  { %v928_v46 = vrot.slane %v923_v40, 6 }
 0x412   :  { %v2866_v49 = vpop.eup %2865  ;;  %v903_v53 = vpop.f32.mrf.mxu3 }
 0x413   :  { %v935_v54 = vadd.f32 1.0, %v2866_v49  ;;  %v929_v55 = vsel %vm117_vm1, %v903_v53, %v928_v46  ;;  %v1043_v49 = vpop.permute.xlu2 %1042 }
 0x414   :  { %v931_v56 = vadd.f32 %v929_v55, %v881_v50 }
 0x415   :  { %2867 = vrcp.f32 %v935_v54  ;;  %v947_v8 = vand.u32 2147483648, %v935_v54  ;;  %v945_v21 = vand.u32 2147483647, %v935_v54  ;;  %vm941_vm0 = vweird.f32 %v935_v54 }
 0x416   :  { %v2757_v57 = vmul.f32 -1.442695, %v931_v56  ;;  %1018 = vrot.lane.b32.xlu2 %v931_v56, %s3154_s7  ;;  %v1015_v58 = vrot.slane %v931_v56, 2 }
 0x417   :  { %v948_v10 = vor.u32 1.1754944e-38, %v947_v8  ;;  %vm946_vm3 = vcmp.eq.f32.partialorder %v945_v21, 8.507059e+37 }
 0x418   :  { %2869 = vpow2.f32 %v2757_v57 }
 0x419   :  { %2871 = vtanh.f32 %v952_v63 }
 0x41b   :  { %v2868_v62 = vpop.eup %2867 }
 0x41c   :  { %v937_v0 = vmul.f32 %v2868_v62, %v935_v54  ;;  %vm942_vm15 = vweird.f32 %v2868_v62 }
 0x41d   :  { %vm943_vm2 = vmor %vm941_vm0, %vm942_vm15 }
 0x41e   :  { %v2870_v43 = vpop.eup %2869  ;;  %1067 = vperm.xlu2 %2818, %v1064_v61   ;;  %v938_v42 = vsub.f32 1.0, %v937_v0 }
 0x41f   :  { %v998_v41 = vadd.f32 1.0, %v2870_v43  ;;  %v2872_v14 = vpop.eup %2871 }
 0x420   :  { %v939_v23 = vmul.f32 %v2868_v62, %v938_v42 }
 0x421   :  { %2873 = vrcp.f32 %v998_v41  ;;  %v1010_v17 = vand.u32 2147483648, %v998_v41  ;;  %v1008_v18 = vand.u32 2147483647, %v998_v41  ;;  %vm1004_vm5 = vweird.f32 %v998_v41 }
 0x422   :  { %v940_v11 = vadd.f32 %v2868_v62, %v939_v23  ;;  %2875 = vtanh.f32 %v1015_v58 }
 0x423   :  { %v1011_v29 = vor.u32 1.1754944e-38, %v1010_v17  ;;  %vm1009_vm8 = vcmp.eq.f32.partialorder %v1008_v18, 8.507059e+37 }
 0x424   :  { %v944_v20 = vsel %vm943_vm2, %v2868_v62, %v940_v11 }
 0x425   :  { %v949_v5 = vsel %vm946_vm3, %v948_v10, %v944_v20 }
 0x426   :  { %1090 = vperm.xlu2 %2818, %v1087_v7   ;;  %v983_v22 = vmul.f32 %v2872_v14, %v949_v5  ;;  %v982_v36 = vmul.f32 %v980_v34, %v949_v5 }
 0x427   :  { %v2874_v60 = vpop.eup %2873 }
 0x428   :  { %985 = vrot.lane.b32.xlu0 %v983_v22, %s3154_s7  ;;  %v1000_v12 = vmul.f32 %v2874_v60, %v998_v41  ;;  %vm1005_vm4 = vweird.f32 %v2874_v60  ;;  %v2876_v44 = vpop.eup %2875 }
 0x429   :  { %vm1006_vm7 = vmor %vm1004_vm5, %vm1005_vm4 }
 0x42a   :  { %v1001_v16 = vsub.f32 1.0, %v1000_v12 }
 0x42c   :  { %v1002_v15 = vmul.f32 %v2874_v60, %v1001_v16 }
 0x42e   :  { %v1003_v4 = vadd.f32 %v2874_v60, %v1002_v15 }
 0x430   :  { %955 = vrot.lane.b32.xlu0 %v880_v38, %s3154_s7  ;;  %v1007_v31 = vsel %vm1006_vm7, %v2874_v60, %v1003_v4 }
 0x431   :  { %v1012_v30 = vsel %vm1009_vm8, %v1011_v29, %v1007_v31 }
 0x432   :  { %v1046_v33 = vmul.f32 %v2876_v44, %v1012_v30  ;;  %v1045_v38 = vmul.f32 %v1043_v49, %v1012_v30  ;;  %v3786_v49 = vld [vmem:[#allocation3 + $0x60] sm:$0xff] }
 0x434   :  { %1048 = vrot.lane.b32.xlu1 %v1046_v33, %s3154_s7 }
 0x438   :  { %1060 = vperm.xlu0 %2817, %v533_v59  }
 0x440   :  { %1083 = vperm.xlu0 %2817, %v538_v52  }
 0x470   :  { %v1019_v62 = vpop.permute.xlu2 %1018 }
 0x471   :  { %v1020_v63 = vrot.slane %v1019_v62, 2 }
 0x473   :  { %v2758_v43 = vmul.f32 -1.442695, %v1020_v63  ;;  %v3803_v63 = vld [vmem:[#allocation3 + $0x40] sm:$0xff] }
 0x478   :  { %v3767_v16 = vpop.permute.xlu2 %1067 }
 0x479   :  { %4357 = vst [vmem:[#allocation18_spill] sm:$0xff] %v3767_v16  ;;  %v1070_v29 = vmul.f32 %v3767_v16, %v3688_v27  ;;  %v3783_v27 = vld [vmem:[#allocation3 + $0x78] sm:$0xff] }
 0x49a   :  { %v986_v39 = vpop.permute.xlu0 %985 }
 0x49b   :  { %v988_v40 = vadd.f32 %v986_v39, %v982_v36  ;;  %v3780_v39 = vld [vmem:[#allocation3 + $0x70] sm:$0xff] }
 0x49d   :  { %2877 = vtanh.f32 %v988_v40  ;;  %1073 = vst [vmem:[#allocation1] ss:$4 sm:$0xff] %v988_v40 }
 0x4a2   :  { %v956_v57 = vpop.permute.xlu0 %955 }
 0x4a3   :  { %v2878_v46 = vpop.eup %2877  ;;  %v957_v59 = vrot.slane %v956_v57, 2 }
 0x4a4   :  { %991 = vrot.lane.b32.xlu1 %v2878_v46, %s3154_s7  ;;  %v1074_v54 = vld.sshfl [vmem:[#allocation1] sm:$0xff pattern:$0x73625140] }
 0x4a5   :  { %v2756_v61 = vmul.f32 -1.442695, %v957_v59 }
 0x4a6   :  { %v1049_v50 = vpop.permute.xlu1 %1048 }
 0x4a7   :  { %v1051_v53 = vadd.f32 %v1049_v50, %v1045_v38  ;;  %v3789_v38 = vld [vmem:[#allocation3 + $0x68] sm:$0xff]  ;;  %v3792_v50 = vpop.permute.xlu2 %1090 }
 0x4a8   :  { %4359 = vst [vmem:[#allocation20_spill] sm:$0xff] %v3792_v50 }
 0x4a9   :  { %2879 = vtanh.f32 %v1051_v53  ;;  %1096 = vst [vmem:[#allocation1] ss:$4 sm:$0xff] %v1051_v53 }
 0x4aa   :  { %2881 = vpow2.f32 %v2756_v61  ;;  %v3765_v5 = vpop.permute.xlu0 %1060  ;;  %v1102_v61 = vmul.f32 %v3792_v50, %v3715_v48  ;;  %v3817_v48 = vld [vmem:[#allocation3 + $0x38] sm:$0xff] }
 0x4ab   :  { %2883 = vpow2.f32 %v2758_v43  ;;  %4356 = vst [vmem:[#allocation17_spill] sm:$0xff] %v3765_v5  ;;  %v1093_v43 = vmul.f32 %v3792_v50, %v3713_v32 }
 0x4af   :  { %v2880_v55 = vpop.eup %2879 }
 0x4b0   :  { %1054 = vrot.lane.b32.xlu1 %v2880_v55, %s3154_s7  ;;  %v1097_v56 = vld.sshfl [vmem:[#allocation1] sm:$0xff pattern:$0x73625140]  ;;  %v2882_v0 = vpop.eup %2881 }
 0x4b1   :  { %1098 = vrot.lane.b32.xlu0 %v1097_v56, %s3154_s7  ;;  %v962_v42 = vadd.f32 1.0, %v2882_v0  ;;  %v2884_v41 = vpop.eup %2883  ;;  %v3794_v55 = vld [vmem:[#allocation3 + $0x50] sm:$0xff]  ;;  %v3797_v56 = vld [vmem:[#allocation3 + $0x58] sm:$0xff]  ;;  %v3806_v0 = vld [vmem:[#allocation3 + $0x48] sm:$0xff] }
 0x4b2   :  { %v1025_v8 = vadd.f32 1.0, %v2884_v41  ;;  %v3772_v44 = vpop.permute.xlu0 %1083 }
 0x4b3   :  { %2885 = vrcp.f32 %v962_v42  ;;  %v974_v14 = vand.u32 2147483648, %v962_v42  ;;  %vm968_vm11 = vweird.f32 %v962_v42  ;;  %v972_v22 = vand.u32 2147483647, %v962_v42  ;;  %4358 = vst [vmem:[#allocation19_spill] sm:$0xff] %v3772_v44 }
 0x4b4   :  { %2887 = vrcp.f32 %v1025_v8  ;;  %v1037_v34 = vand.u32 2147483648, %v1025_v8  ;;  %vm1031_vm15 = vweird.f32 %v1025_v8  ;;  %v1035_v36 = vand.u32 2147483647, %v1025_v8 }
 0x4b5   :  { %v975_v12 = vor.u32 1.1754944e-38, %v974_v14  ;;  %vm973_vm13 = vcmp.eq.f32.partialorder %v972_v22, 8.507059e+37  ;;  %v3843_v14 = vld [vmem:[#allocation3 + $0x10] sm:$0xff]  ;;  %v3846_v22 = vld [vmem:[#allocation5 + $0x60] sm:$0xff] }
 0x4b6   :  { %v1038_v46 = vor.u32 1.1754944e-38, %v1037_v34  ;;  %vm1036_vm2 = vcmp.eq.f32.partialorder %v1035_v36, 8.507059e+37  ;;  %v3883_v34 = vld [vmem:[#allocation5 + $0x20] sm:$0xff]  ;;  %v3886_v36 = vld [vmem:[#allocation5 + $0x28] sm:$0xff] }
 0x4b8   :  { %1075 = vrot.lane.b32.xlu1 %v1074_v54, %s3154_s7 }
 0x4b9   :  { %v2886_v52 = vpop.eup %2885 }
 0x4ba   :  { %v964_v23 = vmul.f32 %v2886_v52, %v962_v42  ;;  %v2888_v11 = vpop.eup %2887  ;;  %vm969_vm9 = vweird.f32 %v2886_v52 }
 0x4bb   :  { %v1027_v20 = vmul.f32 %v2888_v11, %v1025_v8  ;;  %vm970_vm12 = vmor %vm968_vm11, %vm969_vm9  ;;  %vm1032_vm14 = vweird.f32 %v2888_v11 }
 0x4bc   :  { %v965_v21 = vsub.f32 1.0, %v964_v23  ;;  %vm1033_vm0 = vmor %vm1031_vm15, %vm1032_vm14  ;;  %v3824_v23 = vld [vmem:[#allocation3 + $0x20] sm:$0xff] }
 0x4bd   :  { %v1028_v58 = vsub.f32 1.0, %v1027_v20  ;;  %v3840_v20 = vld [vmem:[#allocation3 + $0x28] sm:$0xff] }
 0x4be   :  { %v966_v7 = vmul.f32 %v2886_v52, %v965_v21  ;;  %v3831_v21 = vld [vmem:[#allocation5 + $0x70] sm:$0xff] }
 0x4bf   :  { %v1029_v4 = vmul.f32 %v2888_v11, %v1028_v58 }
 0x4c0   :  { %v967_v10 = vadd.f32 %v2886_v52, %v966_v7  ;;  %v3834_v7 = vld [vmem:[#allocation5 + $0x78] sm:$0xff] }
 0x4c1   :  { %v1030_v33 = vadd.f32 %v2888_v11, %v1029_v4  ;;  %v3871_v4 = vld [vmem:[#allocation5 + $0x40] sm:$0xff] }
 0x4c2   :  { %v971_v60 = vsel %vm970_vm12, %v2886_v52, %v967_v10  ;;  %v3814_v52 = vld [vmem:[#allocation3 + $0x30] sm:$0xff] }
 0x4c3   :  { %v976_v17 = vsel %vm973_vm13, %v975_v12, %v971_v60  ;;  %v1034_v40 = vsel %vm1033_vm0, %v2888_v11, %v1030_v33  ;;  %v1079_v11 = vmul.f32 %v3767_v16, %v3686_v47  ;;  %v3849_v60 = vld [vmem:[#allocation5 + $0x68] sm:$0xff]  ;;  %v3854_v47 = vld [vmem:[#allocation3 + $0x18] sm:$0xff]  ;;  %v3857_v12 = vld [vmem:[#allocation3] sm:$0xff] }
 0x4c4   :  { %v1039_v53 = vsel %vm1036_vm2, %v1038_v46, %v1034_v40  ;;  %v3880_v33 = vld [vmem:[#allocation5 + $0x38] sm:$0xff]  ;;  %v3889_v40 = vld [vmem:[#allocation5 + $0x10] sm:$0xff] }
 0x4c5   :  { %v3892_v46 = vld [vmem:[#allocation5 + $0x18] sm:$0xff] }
 0x516   :  { %v992_v15 = vpop.permute.xlu1 %991 }
 0x517   :  { %v994_v18 = vmul.f32 %v992_v15, %v976_v17  ;;  %v3860_v17 = vld [vmem:[#allocation5 + $0x50] sm:$0xff]  ;;  %v3863_v15 = vld [vmem:[#allocation5 + $0x58] sm:$0xff] }
 0x519   :  { %v1063_v31 = vmul.f32 %v3765_v5, %v994_v18  ;;  %v3868_v18 = vld [vmem:[#allocation3 + $0x8] sm:$0xff] }
 0x51b   :  { %v3774_v30 = vadd.f32 %v1070_v29, %v1063_v31  ;;  %v3874_v29 = vld [vmem:[#allocation5 + $0x48] sm:$0xff]  ;;  %v3877_v31 = vld [vmem:[#allocation5 + $0x30] sm:$0xff] }
 0x51d   :  { %2759 = vmatmul.msk.f32.vlgmr.msrb.gmra.mxu1 %vm572_vm10, %v3774_v30  ;;  %2760 = vmatmul.msk.f32.vlgmr.msrb.gmra.mxu2 %vm572_vm10, %v3774_v30 }
 0x51e   :  { %1659 = vmatpush.msrb.mxu1 %v3780_v39  ;;  %1679 = vmatpush.msrb.mxu2 %v3783_v27 }
 0x520   :  { %1660 = vmatpush.msrb.mxu1 %v3786_v49  ;;  %1680 = vmatpush.msrb.mxu2 %v3789_v38 }
 0x522   :  { %v1055_v54 = vpop.permute.xlu1 %1054  ;;  %1661 = vmatpush.msrb.mxu1 %v3794_v55  ;;  %1681 = vmatpush.msrb.mxu2 %v3797_v56 }
 0x523   :  { %v1057_v57 = vmul.f32 %v1055_v54, %v1039_v53  ;;  %v1099_v59 = vpop.permute.xlu0 %1098  ;;  %v3895_v53 = vld [vmem:[#allocation5] sm:$0xff]  ;;  %v3898_v54 = vld [vmem:[#allocation5 + $0x8] sm:$0xff] }
 0x524   :  { %v1101_v62 = vmul.f32 %v1099_v59, %v3772_v44  ;;  %1662 = vmatpush.msrb.mxu1 %v3803_v63  ;;  %1682 = vmatpush.msrb.mxu2 %v3806_v0 }
 0x525   :  { %v1086_v42 = vmul.f32 %v3772_v44, %v1057_v57 }
 0x526   :  { %v3812_v41 = vadd.f32 %v1102_v61, %v1101_v62  ;;  %1663 = vmatpush.msrb.mxu1 %v3814_v52  ;;  %1683 = vmatpush.msrb.mxu2 %v3817_v48  ;;  %v4325_v62 = vrot.slane %v3627_v1, 4 }
 0x527   :  { %v3820_v8 = vadd.f32 %v1093_v43, %v1086_v42 }
 0x528   :  { %1314 = vrot.lane.b32.xlu0 %v3812_v41, %s3154_s7  ;;  %1664 = vmatpush.msrb.mxu1 %v3824_v23 }
 0x529   :  { %2761 = vmatmul.msk.f32.vlgmr.msrb.gmra.mxu3 %vm572_vm10, %v3820_v8  ;;  %2762 = vmatmul.msk.f32.vlgmr.msra.gmra.mxu0 %vm572_vm10, %v3820_v8 }
 0x52a   :  { %v1076_v32 = vpop.permute.xlu1 %1075  ;;  %1710 = vmatpush.msrb.mxu3 %v3831_v21  ;;  %1730 = vmatpush.msra.mxu0 %v3834_v7 }
 0x52b   :  { %v1078_v10 = vmul.f32 %v1076_v32, %v3765_v5  ;;  %1684 = vmatpush.msrb.mxu2 %v3840_v20  ;;  %1665 = vmatpush.msrb.mxu1 %v3843_v14 }
 0x52c   :  { %1711 = vmatpush.msrb.mxu3 %v3846_v22  ;;  %1731 = vmatpush.msra.mxu0 %v3849_v60 }
 0x52d   :  { %v3852_v58 = vadd.f32 %v1079_v11, %v1078_v10  ;;  %1685 = vmatpush.msrb.mxu2 %v3854_v47  ;;  %1666 = vmatpush.msrb.mxu1 %v3857_v12  ;;  %v4326_v10 = vrot.slane %v3647_v25, 2 }
 0x52e   :  { %1712 = vmatpush.msrb.mxu3 %v3860_v17  ;;  %1732 = vmatpush.msra.mxu0 %v3863_v15 }
 0x52f   :  { %1251 = vrot.lane.b32.xlu2 %v3852_v58, %s3154_s7  ;;  %1686 = vmatpush.msrb.mxu2 %v3868_v18  ;;  %v1153_v35 = vrot.slane %v4326_v10, 4 }
 0x530   :  { %1713 = vmatpush.msrb.mxu3 %v3871_v4  ;;  %1733 = vmatpush.msra.mxu0 %v3874_v29 }
 0x532   :  { %1714 = vmatpush.msrb.mxu3 %v3877_v31  ;;  %1734 = vmatpush.msra.mxu0 %v3880_v33 }
 0x534   :  { %1715 = vmatpush.msrb.mxu3 %v3883_v34  ;;  %1735 = vmatpush.msra.mxu0 %v3886_v36 }
 0x536   :  { %1716 = vmatpush.msrb.mxu3 %v3889_v40  ;;  %1736 = vmatpush.msra.mxu0 %v3892_v46 }
 0x538   :  { %1717 = vmatpush.msrb.mxu3 %v3895_v53  ;;  %1737 = vmatpush.msra.mxu0 %v3898_v54 }
 0x59a   :  { %v1124_v61 = vpop.f32.mrf.mxu1 }
 0x5a0   :  { %v1144_v57 = vpop.f32.mrf.mxu2 }
 0x5a1   :  { %v1149_v59 = vrot.slane %v1144_v57, 6 }
 0x5a3   :  { %v1150_v43 = vsel %vm117_vm1, %v1124_v61, %v1149_v59  ;;  %v534_v59 = vld [vmem:[%s4303_s1 + $0x4] sm:$0x3] }
 0x5a4   :  { %v1152_v42 = vadd.f32 %v1150_v43, %v4325_v62  ;;  %v1336_v61 = vsub.f32 1.0, %v534_v59 }
 0x5a6   :  { %v2763_v32 = vmul.f32 -1.442695, %v1152_v42  ;;  %v1195_v11 = vpop.f32.mrf.mxu0  ;;  %v1224_v43 = vrot.slane %v1152_v42, 2 }
 0x5a7   :  { %v1200_v3 = vrot.slane %v1195_v11, 6 }
 0x5a8   :  { %2889 = vpow2.f32 %v2763_v32 }
 0x5ac   :  { %v1175_v45 = vpop.f32.mrf.mxu3 }
 0x5ad   :  { %v1201_v57 = vsel %vm117_vm1, %v1175_v45, %v1200_v3  ;;  %v537_v3 = vld [vmem:[%s4303_s1 + $0xa] sm:$0x3] }
 0x5ae   :  { %v2890_v13 = vpop.eup %2889  ;;  %v1203_v6 = vadd.f32 %v1201_v57, %v1153_v35  ;;  %v1359_v45 = vsub.f32 1.0, %v537_v3 }
 0x5af   :  { %v1207_v51 = vadd.f32 1.0, %v2890_v13 }
 0x5b0   :  { %v2765_v37 = vmul.f32 -1.442695, %v1203_v6  ;;  %1290 = vrot.lane.b32.xlu0 %v1203_v6, %s3154_s7  ;;  %v1287_v16 = vrot.slane %v1203_v6, 2  ;;  %v1252_v6 = vpop.permute.xlu2 %1251 }
 0x5b1   :  { %2891 = vrcp.f32 %v1207_v51  ;;  %v1219_v35 = vand.u32 2147483648, %v1207_v51  ;;  %v1217_v9 = vand.u32 2147483647, %v1207_v51  ;;  %vm1213_vm4 = vweird.f32 %v1207_v51 }
 0x5b2   :  { %2893 = vpow2.f32 %v2765_v37 }
 0x5b3   :  { %2895 = vtanh.f32 %v1224_v43  ;;  %v1220_v19 = vor.u32 1.1754944e-38, %v1219_v35  ;;  %vm1218_vm7 = vcmp.eq.f32.partialorder %v1217_v9, 8.507059e+37 }
 0x5b7   :  { %v2892_v32 = vpop.eup %2891 }
 0x5b8   :  { %v2894_v11 = vpop.eup %2893  ;;  %1339 = vperm.xlu0 %2817, %v1336_v61   ;;  %v1209_v62 = vmul.f32 %v2892_v32, %v1207_v51  ;;  %vm1214_vm3 = vweird.f32 %v2892_v32 }
 0x5b9   :  { %v1270_v10 = vadd.f32 1.0, %v2894_v11  ;;  %vm1215_vm5 = vmor %vm1213_vm4, %vm1214_vm3  ;;  %v2896_v5 = vpop.eup %2895 }
 0x5ba   :  { %v1210_v13 = vsub.f32 1.0, %v1209_v62 }
 0x5bb   :  { %2897 = vrcp.f32 %v1270_v10  ;;  %vm1276_vm9 = vweird.f32 %v1270_v10 }
 0x5bc   :  { %v1211_v57 = vmul.f32 %v2892_v32, %v1210_v13  ;;  %2899 = vtanh.f32 %v1287_v16  ;;  %v1282_v13 = vand.u32 2147483648, %v1270_v10 }
 0x5be   :  { %v1212_v37 = vadd.f32 %v2892_v32, %v1211_v57  ;;  %v1280_v57 = vand.u32 2147483647, %v1270_v10  ;;  %v1283_v35 = vor.u32 1.1754944e-38, %v1282_v13 }
 0x5c0   :  { %1362 = vperm.xlu0 %2817, %v1359_v45   ;;  %v1216_v61 = vsel %vm1215_vm5, %v2892_v32, %v1212_v37  ;;  %vm1281_vm12 = vcmp.eq.f32.partialorder %v1280_v57, 8.507059e+37 }
 0x5c1   :  { %v2898_v11 = vpop.eup %2897  ;;  %v1221_v44 = vsel %vm1218_vm7, %v1220_v19, %v1216_v61 }
 0x5c2   :  { %v1255_v50 = vmul.f32 %v2896_v5, %v1221_v44  ;;  %v1272_v62 = vmul.f32 %v2898_v11, %v1270_v10  ;;  %vm1277_vm8 = vweird.f32 %v2898_v11  ;;  %v2900_v9 = vpop.eup %2899  ;;  %v1254_v5 = vmul.f32 %v1252_v6, %v1221_v44 }
 0x5c3   :  { %vm1278_vm11 = vmor %vm1276_vm9, %vm1277_vm8 }
 0x5c4   :  { %1257 = vrot.lane.b32.xlu1 %v1255_v50, %s3154_s7  ;;  %v1273_v43 = vsub.f32 1.0, %v1272_v62 }
 0x5c6   :  { %v1274_v28 = vmul.f32 %v2898_v11, %v1273_v43 }
 0x5c8   :  { %v1275_v51 = vadd.f32 %v2898_v11, %v1274_v28  ;;  %v1315_v28 = vpop.permute.xlu0 %1314 }
 0x5ca   :  { %v1279_v45 = vsel %vm1278_vm11, %v2898_v11, %v1275_v51 }
 0x5cb   :  { %v1284_v32 = vsel %vm1281_vm12, %v1283_v35, %v1279_v45 }
 0x5cc   :  { %1227 = vrot.lane.b32.xlu1 %v1152_v42, %s3154_s7  ;;  %v1318_v19 = vmul.f32 %v2900_v9, %v1284_v32  ;;  %v1317_v37 = vmul.f32 %v1315_v28, %v1284_v32 }
 0x5ce   :  { %1320 = vrot.lane.b32.xlu2 %v1318_v19, %s3154_s7 }
 0x5d4   :  { %1332 = vperm.xlu1 %2819, %v534_v59  }
 0x5dc   :  { %1355 = vperm.xlu1 %2819, %v537_v3  }
 0x622   :  { %v1291_v13 = vpop.permute.xlu0 %1290 }
 0x623   :  { %v1292_v57 = vrot.slane %v1291_v13, 2 }
 0x625   :  { %v2766_v51 = vmul.f32 -1.442695, %v1292_v57 }
 0x628   :  { %v1321_v10 = vpop.permute.xlu2 %1320 }
 0x629   :  { %v1323_v61 = vadd.f32 %v1321_v10, %v1317_v37 }
 0x636   :  { %v1258_v16 = vpop.permute.xlu1 %1257 }
 0x637   :  { %v1260_v50 = vadd.f32 %v1258_v16, %v1254_v5 }
 0x639   :  { %2901 = vtanh.f32 %v1260_v50  ;;  %1345 = vst [vmem:[#allocation1] ss:$4 sm:$0xff] %v1260_v50 }
 0x63a   :  { %2903 = vtanh.f32 %v1323_v61 }
 0x63e   :  { %v1228_v44 = vpop.permute.xlu1 %1227 }
 0x63f   :  { %v2902_v11 = vpop.eup %2901  ;;  %v1229_v3 = vrot.slane %v1228_v44, 2 }
 0x640   :  { %v1346_v62 = vld.sshfl [vmem:[#allocation1] sm:$0xff pattern:$0x73625140]  ;;  %1263 = vrot.lane.b32.xlu2 %v2902_v11, %s3154_s7  ;;  %v2904_v42 = vpop.eup %2903 }
 0x641   :  { %1368 = vst [vmem:[#allocation1] ss:$4 sm:$0xff] %v1323_v61  ;;  %v2764_v43 = vmul.f32 -1.442695, %v1229_v3 }
 0x643   :  { %2905 = vpow2.f32 %v2764_v43 }
 0x644   :  { %2907 = vpow2.f32 %v2766_v51 }
 0x646   :  { %v3925_v3 = vpop.permute.xlu1 %1332 }
 0x647   :  { %4361 = vst [vmem:[#allocation22_spill] sm:$0xff] %v3925_v3 }
 0x648   :  { %1326 = vrot.lane.b32.xlu2 %v2904_v42, %s3154_s7  ;;  %v1369_v59 = vld.sshfl [vmem:[#allocation1] sm:$0xff pattern:$0x73625140] }
 0x649   :  { %1370 = vrot.lane.b32.xlu1 %v1369_v59, %s3154_s7  ;;  %v2906_v35 = vpop.eup %2905  ;;  %v3923_v59 = vpop.permute.xlu0 %1339 }
 0x64a   :  { %v1234_v45 = vadd.f32 1.0, %v2906_v35  ;;  %v2908_v9 = vpop.eup %2907  ;;  %4360 = vst [vmem:[#allocation21_spill] sm:$0xff] %v3923_v59 }
 0x64b   :  { %v1297_v32 = vadd.f32 1.0, %v2908_v9  ;;  %v1342_v9 = vmul.f32 %v3923_v59, %v3774_v30 }
 0x64c   :  { %2909 = vrcp.f32 %v1234_v45  ;;  %v1246_v61 = vand.u32 2147483648, %v1234_v45  ;;  %vm1240_vm14 = vweird.f32 %v1234_v45  ;;  %v1244_v11 = vand.u32 2147483647, %v1234_v45 }
 0x64d   :  { %2911 = vrcp.f32 %v1297_v32  ;;  %v1309_v35 = vand.u32 2147483648, %v1297_v32  ;;  %vm1303_vm3 = vweird.f32 %v1297_v32 }
 0x64e   :  { %v1247_v44 = vor.u32 1.1754944e-38, %v1246_v61  ;;  %vm1245_vm0 = vcmp.eq.f32.partialorder %v1244_v11, 8.507059e+37 }
 0x650   :  { %1347 = vrot.lane.b32.xlu2 %v1346_v62, %s3154_s7 }
 0x652   :  { %v2910_v19 = vpop.eup %2909 }
 0x653   :  { %v1236_v6 = vmul.f32 %v2910_v19, %v1234_v45  ;;  %v2912_v16 = vpop.eup %2911  ;;  %vm1241_vm13 = vweird.f32 %v2910_v19 }
 0x654   :  { %v1299_v28 = vmul.f32 %v2912_v16, %v1297_v32  ;;  %vm1242_vm15 = vmor %vm1240_vm14, %vm1241_vm13  ;;  %vm1304_vm2 = vweird.f32 %v2912_v16 }
 0x655   :  { %v1237_v5 = vsub.f32 1.0, %v1236_v6  ;;  %vm1305_vm4 = vmor %vm1303_vm3, %vm1304_vm2 }
 0x656   :  { %v1300_v37 = vsub.f32 1.0, %v1299_v28  ;;  %v3936_v28 = vpop.permute.xlu0 %1362 }
 0x657   :  { %v1238_v50 = vmul.f32 %v2910_v19, %v1237_v5  ;;  %4362 = vst [vmem:[#allocation23_spill] sm:$0xff] %v3936_v28 }
 0x658   :  { %v1301_v42 = vmul.f32 %v2912_v16, %v1300_v37  ;;  %v3940_v37 = vpop.permute.xlu1 %1355 }
 0x659   :  { %v1239_v10 = vadd.f32 %v2910_v19, %v1238_v50  ;;  %v1310_v50 = vor.u32 1.1754944e-38, %v1309_v35  ;;  %4363 = vst [vmem:[#allocation24_spill] sm:$0xff] %v3940_v37 }
 0x65a   :  { %v1302_v51 = vadd.f32 %v2912_v16, %v1301_v42 }
 0x65b   :  { %v1243_v62 = vsel %vm1242_vm15, %v2910_v19, %v1239_v10  ;;  %v1307_v19 = vand.u32 2147483647, %v1297_v32 }
 0x65c   :  { %v1248_v13 = vsel %vm1245_vm0, %v1247_v44, %v1243_v62  ;;  %v1306_v5 = vsel %vm1305_vm4, %v2912_v16, %v1302_v51  ;;  %v1365_v16 = vmul.f32 %v3936_v28, %v3820_v8  ;;  %v1351_v8 = vmul.f32 %v3923_v59, %v3852_v58 }
 0x65d   :  { %vm1308_vm5 = vcmp.eq.f32.partialorder %v1307_v19, 8.507059e+37 }
 0x65e   :  { %v1311_v10 = vsel %vm1308_vm5, %v1310_v50, %v1306_v5 }
 0x69a   :  { %v1264_v43 = vpop.permute.xlu2 %1263 }
 0x69b   :  { %v1266_v57 = vmul.f32 %v1264_v43, %v1248_v13  ;;  %v1374_v43 = vmul.f32 %v3936_v28, %v3812_v41 }
 0x69d   :  { %v1335_v45 = vmul.f32 %v3925_v3, %v1266_v57 }
 0x69f   :  { %v3930_v6 = vadd.f32 %v1342_v9, %v1335_v45  ;;  %v4338_v45 = vrot.slane %v3630_v2, 6 }
 0x6a1   :  { %2767 = vmatmul.msk.f32.vlgmr.msra.gmra.mxu1 %vm572_vm10, %v3930_v6  ;;  %2768 = vmatmul.msk.f32.vlgmr.msra.gmra.mxu2 %vm572_vm10, %v3930_v6 }
 0x6a2   :  { %v1327_v30 = vpop.permute.xlu2 %1326  ;;  %1909 = vmatpush.msra.mxu1 %v3780_v39  ;;  %1929 = vmatpush.msra.mxu2 %v3783_v27 }
 0x6a3   :  { %v1329_v32 = vmul.f32 %v1327_v30, %v1311_v10  ;;  %v1425_v30 = vrot.slane %v3650_v26, 4 }
 0x6a4   :  { %1910 = vmatpush.msra.mxu1 %v3786_v49  ;;  %1930 = vmatpush.msra.mxu2 %v3789_v38 }
 0x6a5   :  { %v1358_v61 = vmul.f32 %v3940_v37, %v1329_v32 }
 0x6a6   :  { %1911 = vmatpush.msra.mxu1 %v3794_v55  ;;  %1931 = vmatpush.msra.mxu2 %v3797_v56 }
 0x6a7   :  { %v3949_v11 = vadd.f32 %v1365_v16, %v1358_v61 }
 0x6a8   :  { %1912 = vmatpush.msra.mxu1 %v3803_v63  ;;  %1932 = vmatpush.msra.mxu2 %v3806_v0 }
 0x6a9   :  { %2769 = vmatmul.msk.f32.vlgmr.msra.gmra.mxu3 %vm572_vm10, %v3949_v11  ;;  %2770 = vmatmul.msk.f32.vlgmr.msrb.gmra.mxu0 %vm572_vm10, %v3949_v11 }
 0x6aa   :  { %v1348_v62 = vpop.permute.xlu2 %1347  ;;  %1913 = vmatpush.msra.mxu1 %v3814_v52  ;;  %1933 = vmatpush.msra.mxu2 %v3817_v48 }
 0x6ab   :  { %v1350_v42 = vmul.f32 %v1348_v62, %v3925_v3  ;;  %1960 = vmatpush.msra.mxu3 %v3831_v21  ;;  %1980 = vmatpush.msrb.mxu0 %v3834_v7 }
 0x6ac   :  { %1914 = vmatpush.msra.mxu1 %v3824_v23  ;;  %1934 = vmatpush.msra.mxu2 %v3840_v20 }
 0x6ad   :  { %v3966_v44 = vadd.f32 %v1351_v8, %v1350_v42  ;;  %1961 = vmatpush.msra.mxu3 %v3846_v22  ;;  %1981 = vmatpush.msrb.mxu0 %v3849_v60 }
 0x6ae   :  { %1915 = vmatpush.msra.mxu1 %v3843_v14  ;;  %1935 = vmatpush.msra.mxu2 %v3854_v47 }
 0x6af   :  { %1523 = vrot.lane.b32.xlu0 %v3966_v44, %s3154_s7  ;;  %1962 = vmatpush.msra.mxu3 %v3860_v17 }
 0x6b0   :  { %1916 = vmatpush.msra.mxu1 %v3857_v12  ;;  %1936 = vmatpush.msra.mxu2 %v3868_v18 }
 0x6b1   :  { %1982 = vmatpush.msrb.mxu0 %v3863_v15  ;;  %1963 = vmatpush.msra.mxu3 %v3871_v4 }
 0x6b3   :  { %1983 = vmatpush.msrb.mxu0 %v3874_v29  ;;  %1964 = vmatpush.msra.mxu3 %v3877_v31 }
 0x6b5   :  { %1984 = vmatpush.msrb.mxu0 %v3880_v33  ;;  %1965 = vmatpush.msra.mxu3 %v3883_v34 }
 0x6b7   :  { %1985 = vmatpush.msrb.mxu0 %v3886_v36  ;;  %1966 = vmatpush.msra.mxu3 %v3889_v40 }
 0x6b9   :  { %1986 = vmatpush.msrb.mxu0 %v3892_v46  ;;  %1967 = vmatpush.msra.mxu3 %v3895_v53 }
 0x6bb   :  { %v1371_v58 = vpop.permute.xlu1 %1370  ;;  %1987 = vmatpush.msrb.mxu0 %v3898_v54 }
 0x6bc   :  { %v1373_v13 = vmul.f32 %v1371_v58, %v3940_v37  ;;  %v535_v58 = vld [vmem:[%s4303_s1 + $0x6] sm:$0x3] }
 0x6be   :  { %v3991_v57 = vadd.f32 %v1374_v43, %v1373_v13 }
 0x6c0   :  { %1586 = vrot.lane.b32.xlu1 %v3991_v57, %s3154_s7 }
 0x71e   :  { %v1396_v9 = vpop.f32.mrf.mxu1 }
 0x724   :  { %v1416_v51 = vpop.f32.mrf.mxu2 }
 0x725   :  { %v1421_v35 = vrot.slane %v1416_v51, 6  ;;  %v536_v51 = vld [vmem:[%s4303_s1 + $0x8] sm:$0x3] }
 0x726   :  { %v1467_v50 = vpop.f32.mrf.mxu0 }
 0x727   :  { %v1422_v19 = vsel %vm117_vm1, %v1396_v9, %v1421_v35  ;;  %v1472_v41 = vrot.slane %v1467_v50, 6 }
 0x728   :  { %v1424_v5 = vadd.f32 %v1422_v19, %v4338_v45  ;;  %v1631_v19 = vsub.f32 1.0, %v536_v51 }
 0x72a   :  { %v2771_v10 = vmul.f32 -1.442695, %v1424_v5  ;;  %v1496_v9 = vrot.slane %v1424_v5, 2 }
 0x72c   :  { %2913 = vpow2.f32 %v2771_v10  ;;  %v1447_v32 = vpop.f32.mrf.mxu3 }
 0x72d   :  { %v1473_v16 = vsel %vm117_vm1, %v1447_v32, %v1472_v41 }
 0x72e   :  { %v1475_v61 = vadd.f32 %v1473_v16, %v1425_v30 }
 0x730   :  { %v2773_v62 = vmul.f32 -1.442695, %v1475_v61  ;;  %1562 = vrot.lane.b32.xlu1 %v1475_v61, %s3154_s7 }
 0x732   :  { %v2914_v8 = vpop.eup %2913  ;;  %2915 = vpow2.f32 %v2773_v62  ;;  %v1559_v62 = vrot.slane %v1475_v61, 2 }
 0x733   :  { %v1479_v42 = vadd.f32 1.0, %v2914_v8 }
 0x735   :  { %2917 = vrcp.f32 %v1479_v42  ;;  %v1491_v41 = vand.u32 2147483648, %v1479_v42  ;;  %v1489_v32 = vand.u32 2147483647, %v1479_v42  ;;  %vm1485_vm8 = vweird.f32 %v1479_v42 }
 0x737   :  { %v1492_v45 = vor.u32 1.1754944e-38, %v1491_v41  ;;  %vm1490_vm11 = vcmp.eq.f32.partialorder %v1489_v32, 8.507059e+37 }
 0x738   :  { %v2916_v43 = vpop.eup %2915  ;;  %1604 = vperm.xlu1 %2819, %v535_v58  }
 0x739   :  { %v1542_v13 = vadd.f32 1.0, %v2916_v43 }
 0x73b   :  { %v2918_v35 = vpop.eup %2917  ;;  %2919 = vrcp.f32 %v1542_v13  ;;  %v1554_v37 = vand.u32 2147483648, %v1542_v13  ;;  %vm1548_vm13 = vweird.f32 %v1542_v13 }
 0x73c   :  { %v1481_v50 = vmul.f32 %v2918_v35, %v1479_v42  ;;  %2921 = vtanh.f32 %v1496_v9  ;;  %vm1486_vm7 = vweird.f32 %v2918_v35  ;;  %v1552_v9 = vand.u32 2147483647, %v1542_v13 }
 0x73d   :  { %vm1487_vm9 = vmor %vm1485_vm8, %vm1486_vm7  ;;  %2923 = vtanh.f32 %v1559_v62  ;;  %v1555_v61 = vor.u32 1.1754944e-38, %v1554_v37 }
 0x73e   :  { %v1482_v10 = vsub.f32 1.0, %v1481_v50  ;;  %vm1553_vm15 = vcmp.eq.f32.partialorder %v1552_v9, 8.507059e+37 }
 0x740   :  { %1634 = vperm.xlu1 %2819, %v1631_v19   ;;  %v1483_v30 = vmul.f32 %v2918_v35, %v1482_v10 }
 0x741   :  { %v2920_v16 = vpop.eup %2919 }
 0x742   :  { %v1544_v8 = vmul.f32 %v2920_v16, %v1542_v13  ;;  %v1484_v43 = vadd.f32 %v2918_v35, %v1483_v30  ;;  %v2922_v59 = vpop.eup %2921  ;;  %vm1549_vm12 = vweird.f32 %v2920_v16  ;;  %v1587_v13 = vpop.permute.xlu1 %1586 }
 0x743   :  { %vm1550_vm14 = vmor %vm1548_vm13, %vm1549_vm12  ;;  %v2924_v41 = vpop.eup %2923 }
 0x744   :  { %v1545_v24 = vsub.f32 1.0, %v1544_v8  ;;  %v1488_v3 = vsel %vm1487_vm9, %v2918_v35, %v1484_v43 }
 0x745   :  { %v1493_v50 = vsel %vm1490_vm11, %v1492_v45, %v1488_v3  ;;  %v1524_v3 = vpop.permute.xlu0 %1523 }
 0x746   :  { %v1546_v28 = vmul.f32 %v2920_v16, %v1545_v24  ;;  %v1527_v19 = vmul.f32 %v2922_v59, %v1493_v50  ;;  %v1526_v24 = vmul.f32 %v1524_v3, %v1493_v50 }
 0x748   :  { %v1547_v10 = vadd.f32 %v2920_v16, %v1546_v28  ;;  %1529 = vrot.lane.b32.xlu2 %v1527_v19, %s3154_s7  ;;  %v1608_v28 = vsub.f32 1.0, %v535_v58 }
 0x74a   :  { %v1551_v42 = vsel %vm1550_vm14, %v2920_v16, %v1547_v10 }
 0x74b   :  { %v1556_v30 = vsel %vm1553_vm15, %v1555_v61, %v1551_v42 }
 0x74c   :  { %v1590_v35 = vmul.f32 %v2924_v41, %v1556_v30  ;;  %v1589_v16 = vmul.f32 %v1587_v13, %v1556_v30 }
 0x74e   :  { %1592 = vrot.lane.b32.xlu0 %v1590_v35, %s3154_s7 }
 0x750   :  { %1499 = vrot.lane.b32.xlu2 %v1424_v5, %s3154_s7 }
 0x7a2   :  { %v1530_v45 = vpop.permute.xlu2 %1529  ;;  %v1563_v19 = vpop.permute.xlu1 %1562 }
 0x7a3   :  { %v1532_v32 = vadd.f32 %v1530_v45, %v1526_v24  ;;  %v1564_v10 = vrot.slane %v1563_v19, 2 }
 0x7a5   :  { %2925 = vtanh.f32 %v1532_v32  ;;  %1617 = vst [vmem:[#allocation1] ss:$4 sm:$0xff] %v1532_v32  ;;  %v2774_v61 = vmul.f32 -1.442695, %v1564_v10 }
 0x7aa   :  { %v1500_v50 = vpop.permute.xlu2 %1499 }
 0x7ab   :  { %v2926_v59 = vpop.eup %2925  ;;  %v1501_v9 = vrot.slane %v1500_v50, 2 }
 0x7ac   :  { %1535 = vrot.lane.b32.xlu0 %v2926_v59, %s3154_s7  ;;  %v1618_v37 = vld.sshfl [vmem:[#allocation1] sm:$0xff pattern:$0x73625140] }
 0x7ad   :  { %v2772_v58 = vmul.f32 -1.442695, %v1501_v9 }
 0x7b4   :  { %1611 = vperm.xlu0 %2817, %v1608_v28  }
 0x7bc   :  { %1619 = vrot.lane.b32.xlu0 %v1618_v37, %s3154_s7 }
 0x7c0   :  { %v1593_v62 = vpop.permute.xlu0 %1592 }
 0x7c1   :  { %v1595_v8 = vadd.f32 %v1593_v62, %v1589_v16 }
 0x7c3   :  { %2927 = vtanh.f32 %v1595_v8  ;;  %1640 = vst [vmem:[#allocation1] ss:$4 sm:$0xff] %v1595_v8 }
 0x7c4   :  { %2929 = vpow2.f32 %v2772_v58 }
 0x7c5   :  { %2931 = vpow2.f32 %v2774_v61 }
 0x7c9   :  { %v2928_v5 = vpop.eup %2927 }
 0x7ca   :  { %1598 = vrot.lane.b32.xlu2 %v2928_v5, %s3154_s7  ;;  %v1641_v43 = vld.sshfl [vmem:[#allocation1] sm:$0xff pattern:$0x73625140]  ;;  %v2930_v42 = vpop.eup %2929 }
 0x7cb   :  { %v1506_v41 = vadd.f32 1.0, %v2930_v42  ;;  %v2932_v30 = vpop.eup %2931 }
 0x7cc   :  { %v1569_v35 = vadd.f32 1.0, %v2932_v30 }
 0x7cd   :  { %2933 = vrcp.f32 %v1506_v41  ;;  %v1518_v13 = vand.u32 2147483648, %v1506_v41  ;;  %vm1512_vm2 = vweird.f32 %v1506_v41  ;;  %v1516_v16 = vand.u32 2147483647, %v1506_v41 }
 0x7ce   :  { %2935 = vrcp.f32 %v1569_v35  ;;  %v1581_v61 = vand.u32 2147483648, %v1569_v35  ;;  %vm1575_vm7 = vweird.f32 %v1569_v35  ;;  %v1579_v42 = vand.u32 2147483647, %v1569_v35 }
 0x7cf   :  { %v1519_v50 = vor.u32 1.1754944e-38, %v1518_v13  ;;  %vm1517_vm4 = vcmp.eq.f32.partialorder %v1516_v16, 8.507059e+37 }
 0x7d0   :  { %vm1580_vm9 = vcmp.eq.f32.partialorder %v1579_v42, 8.507059e+37 }
 0x7d2   :  { %1627 = vperm.xlu2 %2818, %v536_v51  }
 0x7d3   :  { %v2934_v3 = vpop.eup %2933 }
 0x7d4   :  { %v1508_v24 = vmul.f32 %v2934_v3, %v1506_v41  ;;  %v2936_v45 = vpop.eup %2935  ;;  %vm1513_vm0 = vweird.f32 %v2934_v3 }
 0x7d5   :  { %v1571_v59 = vmul.f32 %v2936_v45, %v1569_v35  ;;  %vm1514_vm3 = vmor %vm1512_vm2, %vm1513_vm0  ;;  %vm1576_vm5 = vweird.f32 %v2936_v45 }
 0x7d6   :  { %v1509_v51 = vsub.f32 1.0, %v1508_v24  ;;  %vm1577_vm8 = vmor %vm1575_vm7, %vm1576_vm5 }
 0x7d7   :  { %v1572_v37 = vsub.f32 1.0, %v1571_v59 }
 0x7d8   :  { %v1510_v32 = vmul.f32 %v2934_v3, %v1509_v51  ;;  %v1582_v51 = vor.u32 1.1754944e-38, %v1581_v61 }
 0x7d9   :  { %v1573_v5 = vmul.f32 %v2936_v45, %v1572_v37 }
 0x7da   :  { %1642 = vrot.lane.b32.xlu2 %v1641_v43, %s3154_s7  ;;  %v1511_v28 = vadd.f32 %v2934_v3, %v1510_v32  ;;  %v4015_v43 = vpop.permute.xlu1 %1604 }
 0x7db   :  { %v1574_v19 = vadd.f32 %v2936_v45, %v1573_v5 }
 0x7dc   :  { %v1515_v8 = vsel %vm1514_vm3, %v2934_v3, %v1511_v28 }
 0x7dd   :  { %v1520_v9 = vsel %vm1517_vm4, %v1519_v50, %v1515_v8  ;;  %v1578_v24 = vsel %vm1577_vm8, %v2936_v45, %v1574_v19 }
 0x7de   :  { %v1583_v28 = vsel %vm1580_vm9, %v1582_v51, %v1578_v24 }
 0x7e2   :  { %v4021_v59 = vpop.permute.xlu1 %1634 }
 0x81e   :  { %v1536_v62 = vpop.permute.xlu0 %1535 }
 0x81f   :  { %v1538_v58 = vmul.f32 %v1536_v62, %v1520_v9 }
 0x821   :  { %v1607_v41 = vmul.f32 %v4015_v43, %v1538_v58 }
 0x824   :  { %v1599_v10 = vpop.permute.xlu2 %1598 }
 0x825   :  { %v1601_v37 = vmul.f32 %v1599_v10, %v1583_v28 }
 0x826   :  { %v1612_v30 = vpop.permute.xlu0 %1611 }
 0x827   :  { %v1614_v3 = vmul.f32 %v1612_v30, %v3930_v6  ;;  %v1637_v6 = vmul.f32 %v4021_v59, %v3949_v11  ;;  %v1623_v62 = vmul.f32 %v1612_v30, %v3966_v44 }
 0x829   :  { %v4019_v32 = vadd.f32 %v1614_v3, %v1607_v41 }
 0x82b   :  { %2775 = vmatmul.msk.f32.vlgmr.msrb.gmra.mxu1 %vm572_vm10, %v4019_v32  ;;  %2776 = vmatmul.msk.f32.vlgmr.msrb.gmra.mxu2 %vm572_vm10, %v4019_v32 }
 0x82c   :  { %v4027_v35 = vpop.permute.xlu2 %1627  ;;  %2159 = vmatpush.msrb.mxu1 %v3780_v39  ;;  %2179 = vmatpush.msrb.mxu2 %v3783_v27 }
 0x82d   :  { %v1630_v45 = vmul.f32 %v4027_v35, %v1601_v37 }
 0x82e   :  { %v1620_v13 = vpop.permute.xlu0 %1619  ;;  %2160 = vmatpush.msrb.mxu1 %v3786_v49  ;;  %2180 = vmatpush.msrb.mxu2 %v3789_v38 }
 0x82f   :  { %v1638_v16 = vadd.f32 %v1637_v6, %v1630_v45  ;;  %v1622_v8 = vmul.f32 %v1620_v13, %v4015_v43 }
 0x830   :  { %2161 = vmatpush.msrb.mxu1 %v3794_v55  ;;  %2181 = vmatpush.msrb.mxu2 %v3797_v56  ;;  %v1646_v55 = vmul.f32 %v4021_v59, %v3991_v57 }
 0x831   :  { %v4040_v39 = vadd.f32 %v1623_v62, %v1622_v8  ;;  %2777 = vmatmul.msk.f32.vlgmr.msrb.gmra.mxu3 %vm572_vm10, %v1638_v16  ;;  %2778 = vmatmul.msk.f32.vlgmr.msra.gmra.mxu0 %vm572_vm10, %v1638_v16  ;;  %v4044_v27 = vmul.f32 %v1638_v16, %v1612_v30 }
 0x832   :  { %2162 = vmatpush.msrb.mxu1 %v3803_v63  ;;  %2182 = vmatpush.msrb.mxu2 %v3806_v0 }
 0x833   :  { %1795 = vrot.lane.b32.xlu1 %v4040_v39, %s3154_s7  ;;  %2210 = vmatpush.msrb.mxu3 %v3831_v21 }
 0x834   :  { %v1643_v49 = vpop.permute.xlu2 %1642  ;;  %2163 = vmatpush.msrb.mxu1 %v3814_v52  ;;  %2183 = vmatpush.msrb.mxu2 %v3817_v48 }
 0x835   :  { %v1645_v38 = vmul.f32 %v1643_v49, %v4027_v35  ;;  %2230 = vmatpush.msra.mxu0 %v3834_v7  ;;  %2211 = vmatpush.msrb.mxu3 %v3846_v22  ;;  %v4364_v22 = vrot.slane %v3630_v2, 6 }
 0x836   :  { %2164 = vmatpush.msrb.mxu1 %v3824_v23  ;;  %2184 = vmatpush.msrb.mxu2 %v3840_v20 }
 0x837   :  { %v1647_v56 = vadd.f32 %v1646_v55, %v1645_v38  ;;  %2231 = vmatpush.msra.mxu0 %v3849_v60  ;;  %2212 = vmatpush.msrb.mxu3 %v3860_v17  ;;  %v1697_v60 = vrot.slane %v4364_v22, 4 }
 0x838   :  { %2165 = vmatpush.msrb.mxu1 %v3843_v14  ;;  %2185 = vmatpush.msrb.mxu2 %v3854_v47 }
 0x839   :  { %1858 = vrot.lane.b32.xlu0 %v1647_v56, %s3154_s7  ;;  %v4065_v63 = vmul.f32 %v1647_v56, %v1612_v30  ;;  %2232 = vmatpush.msra.mxu0 %v3863_v15 }
 0x83a   :  { %2166 = vmatpush.msrb.mxu1 %v3857_v12  ;;  %2186 = vmatpush.msrb.mxu2 %v3868_v18 }
 0x83b   :  { %2213 = vmatpush.msrb.mxu3 %v3871_v4  ;;  %2233 = vmatpush.msra.mxu0 %v3874_v29 }
 0x83d   :  { %2214 = vmatpush.msrb.mxu3 %v3877_v31  ;;  %2234 = vmatpush.msra.mxu0 %v3880_v33 }
 0x83f   :  { %2215 = vmatpush.msrb.mxu3 %v3883_v34  ;;  %2235 = vmatpush.msra.mxu0 %v3886_v36 }
 0x841   :  { %2216 = vmatpush.msrb.mxu3 %v3889_v40  ;;  %2236 = vmatpush.msra.mxu0 %v3892_v46 }
 0x843   :  { %2217 = vmatpush.msrb.mxu3 %v3895_v53  ;;  %2237 = vmatpush.msra.mxu0 %v3898_v54 }
 0x8a5   :  { %v1796_v37 = vpop.permute.xlu1 %1795 }
 0x8a8   :  { %v1668_v48 = vpop.f32.mrf.mxu1 }
 0x8ab   :  { %v1859_v8 = vpop.permute.xlu0 %1858 }
 0x8ae   :  { %v1688_v0 = vpop.f32.mrf.mxu2  ;;  %v1739_v23 = vpop.f32.mrf.mxu0 }
 0x8af   :  { %v1693_v52 = vrot.slane %v1688_v0, 6  ;;  %v1744_v20 = vrot.slane %v1739_v23, 6 }
 0x8b1   :  { %v1694_v21 = vsel %vm117_vm1, %v1668_v48, %v1693_v52 }
 0x8b2   :  { %v1696_v7 = vadd.f32 %v1694_v21, %v3650_v26 }
 0x8b4   :  { %v2779_v14 = vmul.f32 -1.442695, %v1696_v7  ;;  %1771 = vrot.lane.b32.xlu0 %v1696_v7, %s3154_s7  ;;  %v1719_v47 = vpop.f32.mrf.mxu3  ;;  %v1768_v33 = vrot.slane %v1696_v7, 2 }
 0x8b5   :  { %v1745_v12 = vsel %vm117_vm1, %v1719_v47, %v1744_v20 }
 0x8b6   :  { %2937 = vpow2.f32 %v2779_v14  ;;  %v1747_v17 = vadd.f32 %v1745_v12, %v1697_v60 }
 0x8b8   :  { %v2781_v15 = vmul.f32 -1.442695, %v1747_v17  ;;  %v1831_v2 = vrot.slane %v1747_v17, 2 }
 0x8ba   :  { %2939 = vpow2.f32 %v2781_v15 }
 0x8bc   :  { %v2938_v18 = vpop.eup %2937 }
 0x8bd   :  { %v1751_v4 = vadd.f32 1.0, %v2938_v18 }
 0x8bf   :  { %2941 = vrcp.f32 %v1751_v4  ;;  %v1761_v46 = vand.u32 2147483647, %v1751_v4  ;;  %v1763_v53 = vand.u32 2147483648, %v1751_v4  ;;  %vm1757_vm12 = vweird.f32 %v1751_v4 }
 0x8c0   :  { %v2940_v29 = vpop.eup %2939 }
 0x8c1   :  { %v1814_v31 = vadd.f32 1.0, %v2940_v29  ;;  %vm1762_vm14 = vcmp.eq.f32.partialorder %v1761_v46, 8.507059e+37  ;;  %v1764_v5 = vor.u32 1.1754944e-38, %v1763_v53 }
 0x8c3   :  { %2943 = vrcp.f32 %v1814_v31  ;;  %v1826_v50 = vand.u32 2147483648, %v1814_v31  ;;  %v1824_v19 = vand.u32 2147483647, %v1814_v31  ;;  %vm1820_vm0 = vweird.f32 %v1814_v31 }
 0x8c4   :  { %2945 = vtanh.f32 %v1768_v33 }
 0x8c5   :  { %v2942_v26 = vpop.eup %2941  ;;  %2947 = vtanh.f32 %v1831_v2  ;;  %v1827_v41 = vor.u32 1.1754944e-38, %v1826_v50  ;;  %vm1825_vm3 = vcmp.eq.f32.partialorder %v1824_v19, 8.507059e+37  ;;  %v1875_v2 = vmul.f32 %v4021_v59, %v4019_v32  ;;  %v3065_v50 = vld [vmem:[#allocation3 + $0x70] sm:$0xff]  ;;  %v3066_v32 = vld [vmem:[#allocation3 + $0x78] sm:$0xff] }
 0x8c6   :  { %v1753_v34 = vmul.f32 %v2942_v26, %v1751_v4  ;;  %vm1758_vm11 = vweird.f32 %v2942_v26 }
 0x8c7   :  { %vm1759_vm13 = vmor %vm1757_vm12, %vm1758_vm11 }
 0x8c8   :  { %v1754_v36 = vsub.f32 1.0, %v1753_v34 }
 0x8c9   :  { %v2944_v40 = vpop.eup %2943 }
 0x8ca   :  { %v1755_v54 = vmul.f32 %v2942_v26, %v1754_v36  ;;  %v1816_v11 = vmul.f32 %v2944_v40, %v1814_v31  ;;  %vm1821_vm15 = vweird.f32 %v2944_v40  ;;  %v2946_v10 = vpop.eup %2945 }
 0x8cb   :  { %vm1822_vm2 = vmor %vm1820_vm0, %vm1821_vm15  ;;  %v2948_v3 = vpop.eup %2947 }
 0x8cc   :  { %v1756_v44 = vadd.f32 %v2942_v26, %v1755_v54  ;;  %v1817_v57 = vsub.f32 1.0, %v1816_v11 }
 0x8ce   :  { %v1760_v9 = vsel %vm1759_vm13, %v2942_v26, %v1756_v44  ;;  %v1818_v58 = vmul.f32 %v2944_v40, %v1817_v57 }
 0x8cf   :  { %v1765_v61 = vsel %vm1762_vm14, %v1764_v5, %v1760_v9  ;;  %v1884_v9 = vmul.f32 %v4021_v59, %v4040_v39  ;;  %v3070_v59 = vld [vmem:[#allocation3 + $0x58] sm:$0xff]  ;;  %v3072_v39 = vld [vmem:[#allocation3 + $0x48] sm:$0xff] }
 0x8d0   :  { %v1799_v42 = vmul.f32 %v2946_v10, %v1765_v61  ;;  %v1819_v30 = vadd.f32 %v2944_v40, %v1818_v58  ;;  %v1798_v6 = vmul.f32 %v1796_v37, %v1765_v61  ;;  %v3067_v10 = vld [vmem:[#allocation3 + $0x60] sm:$0xff]  ;;  %v3077_v37 = vld [vmem:[#allocation3 + $0x10] sm:$0xff] }
 0x8d2   :  { %1801 = vrot.lane.b32.xlu2 %v1799_v42, %s3154_s7  ;;  %v1823_v24 = vsel %vm1822_vm2, %v2944_v40, %v1819_v30  ;;  %v3069_v42 = vld [vmem:[#allocation3 + $0x50] sm:$0xff] }
 0x8d3   :  { %v1828_v51 = vsel %vm1825_vm3, %v1827_v41, %v1823_v24  ;;  %v3073_v41 = vld [vmem:[#allocation3 + $0x30] sm:$0xff] }
 0x8d4   :  { %v1862_v28 = vmul.f32 %v2948_v3, %v1828_v51  ;;  %v1861_v49 = vmul.f32 %v1859_v8, %v1828_v51  ;;  %v3074_v3 = vld [vmem:[#allocation3 + $0x38] sm:$0xff]  ;;  %v3075_v51 = vld [vmem:[#allocation3 + $0x20] sm:$0xff]  ;;  %v3080_v8 = vld [vmem:[#allocation3 + $0x8] sm:$0xff] }
 0x8d6   :  { %1864 = vrot.lane.b32.xlu1 %v1862_v28, %s3154_s7  ;;  %v3076_v28 = vld [vmem:[#allocation3 + $0x28] sm:$0xff] }
 0x8da   :  { %1834 = vrot.lane.b32.xlu2 %v1747_v17, %s3154_s7 }
 0x926   :  { %v1772_v52 = vpop.permute.xlu0 %1771 }
 0x927   :  { %v1773_v48 = vrot.slane %v1772_v52, 2 }
 0x929   :  { %v2780_v23 = vmul.f32 -1.442695, %v1773_v48 }
 0x92c   :  { %v1802_v45 = vpop.permute.xlu2 %1801 }
 0x92d   :  { %v1804_v13 = vadd.f32 %v1802_v45, %v1798_v6  ;;  %v3078_v45 = vld [vmem:[#allocation3 + $0x18] sm:$0xff] }
 0x92f   :  { %2949 = vtanh.f32 %v1804_v13  ;;  %1878 = vst [vmem:[#allocation1] ss:$4 sm:$0xff] %v1804_v13 }
 0x934   :  { %v1835_v20 = vpop.permute.xlu2 %1834 }
 0x935   :  { %v2950_v16 = vpop.eup %2949  ;;  %v1836_v22 = vrot.slane %v1835_v20, 2  ;;  %v3084_v20 = vld [vmem:[#allocation5 + $0x68] sm:$0xff] }
 0x936   :  { %1807 = vrot.lane.b32.xlu1 %v2950_v16, %s3154_s7  ;;  %v1879_v62 = vld.sshfl [vmem:[#allocation1] sm:$0xff pattern:$0x73625140]  ;;  %v3079_v16 = vld [vmem:[#allocation3] sm:$0xff] }
 0x937   :  { %v2782_v47 = vmul.f32 -1.442695, %v1836_v22  ;;  %v3088_v22 = vld [vmem:[#allocation5 + $0x48] sm:$0xff] }
 0x93e   :  { %1880 = vrot.lane.b32.xlu1 %v1879_v62, %s3154_s7 }
 0x948   :  { %v1865_v38 = vpop.permute.xlu1 %1864 }
 0x949   :  { %v1867_v55 = vadd.f32 %v1865_v38, %v1861_v49 }
 0x94b   :  { %2951 = vtanh.f32 %v1867_v55  ;;  %1890 = vst [vmem:[#allocation1] ss:$4 sm:$0xff] %v1867_v55 }
 0x94c   :  { %2953 = vpow2.f32 %v2780_v23  ;;  %v3081_v23 = vld [vmem:[#allocation5 + $0x70] sm:$0xff] }
 0x951   :  { %v2952_v56 = vpop.eup %2951 }
 0x952   :  { %1870 = vrot.lane.b32.xlu0 %v2952_v56, %s3154_s7  ;;  %v1891_v0 = vld.sshfl [vmem:[#allocation1] sm:$0xff pattern:$0x73625140]  ;;  %v2954_v21 = vpop.eup %2953 }
 0x953   :  { %1892 = vrot.lane.b32.xlu2 %v1891_v0, %s3154_s7  ;;  %v1778_v7 = vadd.f32 1.0, %v2954_v21  ;;  %v3082_v21 = vld [vmem:[#allocation5 + $0x78] sm:$0xff] }
 0x955   :  { %2955 = vrcp.f32 %v1778_v7  ;;  %v1790_v4 = vand.u32 2147483648, %v1778_v7  ;;  %vm1784_vm5 = vweird.f32 %v1778_v7  ;;  %v1788_v29 = vand.u32 2147483647, %v1778_v7 }
 0x956   :  { %2957 = vpow2.f32 %v2782_v47  ;;  %v3090_v47 = vld [vmem:[#allocation5 + $0x38] sm:$0xff] }
 0x957   :  { %v1791_v33 = vor.u32 1.1754944e-38, %v1790_v4  ;;  %vm1789_vm8 = vcmp.eq.f32.partialorder %v1788_v29, 8.507059e+37  ;;  %v3095_v4 = vld [vmem:[#allocation5] sm:$0xff]  ;;  %v3096_v29 = vld [vmem:[#allocation5 + $0x8] sm:$0xff] }
 0x95b   :  { %v2956_v14 = vpop.eup %2955 }
 0x95c   :  { %v1780_v60 = vmul.f32 %v2956_v14, %v1778_v7  ;;  %v2958_v15 = vpop.eup %2957  ;;  %vm1785_vm4 = vweird.f32 %v2956_v14  ;;  %v3083_v7 = vld [vmem:[#allocation5 + $0x60] sm:$0xff] }
 0x95d   :  { %v4093_v31 = vadd.f32 1.0, %v2958_v15  ;;  %vm1786_vm7 = vmor %vm1784_vm5, %vm1785_vm4  ;;  %v3093_v15 = vld [vmem:[#allocation5 + $0x10] sm:$0xff] }
 0x95e   :  { %v1781_v12 = vsub.f32 1.0, %v1780_v60  ;;  %v3089_v60 = vld [vmem:[#allocation5 + $0x30] sm:$0xff] }
 0x95f   :  { %2959 = vrcp.f32 %v4093_v31  ;;  %v1853_v13 = vand.u32 2147483648, %v4093_v31  ;;  %vm1847_vm11 = vweird.f32 %v4093_v31  ;;  %v1851_v62 = vand.u32 2147483647, %v4093_v31 }
 0x960   :  { %v1782_v17 = vmul.f32 %v2956_v14, %v1781_v12  ;;  %v3091_v12 = vld [vmem:[#allocation5 + $0x20] sm:$0xff] }
 0x961   :  { %v1854_v38 = vor.u32 1.1754944e-38, %v1853_v13  ;;  %vm1852_vm13 = vcmp.eq.f32.partialorder %v1851_v62, 8.507059e+37 }
 0x962   :  { %v1783_v18 = vadd.f32 %v2956_v14, %v1782_v17  ;;  %v3092_v17 = vld [vmem:[#allocation5 + $0x28] sm:$0xff] }
 0x964   :  { %v1787_v26 = vsel %vm1786_vm7, %v2956_v14, %v1783_v18  ;;  %v3085_v14 = vld [vmem:[#allocation5 + $0x50] sm:$0xff]  ;;  %v3094_v18 = vld [vmem:[#allocation5 + $0x18] sm:$0xff] }
 0x965   :  { %v1792_v34 = vsel %vm1789_vm8, %v1791_v33, %v1787_v26  ;;  %v2960_v11 = vpop.eup %2959 }
 0x966   :  { %v1843_v19 = vmul.f32 %v2960_v11, %v4093_v31  ;;  %vm1848_vm9 = vweird.f32 %v2960_v11 }
 0x967   :  { %vm1849_vm12 = vmor %vm1847_vm11, %vm1848_vm9 }
 0x968   :  { %v1844_v30 = vsub.f32 1.0, %v1843_v19  ;;  %v4366_v19 = vrot.slane %v3627_v1, 4 }
 0x96a   :  { %v1845_v24 = vmul.f32 %v2960_v11, %v1844_v30 }
 0x96c   :  { %v1846_v6 = vadd.f32 %v2960_v11, %v1845_v24 }
 0x96e   :  { %v1850_v49 = vsel %vm1849_vm12, %v2960_v11, %v1846_v6 }
 0x96f   :  { %v1855_v55 = vsel %vm1852_vm13, %v1854_v38, %v1850_v49 }
 0x9a8   :  { %v1808_v36 = vpop.permute.xlu1 %1807 }
 0x9a9   :  { %v1810_v40 = vmul.f32 %v1808_v36, %v1792_v34  ;;  %v4365_v36 = vrot.slane %v3647_v25, 2 }
 0x9ab   :  { %v1874_v46 = vmul.f32 %v1810_v40, %v4027_v35 }
 0x9ad   :  { %v4099_v53 = vadd.f32 %v1875_v2, %v1874_v46  ;;  %v1893_v54 = vpop.permute.xlu2 %1892 }
 0x9ae   :  { %v1895_v44 = vmul.f32 %v1893_v54, %v4015_v43 }
 0x9af   :  { %2783 = vmatmul.msk.f32.vlgmr.msra.gmra.mxu1 %vm572_vm10, %v4099_v53  ;;  %2784 = vmatmul.msk.f32.vlgmr.msra.gmra.mxu2 %vm572_vm10, %v4099_v53 }
 0x9b0   :  { %v4107_v57 = vadd.f32 %v4065_v63, %v1895_v44  ;;  %v1881_v5 = vpop.permute.xlu1 %1880  ;;  %2409 = vmatpush.msra.mxu1 %v3065_v50  ;;  %2429 = vmatpush.msra.mxu2 %v3066_v32  ;;  %v3068_v63 = vld [vmem:[#allocation3 + $0x68] sm:$0xff] }
 0x9b1   :  { %v1883_v58 = vmul.f32 %v1881_v5, %v4027_v35  ;;  %v3071_v35 = vld [vmem:[#allocation3 + $0x40] sm:$0xff] }
 0x9b2   :  { %2108 = vrot.lane.b32.xlu0 %v4107_v57, %s3154_s7  ;;  %2410 = vmatpush.msra.mxu1 %v3067_v10  ;;  %v1947_v10 = vrot.slane %v4366_v19, 4  ;;  %v4367_v19 = vld [vmem:[#allocation23_spill] sm:$0xff] }
 0x9b3   :  { %v4115_v61 = vadd.f32 %v1884_v9, %v1883_v58  ;;  %2430 = vmatpush.msra.mxu2 %v3068_v63 }
 0x9b4   :  { %2411 = vmatpush.msra.mxu1 %v3069_v42 }
 0x9b5   :  { %2045 = vrot.lane.b32.xlu2 %v4115_v61, %s3154_s7  ;;  %2431 = vmatpush.msra.mxu2 %v3070_v59 }
 0x9b6   :  { %2412 = vmatpush.msra.mxu1 %v3071_v35 }
 0x9b7   :  { %2432 = vmatpush.msra.mxu2 %v3072_v39 }
 0x9b8   :  { %2413 = vmatpush.msra.mxu1 %v3073_v41 }
 0x9b9   :  { %2433 = vmatpush.msra.mxu2 %v3074_v3 }
 0x9ba   :  { %2414 = vmatpush.msra.mxu1 %v3075_v51 }
 0x9bb   :  { %2434 = vmatpush.msra.mxu2 %v3076_v28 }
 0x9bc   :  { %2415 = vmatpush.msra.mxu1 %v3077_v37 }
 0x9bd   :  { %2435 = vmatpush.msra.mxu2 %v3078_v45 }
 0x9be   :  { %2416 = vmatpush.msra.mxu1 %v3079_v16 }
 0x9bf   :  { %2436 = vmatpush.msra.mxu2 %v3080_v8 }
 0x9c4   :  { %v1871_v56 = vpop.permute.xlu0 %1870 }
 0x9c5   :  { %v1873_v0 = vmul.f32 %v1871_v56, %v1855_v55 }
 0x9c7   :  { %v1886_v52 = vmul.f32 %v1873_v0, %v4015_v43  ;;  %v3086_v43 = vld [vmem:[#allocation5 + $0x58] sm:$0xff] }
 0x9c9   :  { %v4124_v48 = vadd.f32 %v4044_v27, %v1886_v52  ;;  %v3087_v27 = vld [vmem:[#allocation5 + $0x40] sm:$0xff] }
 0x9cb   :  { %2785 = vmatmul.msk.f32.vlgmr.msra.gmra.mxu3 %vm572_vm10, %v4124_v48  ;;  %2786 = vmatmul.msk.f32.vlgmr.msrb.gmra.mxu0 %vm572_vm10, %v4124_v48 }
 0x9cc   :  { %2460 = vmatpush.msra.mxu3 %v3081_v23  ;;  %2480 = vmatpush.msrb.mxu0 %v3082_v21 }
 0x9ce   :  { %2461 = vmatpush.msra.mxu3 %v3083_v7  ;;  %2481 = vmatpush.msrb.mxu0 %v3084_v20 }
 0x9d0   :  { %2462 = vmatpush.msra.mxu3 %v3085_v14  ;;  %2482 = vmatpush.msrb.mxu0 %v3086_v43 }
 0x9d2   :  { %2463 = vmatpush.msra.mxu3 %v3087_v27  ;;  %2483 = vmatpush.msrb.mxu0 %v3088_v22 }
 0x9d4   :  { %2464 = vmatpush.msra.mxu3 %v3089_v60  ;;  %2484 = vmatpush.msrb.mxu0 %v3090_v47 }
 0x9d6   :  { %2465 = vmatpush.msra.mxu3 %v3091_v12  ;;  %2485 = vmatpush.msrb.mxu0 %v3092_v17 }
 0x9d8   :  { %2466 = vmatpush.msra.mxu3 %v3093_v15  ;;  %2486 = vmatpush.msrb.mxu0 %v3094_v18 }
 0x9da   :  { %2467 = vmatpush.msra.mxu3 %v3095_v4  ;;  %2487 = vmatpush.msrb.mxu0 %v3096_v29 }
 0xa0f   :  { %v2046_v7 = vpop.permute.xlu2 %2045 }
 0xa24   :  { %v2109_v21 = vpop.permute.xlu0 %2108 }
 0xa2c   :  { %v1918_v33 = vpop.f32.mrf.mxu1 }
 0xa32   :  { %v1938_v31 = vpop.f32.mrf.mxu2 }
 0xa33   :  { %v1943_v26 = vrot.slane %v1938_v31, 6 }
 0xa35   :  { %v1944_v34 = vsel %vm117_vm1, %v1918_v33, %v1943_v26 }
 0xa36   :  { %v1946_v40 = vadd.f32 %v1944_v34, %v4365_v36 }
 0xa38   :  { %v2787_v2 = vmul.f32 -1.442695, %v1946_v40  ;;  %v2018_v44 = vrot.slane %v1946_v40, 2 }
 0xa3a   :  { %2961 = vpow2.f32 %v2787_v2 }
 0xa40   :  { %v2962_v46 = vpop.eup %2961 }
 0xa41   :  { %v2001_v54 = vadd.f32 1.0, %v2962_v46 }
 0xa43   :  { %2963 = vrcp.f32 %v2001_v54  ;;  %v2013_v58 = vand.u32 2147483648, %v2001_v54  ;;  %v2011_v25 = vand.u32 2147483647, %v2001_v54  ;;  %vm2007_vm15 = vweird.f32 %v2001_v54 }
 0xa44   :  { %2965 = vtanh.f32 %v2018_v44 }
 0xa45   :  { %v2014_v39 = vor.u32 1.1754944e-38, %v2013_v58  ;;  %vm2012_vm2 = vcmp.eq.f32.partialorder %v2011_v25, 8.507059e+37 }
 0xa48   :  { %v1989_v5 = vpop.f32.mrf.mxu0 }
 0xa49   :  { %v2964_v11 = vpop.eup %2963  ;;  %v1994_v9 = vrot.slane %v1989_v5, 6 }
 0xa4a   :  { %v2003_v50 = vmul.f32 %v2964_v11, %v2001_v54  ;;  %vm2008_vm14 = vweird.f32 %v2964_v11  ;;  %v2966_v3 = vpop.eup %2965 }
 0xa4b   :  { %vm2009_vm0 = vmor %vm2007_vm15, %vm2008_vm14 }
 0xa4c   :  { %v2004_v32 = vsub.f32 1.0, %v2003_v50 }
 0xa4e   :  { %v1969_v63 = vpop.f32.mrf.mxu3  ;;  %v2005_v42 = vmul.f32 %v2964_v11, %v2004_v32 }
 0xa4f   :  { %v1995_v30 = vsel %vm117_vm1, %v1969_v63, %v1994_v9  ;;  %v4368_v63 = vld [vmem:[#allocation24_spill] sm:$0xff] }
 0xa50   :  { %v1997_v59 = vadd.f32 %v1995_v30, %v1947_v10  ;;  %v2006_v35 = vadd.f32 %v2964_v11, %v2005_v42  ;;  %v2125_v10 = vmul.f32 %v4099_v53, %v4367_v19 }
 0xa52   :  { %v2789_v41 = vmul.f32 -1.442695, %v1997_v59  ;;  %2084 = vrot.lane.b32.xlu2 %v1997_v59, %s3154_s7  ;;  %v2010_v24 = vsel %vm2009_vm0, %v2964_v11, %v2006_v35  ;;  %v2081_v45 = vrot.slane %v1997_v59, 2 }
 0xa53   :  { %v2015_v51 = vsel %vm2012_vm2, %v2014_v39, %v2010_v24 }
 0xa54   :  { %2967 = vpow2.f32 %v2789_v41  ;;  %v2049_v1 = vmul.f32 %v2966_v3, %v2015_v51  ;;  %v2048_v20 = vmul.f32 %v2046_v7, %v2015_v51 }
 0xa56   :  { %2051 = vrot.lane.b32.xlu0 %v2049_v1, %s3154_s7 }
 0xa5a   :  { %v2968_v28 = vpop.eup %2967 }
 0xa5b   :  { %v2064_v37 = vadd.f32 1.0, %v2968_v28 }
 0xa5d   :  { %2969 = vrcp.f32 %v2064_v37  ;;  %v2076_v62 = vand.u32 2147483648, %v2064_v37  ;;  %v2074_v49 = vand.u32 2147483647, %v2064_v37  ;;  %vm2070_vm4 = vweird.f32 %v2064_v37 }
 0xa5e   :  { %2971 = vtanh.f32 %v2081_v45 }
 0xa5f   :  { %v2077_v55 = vor.u32 1.1754944e-38, %v2076_v62  ;;  %vm2075_vm7 = vcmp.eq.f32.partialorder %v2074_v49, 8.507059e+37  ;;  %v4369_v62 = vld [vmem:[#allocation21_spill] sm:$0xff]  ;;  %v4370_v49 = vld [vmem:[#allocation22_spill] sm:$0xff] }
 0xa63   :  { %v2970_v6 = vpop.eup %2969 }
 0xa64   :  { %v2066_v13 = vmul.f32 %v2970_v6, %v2064_v37  ;;  %vm2071_vm3 = vweird.f32 %v2970_v6  ;;  %v2972_v0 = vpop.eup %2971 }
 0xa65   :  { %vm2072_vm5 = vmor %vm2070_vm4, %vm2071_vm3 }
 0xa66   :  { %v2067_v16 = vsub.f32 1.0, %v2066_v13 }
 0xa68   :  { %v2068_v8 = vmul.f32 %v2970_v6, %v2067_v16 }
 0xa6a   :  { %v2069_v38 = vadd.f32 %v2970_v6, %v2068_v8  ;;  %v2146_v8 = vmul.f32 %v4107_v57, %v4369_v62 }
 0xa6c   :  { %v2073_v56 = vsel %vm2072_vm5, %v2970_v6, %v2069_v38 }
 0xa6d   :  { %v2078_v52 = vsel %vm2075_vm7, %v2077_v55, %v2073_v56  ;;  %v2137_v55 = vmul.f32 %v4124_v48, %v4369_v62 }
 0xa6e   :  { %v2112_v23 = vmul.f32 %v2972_v0, %v2078_v52  ;;  %v2111_v22 = vmul.f32 %v2109_v21, %v2078_v52 }
 0xa70   :  { %2114 = vrot.lane.b32.xlu1 %v2112_v23, %s3154_s7  ;;  %v2134_v23 = vmul.f32 %v4115_v61, %v4367_v19 }
 0xa78   :  { %2021 = vrot.lane.b32.xlu1 %v1946_v40, %s3154_s7 }
 0xaac   :  { %v2085_v2 = vpop.permute.xlu2 %2084 }
 0xaad   :  { %v2086_v9 = vrot.slane %v2085_v2, 2 }
 0xaaf   :  { %v2790_v25 = vmul.f32 -1.442695, %v2086_v9 }
 0xac8   :  { %v2052_v14 = vpop.permute.xlu0 %2051 }
 0xac9   :  { %v2054_v43 = vadd.f32 %v2052_v14, %v2048_v20 }
 0xacb   :  { %2973 = vtanh.f32 %v2054_v43  ;;  %2128 = vst [vmem:[#allocation1] ss:$4 sm:$0xff] %v2054_v43 }
 0xad1   :  { %v2974_v27 = vpop.eup %2973 }
 0xad2   :  { %2057 = vrot.lane.b32.xlu2 %v2974_v27, %s3154_s7  ;;  %v2129_v12 = vld.sshfl [vmem:[#allocation1] sm:$0xff pattern:$0x73625140] }
 0xad3   :  { %v4371_v27 = vld [vmem:[#allocation11_spill] sm:$0xff] }
 0xae2   :  { %v2115_v60 = vpop.permute.xlu1 %2114 }
 0xae3   :  { %v2117_v47 = vadd.f32 %v2115_v60, %v2111_v22  ;;  %v4372_v22 = vrot.slane %v4371_v27, 4 }
 0xae5   :  { %2975 = vtanh.f32 %v2117_v47  ;;  %2140 = vst [vmem:[#allocation1] ss:$4 sm:$0xff] %v2117_v47 }
 0xaea   :  { %v2022_v18 = vpop.permute.xlu1 %2021 }
 0xaeb   :  { %v2976_v17 = vpop.eup %2975  ;;  %v2023_v4 = vrot.slane %v2022_v18, 2 }
 0xaec   :  { %2120 = vrot.lane.b32.xlu0 %v2976_v17, %s3154_s7  ;;  %v2141_v15 = vld.sshfl [vmem:[#allocation1] sm:$0xff pattern:$0x73625140] }
 0xaed   :  { %2142 = vrot.lane.b32.xlu1 %v2141_v15, %s3154_s7  ;;  %v2788_v29 = vmul.f32 -1.442695, %v2023_v4 }
 0xaef   :  { %2977 = vpow2.f32 %v2788_v29 }
 0xaf4   :  { %2130 = vrot.lane.b32.xlu0 %v2129_v12, %s3154_s7 }
 0xaf5   :  { %v2978_v31 = vpop.eup %2977 }
 0xaf6   :  { %v2028_v26 = vadd.f32 1.0, %v2978_v31 }
 0xaf8   :  { %2979 = vrcp.f32 %v2028_v26  ;;  %v2040_v54 = vand.u32 2147483648, %v2028_v26  ;;  %vm2034_vm9 = vweird.f32 %v2028_v26  ;;  %v2038_v11 = vand.u32 2147483647, %v2028_v26 }
 0xaf9   :  { %2981 = vpow2.f32 %v2790_v25 }
 0xafa   :  { %v2041_v5 = vor.u32 1.1754944e-38, %v2040_v54  ;;  %vm2039_vm12 = vcmp.eq.f32.partialorder %v2038_v11, 8.507059e+37 }
 0xafe   :  { %v2980_v33 = vpop.eup %2979 }
 0xaff   :  { %v2030_v34 = vmul.f32 %v2980_v33, %v2028_v26  ;;  %vm2035_vm8 = vweird.f32 %v2980_v33  ;;  %v2982_v59 = vpop.eup %2981 }
 0xb00   :  { %vm2036_vm11 = vmor %vm2034_vm9, %vm2035_vm8  ;;  %v2091_v35 = vadd.f32 1.0, %v2982_v59 }
 0xb01   :  { %v2031_v36 = vsub.f32 1.0, %v2030_v34 }
 0xb02   :  { %2983 = vrcp.f32 %v2091_v35  ;;  %v2103_v51 = vand.u32 2147483648, %v2091_v35  ;;  %vm2097_vm14 = vweird.f32 %v2091_v35  ;;  %v2101_v1 = vand.u32 2147483647, %v2091_v35 }
 0xb03   :  { %v2032_v40 = vmul.f32 %v2980_v33, %v2031_v36 }
 0xb04   :  { %v2104_v37 = vor.u32 1.1754944e-38, %v2103_v51  ;;  %vm2102_vm0 = vcmp.eq.f32.partialorder %v2101_v1, 8.507059e+37 }
 0xb05   :  { %v2033_v46 = vadd.f32 %v2980_v33, %v2032_v40 }
 0xb07   :  { %v2037_v44 = vsel %vm2036_vm11, %v2980_v33, %v2033_v46 }
 0xb08   :  { %v2042_v32 = vsel %vm2039_vm12, %v2041_v5, %v2037_v44  ;;  %v2984_v39 = vpop.eup %2983  ;;  %v4373_v44 = vld [vmem:[#allocation9_spill] sm:$0xff] }
 0xb09   :  { %v2093_v41 = vmul.f32 %v2984_v39, %v2091_v35  ;;  %vm2098_vm13 = vweird.f32 %v2984_v39  ;;  %v4374_v5 = vrot.slane %v4373_v44, 2 }
 0xb0a   :  { %vm2099_vm15 = vmor %vm2097_vm14, %vm2098_vm13 }
 0xb0b   :  { %v2094_v24 = vsub.f32 1.0, %v2093_v41 }
 0xb0d   :  { %v2095_v3 = vmul.f32 %v2984_v39, %v2094_v24 }
 0xb0f   :  { %v2096_v53 = vadd.f32 %v2984_v39, %v2095_v3 }
 0xb11   :  { %v2100_v28 = vsel %vm2099_vm15, %v2984_v39, %v2096_v53 }
 0xb12   :  { %v2105_v6 = vsel %vm2102_vm0, %v2104_v37, %v2100_v28 }
 0xb2c   :  { %v2058_v50 = vpop.permute.xlu2 %2057 }
 0xb2d   :  { %v2060_v58 = vmul.f32 %v2058_v50, %v2042_v32  ;;  %v2197_v50 = vrot.slane %v4374_v5, 4 }
 0xb2f   :  { %v2124_v42 = vmul.f32 %v2060_v58, %v4368_v63 }
 0xb31   :  { %v4147_v30 = vadd.f32 %v2125_v10, %v2124_v42 }
 0xb33   :  { %2791 = vmatmul.msk.f32.vlgmr.msrb.gmra.mxu1 %vm572_vm10, %v4147_v30  ;;  %2792 = vmatmul.msk.f32.vlgmr.msrb.gmra.mxu2 %vm572_vm10, %v4147_v30 }
 0xb5e   :  { %v2121_v45 = vpop.permute.xlu0 %2120 }
 0xb5f   :  { %v2123_v13 = vmul.f32 %v2121_v45, %v2105_v6  ;;  %v2143_v16 = vpop.permute.xlu1 %2142 }
 0xb60   :  { %v2145_v38 = vmul.f32 %v2143_v16, %v4370_v49 }
 0xb61   :  { %v2136_v56 = vmul.f32 %v2123_v13, %v4370_v49 }
 0xb62   :  { %v4159_v0 = vadd.f32 %v2146_v8, %v2145_v38 }
 0xb63   :  { %v4161_v52 = vadd.f32 %v2137_v55, %v2136_v56 }
 0xb64   :  { %2358 = vrot.lane.b32.xlu2 %v4159_v0, %s3154_s7 }
 0xb65   :  { %2793 = vmatmul.msk.f32.vlgmr.msrb.gmra.mxu3 %vm572_vm10, %v4161_v52  ;;  %2794 = vmatmul.msk.f32.vlgmr.msra.gmra.mxu0 %vm572_vm10, %v4161_v52 }
 0xb66   :  { %v2131_v57 = vpop.permute.xlu0 %2130 }
 0xb67   :  { %v2133_v48 = vmul.f32 %v2131_v57, %v4368_v63 }
 0xb69   :  { %v4172_v21 = vadd.f32 %v2134_v23, %v2133_v48 }
 0xb6b   :  { %2295 = vrot.lane.b32.xlu0 %v4172_v21, %s3154_s7 }
 0xbb0   :  { %v2168_v14 = vpop.f32.mrf.mxu1 }
 0xbb6   :  { %v2188_v7 = vpop.f32.mrf.mxu2 }
 0xbb7   :  { %v2193_v20 = vrot.slane %v2188_v7, 6 }
 0xbb9   :  { %v2194_v43 = vsel %vm117_vm1, %v2168_v14, %v2193_v20 }
 0xbba   :  { %v2196_v60 = vadd.f32 %v2194_v43, %v4372_v22 }
 0xbbc   :  { %2271 = vrot.lane.b32.xlu0 %v2196_v60, %s3154_s7  ;;  %v2795_v47 = vmul.f32 -1.442695, %v2196_v60  ;;  %v2268_v15 = vrot.slane %v2196_v60, 2 }
 0xbbe   :  { %2985 = vpow2.f32 %v2795_v47  ;;  %v2359_v28 = vpop.permute.xlu2 %2358 }
 0xbc4   :  { %v2986_v61 = vpop.eup %2985 }
 0xbc5   :  { %v2251_v12 = vadd.f32 1.0, %v2986_v61 }
 0xbc7   :  { %2987 = vrcp.f32 %v2251_v12  ;;  %v2263_v29 = vand.u32 2147483648, %v2251_v12  ;;  %v2261_v26 = vand.u32 2147483647, %v2251_v12  ;;  %vm2257_vm3 = vweird.f32 %v2251_v12 }
 0xbc8   :  { %2989 = vtanh.f32 %v2268_v15 }
 0xbc9   :  { %v2264_v34 = vor.u32 1.1754944e-38, %v2263_v29  ;;  %vm2262_vm5 = vcmp.eq.f32.partialorder %v2261_v26, 8.507059e+37 }
 0xbcd   :  { %v2988_v17 = vpop.eup %2987 }
 0xbce   :  { %v2253_v18 = vmul.f32 %v2988_v17, %v2251_v12  ;;  %vm2258_vm2 = vweird.f32 %v2988_v17  ;;  %v2990_v40 = vpop.eup %2989 }
 0xbcf   :  { %vm2259_vm4 = vmor %vm2257_vm3, %vm2258_vm2 }
 0xbd0   :  { %v2254_v4 = vsub.f32 1.0, %v2253_v18 }
 0xbd2   :  { %v2255_v31 = vmul.f32 %v2988_v17, %v2254_v4 }
 0xbd4   :  { %v2256_v33 = vadd.f32 %v2988_v17, %v2255_v31 }
 0xbd6   :  { %v2260_v36 = vsel %vm2259_vm4, %v2988_v17, %v2256_v33 }
 0xbd7   :  { %v2265_v2 = vsel %vm2262_vm5, %v2264_v34, %v2260_v36  ;;  %v4375_v36 = vld [vmem:[#allocation20_spill] sm:$0xff] }
 0xbd8   :  { %v2299_v46 = vmul.f32 %v2990_v40, %v2265_v2  ;;  %v2375_v40 = vmul.f32 %v4147_v30, %v4375_v36 }
 0xbda   :  { %2301 = vrot.lane.b32.xlu2 %v2299_v46, %s3154_s7 }
 0xbdd   :  { %v2296_v13 = vpop.permute.xlu0 %2295 }
 0xbde   :  { %v2298_v16 = vmul.f32 %v2296_v13, %v2265_v2  ;;  %v4376_v2 = vld [vmem:[#allocation19_spill] sm:$0xff] }
 0xbe2   :  { %v2239_v54 = vpop.f32.mrf.mxu0 }
 0xbe3   :  { %v2244_v11 = vrot.slane %v2239_v54, 6 }
 0xbe8   :  { %v2219_v32 = vpop.f32.mrf.mxu3 }
 0xbe9   :  { %v2245_v9 = vsel %vm117_vm1, %v2219_v32, %v2244_v11 }
 0xbea   :  { %v2247_v58 = vadd.f32 %v2245_v9, %v2197_v50 }
 0xbec   :  { %v2797_v19 = vmul.f32 -1.442695, %v2247_v58  ;;  %v2331_v25 = vrot.slane %v2247_v58, 2 }
 0xbee   :  { %2991 = vpow2.f32 %v2797_v19 }
 0xbf4   :  { %v2992_v10 = vpop.eup %2991 }
 0xbf5   :  { %v2314_v63 = vadd.f32 1.0, %v2992_v10 }
 0xbf7   :  { %2993 = vrcp.f32 %v2314_v63  ;;  %v2326_v39 = vand.u32 2147483648, %v2314_v63  ;;  %v2324_v24 = vand.u32 2147483647, %v2314_v63  ;;  %vm2320_vm8 = vweird.f32 %v2314_v63 }
 0xbf8   :  { %2995 = vtanh.f32 %v2331_v25 }
 0xbf9   :  { %v2327_v53 = vor.u32 1.1754944e-38, %v2326_v39  ;;  %vm2325_vm11 = vcmp.eq.f32.partialorder %v2324_v24, 8.507059e+37 }
 0xbfd   :  { %v2994_v42 = vpop.eup %2993 }
 0xbfe   :  { %v2316_v59 = vmul.f32 %v2994_v42, %v2314_v63  ;;  %vm2321_vm7 = vweird.f32 %v2994_v42  ;;  %v2996_v1 = vpop.eup %2995 }
 0xbff   :  { %vm2322_vm9 = vmor %vm2320_vm8, %vm2321_vm7 }
 0xc00   :  { %v2317_v35 = vsub.f32 1.0, %v2316_v59 }
 0xc02   :  { %v2318_v41 = vmul.f32 %v2994_v42, %v2317_v35  ;;  %v4377_v35 = vld [vmem:[#allocation18_spill] sm:$0xff] }
 0xc03   :  { %v2387_v39 = vmul.f32 %v4161_v52, %v4377_v35 }
 0xc04   :  { %v2319_v3 = vadd.f32 %v2994_v42, %v2318_v41  ;;  %v4378_v41 = vld [vmem:[#allocation17_spill] sm:$0xff] }
 0xc06   :  { %v2323_v51 = vsel %vm2322_vm9, %v2994_v42, %v2319_v3 }
 0xc07   :  { %v2328_v37 = vsel %vm2325_vm11, %v2327_v53, %v2323_v51  ;;  %v2384_v51 = vmul.f32 %v4172_v21, %v4375_v36  ;;  %v4379_v21 = vld [vmem:[#allocation10_spill] sm:$0xff] }
 0xc08   :  { %v2362_v6 = vmul.f32 %v2996_v1, %v2328_v37  ;;  %v2361_v45 = vmul.f32 %v2359_v28, %v2328_v37  ;;  %v2396_v37 = vmul.f32 %v4159_v0, %v4377_v35 }
 0xc0a   :  { %2364 = vrot.lane.b32.xlu1 %v2362_v6, %s3154_s7 }
 0xc12   :  { %2334 = vrot.lane.b32.xlu1 %v2247_v58, %s3154_s7 }
 0xc2e   :  { %v2272_v38 = vpop.permute.xlu0 %2271 }
 0xc2f   :  { %v2273_v23 = vrot.slane %v2272_v38, 2 }
 0xc31   :  { %v2796_v48 = vmul.f32 -1.442695, %v2273_v23 }
 0xc34   :  { %v2302_v62 = vpop.permute.xlu2 %2301 }
 0xc35   :  { %v2304_v8 = vadd.f32 %v2302_v62, %v2298_v16 }
 0xc37   :  { %2997 = vtanh.f32 %v2304_v8  ;;  %2378 = vst [vmem:[#allocation1] ss:$4 sm:$0xff] %v2304_v8 }
 0xc3d   :  { %v2998_v49 = vpop.eup %2997 }
 0xc3e   :  { %2307 = vrot.lane.b32.xlu1 %v2998_v49, %s3154_s7  ;;  %v2379_v57 = vld.sshfl [vmem:[#allocation1] sm:$0xff pattern:$0x73625140]  ;;  %v4380_v49 = vrot.slane %v4379_v21, 6  ;;  %v2640_v21 = vld [vmem:[%s4313_s11 + $0x10] sm:$0xff] }
 0xc7c   :  { %v2365_v55 = vpop.permute.xlu1 %2364 }
 0xc7d   :  { %v2367_v56 = vadd.f32 %v2365_v55, %v2361_v45 }
 0xc7f   :  { %2999 = vtanh.f32 %v2367_v56  ;;  %2390 = vst [vmem:[#allocation1] ss:$4 sm:$0xff] %v2367_v56 }
 0xc80   :  { %3001 = vpow2.f32 %v2796_v48 }
 0xc84   :  { %v2335_v61 = vpop.permute.xlu1 %2334 }
 0xc85   :  { %v3000_v7 = vpop.eup %2999  ;;  %v2336_v29 = vrot.slane %v2335_v61, 2 }
 0xc86   :  { %2370 = vrot.lane.b32.xlu2 %v3000_v7, %s3154_s7  ;;  %v2391_v20 = vld.sshfl [vmem:[#allocation1] sm:$0xff pattern:$0x73625140]  ;;  %v3002_v14 = vpop.eup %3001 }
 0xc87   :  { %2392 = vrot.lane.b32.xlu0 %v2391_v20, %s3154_s7  ;;  %v2278_v43 = vadd.f32 1.0, %v3002_v14  ;;  %v2798_v34 = vmul.f32 -1.442695, %v2336_v29 }
 0xc89   :  { %3003 = vrcp.f32 %v2278_v43  ;;  %v2290_v17 = vand.u32 2147483648, %v2278_v43  ;;  %vm2284_vm13 = vweird.f32 %v2278_v43  ;;  %v2288_v15 = vand.u32 2147483647, %v2278_v43 }
 0xc8a   :  { %3005 = vpow2.f32 %v2798_v34 }
 0xc8b   :  { %v2291_v4 = vor.u32 1.1754944e-38, %v2290_v17  ;;  %vm2289_vm15 = vcmp.eq.f32.partialorder %v2288_v15, 8.507059e+37 }
 0xc8e   :  { %2380 = vrot.lane.b32.xlu2 %v2379_v57, %s3154_s7 }
 0xc8f   :  { %v3004_v27 = vpop.eup %3003 }
 0xc90   :  { %v2280_v22 = vmul.f32 %v3004_v27, %v2278_v43  ;;  %vm2285_vm12 = vweird.f32 %v3004_v27  ;;  %v3006_v11 = vpop.eup %3005 }
 0xc91   :  { %vm2286_vm14 = vmor %vm2284_vm13, %vm2285_vm12  ;;  %v2341_v44 = vadd.f32 1.0, %v3006_v11 }
 0xc92   :  { %v2281_v60 = vsub.f32 1.0, %v2280_v22 }
 0xc93   :  { %3007 = vrcp.f32 %v2341_v44  ;;  %v2353_v30 = vand.u32 2147483648, %v2341_v44  ;;  %vm2347_vm2 = vweird.f32 %v2341_v44  ;;  %v2351_v19 = vand.u32 2147483647, %v2341_v44 }
 0xc94   :  { %v2282_v47 = vmul.f32 %v3004_v27, %v2281_v60 }
 0xc95   :  { %v2354_v63 = vor.u32 1.1754944e-38, %v2353_v30  ;;  %vm2352_vm4 = vcmp.eq.f32.partialorder %v2351_v19, 8.507059e+37 }
 0xc96   :  { %v2283_v12 = vadd.f32 %v3004_v27, %v2282_v47 }
 0xc98   :  { %v2287_v18 = vsel %vm2286_vm14, %v3004_v27, %v2283_v12 }
 0xc99   :  { %v2292_v31 = vsel %vm2289_vm15, %v2291_v4, %v2287_v18  ;;  %v3008_v5 = vpop.eup %3007  ;;  %v4381_v18 = vld [vmem:[#allocation12_spill] sm:$0xff] }
 0xc9a   :  { %v2343_v50 = vmul.f32 %v3008_v5, %v2341_v44  ;;  %vm2348_vm0 = vweird.f32 %v3008_v5  ;;  %v2447_v4 = vrot.slane %v4381_v18, 4 }
 0xc9b   :  { %vm2349_vm3 = vmor %vm2347_vm2, %vm2348_vm0 }
 0xc9c   :  { %v2344_v32 = vsub.f32 1.0, %v2343_v50 }
 0xc9e   :  { %v2345_v9 = vmul.f32 %v3008_v5, %v2344_v32 }
 0xca0   :  { %v2346_v58 = vadd.f32 %v3008_v5, %v2345_v9 }
 0xca2   :  { %v2350_v10 = vsel %vm2349_vm3, %v3008_v5, %v2346_v58 }
 0xca3   :  { %v2355_v25 = vsel %vm2352_vm4, %v2354_v63, %v2350_v10 }
 0xcb0   :  { %v2308_v26 = vpop.permute.xlu1 %2307 }
 0xcb1   :  { %v2310_v33 = vmul.f32 %v2308_v26, %v2292_v31 }
 0xcb3   :  { %v2374_v46 = vmul.f32 %v2310_v33, %v4376_v2 }
 0xcb5   :  { %v4193_v54 = vadd.f32 %v2375_v40, %v2374_v46 }
 0xcb7   :  { %2799 = vmatmul.msk.f32.vlgmr.msra.gmra.mxu1 %vm572_vm10, %v4193_v54  ;;  %2800 = vmatmul.msk.f32.vlgmr.msra.gmra.mxu2 %vm572_vm10, %v4193_v54 }
 0xce0   :  { %v2371_v42 = vpop.permute.xlu2 %2370 }
 0xce1   :  { %v2373_v59 = vmul.f32 %v2371_v42, %v2355_v25 }
 0xce3   :  { %v2386_v24 = vmul.f32 %v2373_v59, %v4378_v41 }
 0xce5   :  { %v4202_v3 = vadd.f32 %v2387_v39, %v2386_v24  ;;  %v2644_v24 = vld [vmem:[%s4313_s11 + $0x30] sm:$0xff] }
 0xce7   :  { %2801 = vmatmul.msk.f32.vlgmr.msra.gmra.mxu3 %vm572_vm10, %v4202_v3  ;;  %2802 = vmatmul.msk.f32.vlgmr.msrb.gmra.mxu0 %vm572_vm10, %v4202_v3 }
 0xce8   :  { %v2381_v53 = vpop.permute.xlu2 %2380 }
 0xce9   :  { %v2383_v1 = vmul.f32 %v2381_v53, %v4376_v2  ;;  %v2643_v53 = vld [vmem:[%s4313_s11 + $0x28] sm:$0xff] }
 0xceb   :  { %v2385_v28 = vadd.f32 %v2384_v51, %v2383_v1  ;;  %v2642_v51 = vld [vmem:[%s4313_s11 + $0x20] sm:$0xff]  ;;  %v2641_v1 = vld [vmem:[%s4313_s11 + $0x18] sm:$0xff] }
 0xced   :  { %2545 = vrot.lane.b32.xlu2 %v2385_v28, %s3154_s7 }
 0xcf9   :  { %v2393_v52 = vpop.permute.xlu0 %2392 }
 0xcfa   :  { %v2395_v6 = vmul.f32 %v2393_v52, %v4378_v41  ;;  %v2645_v41 = vld [vmem:[%s4313_s11 + $0x38] sm:$0xff] }
 0xcfb   :  { %2657 = vmatpush.msrb.mxu1 %v2645_v41 }
 0xcfc   :  { %v2397_v45 = vadd.f32 %v2396_v37, %v2395_v6 }
 0xcfd   :  { %2658 = vmatpush.msrb.mxu1 %v2644_v24  ;;  %v2701_v24 = vld [vmem:[%s4315_s13 + $0x18] sm:$0xff] }
 0xcfe   :  { %2608 = vrot.lane.b32.xlu1 %v2397_v45, %s3154_s7  ;;  %2721 = vmatpush.msrb.mxu3 %v2701_v24 }
 0xcff   :  { %2659 = vmatpush.msrb.mxu1 %v2643_v53  ;;  %v2700_v53 = vld [vmem:[%s4315_s13 + $0x10] sm:$0xff] }
 0xd00   :  { %2722 = vmatpush.msrb.mxu3 %v2700_v53 }
 0xd01   :  { %2660 = vmatpush.msrb.mxu1 %v2642_v51  ;;  %v2699_v51 = vld [vmem:[%s4315_s13 + $0x8] sm:$0xff] }
 0xd02   :  { %2723 = vmatpush.msrb.mxu3 %v2699_v51 }
 0xd03   :  { %2661 = vmatpush.msrb.mxu1 %v2641_v1  ;;  %v2837_v1 = vld [vmem:[%s4314_s12] ss:$0 sm:$0xff] }
 0xd05   :  { %2662 = vmatpush.msrb.mxu1 %v2640_v21 }
 0xd34   :  { %v2418_v62 = vpop.f32.mrf.mxu1 }
 0xd3a   :  { %v2438_v13 = vpop.f32.mrf.mxu2 }
 0xd3b   :  { %v2443_v16 = vrot.slane %v2438_v13, 6 }
 0xd3d   :  { %v2444_v8 = vsel %vm117_vm1, %v2418_v62, %v2443_v16 }
 0xd3e   :  { %v2446_v38 = vadd.f32 %v2444_v8, %v4380_v49  ;;  %v2639_v49 = vld [vmem:[%s4313_s11 + $0x8] sm:$0xff] }
 0xd3f   :  { %2663 = vmatpush.msrb.mxu1 %v2639_v49 }
 0xd40   :  { %2521 = vrot.lane.b32.xlu2 %v2446_v38, %s3154_s7  ;;  %v2803_v55 = vmul.f32 -1.442695, %v2446_v38  ;;  %v2518_v23 = vrot.slane %v2446_v38, 2  ;;  %v2638_v38 = vld [vmem:[%s4313_s11] sm:$0xff] }
 0xd41   :  { %2664 = vmatpush.msrb.mxu1 %v2638_v38 }
 0xd42   :  { %3009 = vpow2.f32 %v2803_v55  ;;  %v2637_v55 = vld [vmem:[%s4312_s10 + $0x38] sm:$0xff] }
 0xd43   :  { %2680 = vmatpush.msrb.mxu2 %v2637_v55 }
 0xd47   :  { %v2546_v42 = vpop.permute.xlu2 %2545 }
 0xd48   :  { %v3010_v56 = vpop.eup %3009 }
 0xd49   :  { %v2501_v57 = vadd.f32 1.0, %v3010_v56  ;;  %v2636_v56 = vld [vmem:[%s4312_s10 + $0x30] sm:$0xff] }
 0xd4a   :  { %2681 = vmatpush.msrb.mxu2 %v2636_v56 }
 0xd4b   :  { %3011 = vrcp.f32 %v2501_v57  ;;  %v2513_v20 = vand.u32 2147483648, %v2501_v57  ;;  %v2511_v43 = vand.u32 2147483647, %v2501_v57  ;;  %vm2507_vm7 = vweird.f32 %v2501_v57 }
 0xd4c   :  { %3013 = vtanh.f32 %v2518_v23  ;;  %v2634_v23 = vld [vmem:[%s4312_s10 + $0x20] sm:$0xff] }
 0xd4d   :  { %v2514_v22 = vor.u32 1.1754944e-38, %v2513_v20  ;;  %vm2512_vm9 = vcmp.eq.f32.partialorder %v2511_v43, 8.507059e+37 }
 0xd51   :  { %v3012_v0 = vpop.eup %3011 }
 0xd52   :  { %v2503_v48 = vmul.f32 %v3012_v0, %v2501_v57  ;;  %vm2508_vm5 = vweird.f32 %v3012_v0  ;;  %v3014_v47 = vpop.eup %3013  ;;  %v2635_v57 = vld [vmem:[%s4312_s10 + $0x28] sm:$0xff] }
 0xd53   :  { %vm2509_vm8 = vmor %vm2507_vm7, %vm2508_vm5  ;;  %2682 = vmatpush.msrb.mxu2 %v2635_v57 }
 0xd54   :  { %v2504_v7 = vsub.f32 1.0, %v2503_v48 }
 0xd55   :  { %2683 = vmatpush.msrb.mxu2 %v2634_v23 }
 0xd56   :  { %v2505_v14 = vmul.f32 %v3012_v0, %v2504_v7  ;;  %v2633_v7 = vld [vmem:[%s4312_s10 + $0x18] sm:$0xff] }
 0xd57   :  { %2684 = vmatpush.msrb.mxu2 %v2633_v7 }
 0xd58   :  { %v2506_v27 = vadd.f32 %v3012_v0, %v2505_v14 }
 0xd5a   :  { %v2510_v60 = vsel %vm2509_vm8, %v3012_v0, %v2506_v27 }
 0xd5b   :  { %v2515_v61 = vsel %vm2512_vm9, %v2514_v22, %v2510_v60 }
 0xd5c   :  { %v2549_v12 = vmul.f32 %v3014_v47, %v2515_v61  ;;  %v2548_v25 = vmul.f32 %v2546_v42, %v2515_v61 }
 0xd5e   :  { %2551 = vrot.lane.b32.xlu1 %v2549_v12, %s3154_s7 }
 0xd64   :  { %v2489_v17 = vpop.f32.mrf.mxu0 }
 0xd65   :  { %v2494_v15 = vrot.slane %v2489_v17, 6 }
 0xd6a   :  { %v2469_v29 = vpop.f32.mrf.mxu3 }
 0xd6b   :  { %v2495_v31 = vsel %vm117_vm1, %v2469_v29, %v2494_v15  ;;  %v4382_v29 = vld [vmem:[#allocation16_spill] sm:$0xff] }
 0xd6c   :  { %v2497_v26 = vadd.f32 %v2495_v31, %v2447_v4  ;;  %v2625_v31 = vmul.f32 %v4193_v54, %v4382_v29  ;;  %v2630_v54 = vld [vmem:[%s4312_s10] sm:$0xff] }
 0xd6e   :  { %v2805_v33 = vmul.f32 -1.442695, %v2497_v26  ;;  %v2581_v2 = vrot.slane %v2497_v26, 2 }
 0xd70   :  { %3015 = vpow2.f32 %v2805_v33  ;;  %v2609_v63 = vpop.permute.xlu1 %2608 }
 0xd76   :  { %v3016_v34 = vpop.eup %3015 }
 0xd77   :  { %v2564_v36 = vadd.f32 1.0, %v3016_v34 }
 0xd79   :  { %3017 = vrcp.f32 %v2564_v36  ;;  %v2576_v44 = vand.u32 2147483648, %v2564_v36  ;;  %v2574_v50 = vand.u32 2147483647, %v2564_v36  ;;  %vm2570_vm12 = vweird.f32 %v2564_v36 }
 0xd7a   :  { %3019 = vtanh.f32 %v2581_v2  ;;  %v2632_v2 = vld [vmem:[%s4312_s10 + $0x10] sm:$0xff] }
 0xd7b   :  { %v2577_v9 = vor.u32 1.1754944e-38, %v2576_v44  ;;  %vm2575_vm1 = vcmp.eq.f32.partialorder %v2574_v50, 8.507059e+37  ;;  %2685 = vmatpush.msrb.mxu2 %v2632_v2 }
 0xd7f   :  { %v3018_v40 = vpop.eup %3017 }
 0xd80   :  { %v2566_v46 = vmul.f32 %v3018_v40, %v2564_v36  ;;  %vm2571_vm11 = vweird.f32 %v3018_v40  ;;  %v3020_v30 = vpop.eup %3019 }
 0xd81   :  { %vm2572_vm13 = vmor %vm2570_vm12, %vm2571_vm11 }
 0xd82   :  { %v2567_v11 = vsub.f32 1.0, %v2566_v46  ;;  %v2631_v46 = vld [vmem:[%s4312_s10 + $0x8] sm:$0xff] }
 0xd83   :  { %2686 = vmatpush.msrb.mxu2 %v2631_v46 }
 0xd84   :  { %v2568_v5 = vmul.f32 %v3018_v40, %v2567_v11 }
 0xd85   :  { %2687 = vmatpush.msrb.mxu2 %v2630_v54 }
 0xd86   :  { %v2569_v32 = vadd.f32 %v3018_v40, %v2568_v5 }
 0xd88   :  { %v2573_v58 = vsel %vm2572_vm13, %v3018_v40, %v2569_v32 }
 0xd89   :  { %v2578_v19 = vsel %vm2575_vm1, %v2577_v9, %v2573_v58 }
 0xd8a   :  { %v2612_v10 = vmul.f32 %v3020_v30, %v2578_v19  ;;  %v2611_v28 = vmul.f32 %v2609_v63, %v2578_v19 }
 0xd8c   :  { %2614 = vrot.lane.b32.xlu0 %v2612_v10, %s3154_s7 }
 0xd94   :  { %2584 = vrot.lane.b32.xlu0 %v2497_v26, %s3154_s7  ;;  %v4383_v26 = vld [vmem:[#allocation15_spill] sm:$0xff] }
 0xd9a   :  { %v2522_v45 = vpop.permute.xlu2 %2521 }
 0xd9b   :  { %v2523_v13 = vrot.slane %v2522_v45, 2 }
 0xd9d   :  { %v2804_v16 = vmul.f32 -1.442695, %v2523_v13  ;;  %v2838_v13 = vld [vmem:[#allocation2] ss:$0 sm:$0xff] }
 0xdd0   :  { %v2552_v59 = vpop.permute.xlu1 %2551 }
 0xdd1   :  { %v2554_v35 = vadd.f32 %v2552_v59, %v2548_v25  ;;  %v4384_v25 = vld [vmem:[#allocation14_spill] sm:$0xff] }
 0xdd2   :  { %v2628_v59 = vmul.f32 %v4202_v3, %v4384_v25  ;;  %v2698_v3 = vld [vmem:[%s4315_s13] sm:$0xff] }
 0xdd3   :  { %3021 = vtanh.f32 %v2554_v35  ;;  %v4385_v35 = vld [vmem:[#allocation13_spill] sm:$0xff]  ;;  %2724 = vmatpush.msrb.mxu3 %v2698_v3 }
 0xdd9   :  { %v3022_v39 = vpop.eup %3021 }
 0xdda   :  { %2557 = vrot.lane.b32.xlu0 %v3022_v39, %s3154_s7 }
 0xdfe   :  { %v2615_v52 = vpop.permute.xlu0 %2614 }
 0xdff   :  { %v2617_v37 = vadd.f32 %v2615_v52, %v2611_v28 }
 0xe01   :  { %3023 = vtanh.f32 %v2617_v37 }
 0xe02   :  { %3025 = vpow2.f32 %v2804_v16 }
 0xe06   :  { %v2585_v43 = vpop.permute.xlu0 %2584 }
 0xe07   :  { %v3024_v6 = vpop.eup %3023  ;;  %v2586_v47 = vrot.slane %v2585_v43, 2 }
 0xe08   :  { %2620 = vrot.lane.b32.xlu1 %v3024_v6, %s3154_s7  ;;  %v3026_v62 = vpop.eup %3025 }
 0xe09   :  { %v2528_v8 = vadd.f32 1.0, %v3026_v62  ;;  %v2806_v18 = vmul.f32 -1.442695, %v2586_v47 }
 0xe0b   :  { %3027 = vrcp.f32 %v2528_v8  ;;  %v2540_v22 = vand.u32 2147483648, %v2528_v8  ;;  %vm2534_vm15 = vweird.f32 %v2528_v8  ;;  %v2538_v60 = vand.u32 2147483647, %v2528_v8 }
 0xe0c   :  { %3029 = vpow2.f32 %v2806_v18 }
 0xe0d   :  { %v2541_v12 = vor.u32 1.1754944e-38, %v2540_v22  ;;  %vm2539_vm2 = vcmp.eq.f32.partialorder %v2538_v60, 8.507059e+37 }
 0xe11   :  { %v3028_v0 = vpop.eup %3027 }
 0xe12   :  { %v2530_v48 = vmul.f32 %v3028_v0, %v2528_v8  ;;  %vm2535_vm14 = vweird.f32 %v3028_v0  ;;  %v3030_v36 = vpop.eup %3029 }
 0xe13   :  { %vm2536_vm0 = vmor %vm2534_vm15, %vm2535_vm14  ;;  %v2591_v40 = vadd.f32 1.0, %v3030_v36 }
 0xe14   :  { %v2531_v20 = vsub.f32 1.0, %v2530_v48 }
 0xe15   :  { %3031 = vrcp.f32 %v2591_v40  ;;  %v2603_v9 = vand.u32 2147483648, %v2591_v40  ;;  %vm2597_vm4 = vweird.f32 %v2591_v40  ;;  %v2601_v58 = vand.u32 2147483647, %v2591_v40 }
 0xe16   :  { %v2532_v14 = vmul.f32 %v3028_v0, %v2531_v20 }
 0xe17   :  { %v2604_v19 = vor.u32 1.1754944e-38, %v2603_v9  ;;  %vm2602_vm7 = vcmp.eq.f32.partialorder %v2601_v58, 8.507059e+37 }
 0xe18   :  { %v2533_v27 = vadd.f32 %v3028_v0, %v2532_v14 }
 0xe1a   :  { %v2537_v61 = vsel %vm2536_vm0, %v3028_v0, %v2533_v27 }
 0xe1b   :  { %v2542_v17 = vsel %vm2539_vm2, %v2541_v12, %v2537_v61  ;;  %v3032_v11 = vpop.eup %3031 }
 0xe1c   :  { %v2593_v44 = vmul.f32 %v3032_v11, %v2591_v40  ;;  %vm2598_vm3 = vweird.f32 %v3032_v11 }
 0xe1d   :  { %vm2599_vm5 = vmor %vm2597_vm4, %vm2598_vm3 }
 0xe1e   :  { %v2594_v5 = vsub.f32 1.0, %v2593_v44 }
 0xe20   :  { %v2595_v50 = vmul.f32 %v3032_v11, %v2594_v5 }
 0xe22   :  { %v2596_v32 = vadd.f32 %v3032_v11, %v2595_v50 }
 0xe24   :  { %v2600_v30 = vsel %vm2599_vm5, %v3032_v11, %v2596_v32 }
 0xe25   :  { %v2605_v10 = vsel %vm2602_vm7, %v2604_v19, %v2600_v30 }
 0xe4c   :  { %v2558_v15 = vpop.permute.xlu0 %2557 }
 0xe4d   :  { %v2560_v4 = vmul.f32 %v2558_v15, %v2542_v17 }
 0xe4f   :  { %v2624_v33 = vmul.f32 %v2560_v4, %v4383_v26 }
 0xe51   :  { %v2626_v34 = vadd.f32 %v2625_v31, %v2624_v33 }
 0xe53   :  { %2807 = vmatmul.msk.f32.vlgmr.msrb.gmra.mxu1 %vm572_vm10, %v2626_v34 }
 0xe7a   :  { %v2621_v63 = vpop.permute.xlu1 %2620 }
 0xe7b   :  { %v2623_v42 = vmul.f32 %v2621_v63, %v2605_v10 }
 0xe7d   :  { %v2627_v39 = vmul.f32 %v2623_v42, %v4385_v35 }
 0xe7f   :  { %v2629_v41 = vadd.f32 %v2628_v59, %v2627_v39 }
 0xe81   :  { %2808 = vmatmul.msk.f32.vlgmr.msrb.gmra.mxu2 %vm572_vm10, %v2629_v41  ;;  %vm2729_vm10 = vcmask 1024  }
 0xed0   :  { %v2666_v28 = vpop.f32.mrf.mxu1 }
 0xf04   :  { %v2689_v52 = vpop.f32.mrf.mxu2 }
 0xf05   :  { %v2690_v37 = vadd.f32 %v2689_v52, %v2666_v28 }
 0xf07   :  { %v2696_v6 = vadd.f32 %v2837_v1, %v2690_v37 }
 0xf09   :  { %v2697_v45 = vmax.f32 %v2696_v6, 0.0 }
 0xf0b   :  { %2809 = vmatmul.msk.f32.vlgmr.msrb.gmra.mxu3 %vm376_vm6, %v2697_v45 }
 0xf8e   :  { %v2726_v16 = vpop.f32.mrf.mxu3 }
 0xf8f   :  { %v2727_v62 = vadd.f32 %v2838_v13, %v2726_v16 }
 0xf91   :  { %2730 = vst.msk [vmem:[%s4317_s15] sm:$0x3] %vm2729_vm10, %v2727_v62 }
 0xf92   :  { %2735 = vsyncpa [#allocation4], 1 }
 0xf93   :  { %2736 = vsyncpa [#allocation6], 1 }

</bundles_post_ra>
